<compile_context>
chip_gen: v5e
topology: v5e:2x2
jax: 0.10.0
libtpu: 0.0.40
codegen_flags: <defaults>
</compile_context>

<pallas_src>
import functools

import jax
import jax.numpy as jnp
from jax import lax
from jax.experimental import pallas as pl
from jax.experimental.pallas import tpu as pltpu


# --------------------------------------------------------------------------
# Kernel 1: fused recognition model (GAT layer 1 + GAT layer 2 + reparametrize)
#   grid = (phase, row_tile);  phase 0 = layer 1, phase 1 = layer 2 + reparam
# --------------------------------------------------------------------------
def recognition_kernel(h1_ref, as1_ref, ad1_ref, b1_ref, w2e_ref, b2_ref,
                       eps_ref, bias_ref, mlz_ref, he2_scratch):
    """Shapes (F1 = layer_embd, D = out_embd, F2 = 2*D, T = row tile):
       h1_ref   (N, F1)      resident   x_emb @ W1
       as1_ref  (1, N)       resident   (x_emb @ W1 @ a_src1)^T
       ad1_ref  (N, 1)       resident   x_emb @ W1 @ a_dst1
       b1_ref   (1, F1)      resident
       w2e_ref  (F1, F2+2)   resident   [W2 | W2 a_src2 | W2 a_dst2]
       b2_ref   (1, F2)      resident
       eps_ref  (N, D)       resident   N(0,1) noise
       bias_ref (T, N) bf16  tiled      additive mask bias (0 / -1e30)
       mlz_ref  (T, 3D)      tiled out  [mu || logvar || z]
       he2_scratch (N, F2+2) VMEM       layer-1 output projected by w2e
    """
    phase = pl.program_id(0)
    t = pl.program_id(1)
    tile_rows = bias_ref.shape[0]
    out_embd = eps_ref.shape[1]
    f2 = 2 * out_embd
    row0 = pl.multiple_of(t * tile_rows, tile_rows)

    # additive neighbor-mask bias for this row tile (bf16 in HBM -> f32 here)
    bias = bias_ref[...].astype(jnp.float32)                    # (T, N)

    def gat_attention(a_dst_tile, a_src_row, h_full, b_row):
        # e[i, j] = LeakyReLU(a_dst[i] + a_src[j]) + bias[i, j]
        e = a_dst_tile + a_src_row                               # (T,1)+(1,N)
        e = jnp.maximum(e, 0.2 * e) + bias                       # LeakyReLU + mask
        m = jnp.max(e, axis=-1, keepdims=True)
        p = jnp.exp(e - m)                                       # masked -> 0
        denom = jnp.sum(p, axis=-1, keepdims=True)
        attn = p * (1.0 / denom)                                 # exact softmax
        agg = jnp.dot(attn, h_full, preferred_element_type=jnp.float32) + b_row
        return 1.0 / (1.0 + jnp.exp(-agg))                       # exact sigmoid

    @pl.when(phase == 0)
    def _layer1():
        ad1_t = ad1_ref[pl.ds(row0, tile_rows), :]               # (T, 1)
        out1_t = gat_attention(ad1_t, as1_ref[...], h1_ref[...], b1_ref[...])
        # project layer-1 output through [W2 | W2 a_src2 | W2 a_dst2] right away
        # so out1 itself never needs to be stored.
        he2_scratch[pl.ds(row0, tile_rows), :] = jnp.dot(
            out1_t, w2e_ref[...], preferred_element_type=jnp.float32)

    @pl.when(phase == 1)
    def _layer2():
        h2 = he2_scratch[:, :f2]                                 # (N, F2)
        as2_row = he2_scratch[:, f2:f2 + 1].T                    # (1, N)
        he2_t = he2_scratch[pl.ds(row0, tile_rows), :]           # (T, F2+2)
        ad2_t = he2_t[:, f2 + 1:f2 + 2]                          # (T, 1)

        out2_t = gat_attention(ad2_t, as2_row, h2, b2_ref[...])  # (T, F2)
        mu = out2_t[:, :out_embd]
        logvar = out2_t[:, out_embd:]
        std = jnp.exp(0.5 * logvar)
        z = eps_ref[pl.ds(row0, tile_rows), :] * std + mu

        # single (T, 3D) output slab: [mu || logvar || z]
        mlz_ref[:, :f2] = out2_t
        mlz_ref[:, f2:] = z


# --------------------------------------------------------------------------
# Kernel 2: generation model  A_hat = sigmoid(Z @ Z^T), row-tiled + parallel
# --------------------------------------------------------------------------
def generation_kernel(z_ref, ahat_ref):
    tile_rows = ahat_ref.shape[0]
    row0 = pl.multiple_of(pl.program_id(0) * tile_rows, tile_rows)
    z_tile = z_ref[pl.ds(row0, tile_rows), :]                    # (T, D)
    # contract dim 1 of both operands: no explicit Z^T is materialized.
    logits = lax.dot_general(z_tile, z_ref[...],
                             dimension_numbers=(((1,), (1,)), ((), ())),
                             preferred_element_type=jnp.float32)
    # sigmoid(x) = 0.5 * tanh(0.5 x) + 0.5 : one EUP op, strictly in [0, 1].
    ahat_ref[...] = 0.5 * jnp.tanh(0.5 * logits) + 0.5


# --------------------------------------------------------------------------
# Wrappers
# --------------------------------------------------------------------------
_VMEM_LIMIT = 48 * 1024 * 1024  # fits v7x's 64 MiB physical VMEM, > v5e default


def _pick_tile_rows(n):
    # Largest row tile that divides N, is a multiple of 8 (sublane packing),
    # and keeps the ~6 live (TILE, N) f32 temporaries well under scoped VMEM
    # on every generation (v5e 16 MiB default ... v7x 64 MiB physical).
    for t in (512, 256, 128, 64, 32, 16, 8):
        if n % t == 0 and t * n * 4 * 6 <= 24 * 1024 * 1024:
            return t
    return n


def _recognition_cost(n, f1, d):
    f2 = 2 * d
    flops = 2 * n * n * (f1 + f2) + 2 * n * f1 * (f2 + 2) + 10 * n * n
    transcendentals = 2 * n * n + n * (f1 + f2 + d)
    bytes_accessed = 2 * (2 * n * n) + 4 * (n * f1 + 2 * n + f1 + f1 * (f2 + 2)
                                            + f2 + n * d + n * 3 * d)
    return pl.CostEstimate(flops=int(flops), transcendentals=int(transcendentals),
                           bytes_accessed=int(bytes_accessed))


def _generation_cost(n, d):
    return pl.CostEstimate(flops=int(2 * n * n * d + 2 * n * n),
                           transcendentals=int(n * n),
                           bytes_accessed=int(4 * (n * d + n * n)))


def gat_vae_recognition(h1, as1_row, ad1, b1, w2_ext, b2, eps, mask_bias,
                        tile_rows):
    n, f1 = h1.shape
    d = eps.shape[1]
    f2 = 2 * d
    assert n % tile_rows == 0 and (tile_rows % 8 == 0 or tile_rows == n)
    num_tiles = n // tile_rows
    resident = lambda p, t: (0, 0)   # loaded once, stays in VMEM

    grid_spec = pltpu.PrefetchScalarGridSpec(
        num_scalar_prefetch=0,
        grid=(2, num_tiles),                         # (layer phase, row tile)
        in_specs=[
            pl.BlockSpec((n, f1), resident),         # h1
            pl.BlockSpec((1, n), resident),          # as1_row
            pl.BlockSpec((n, 1), resident),          # ad1
            pl.BlockSpec((1, f1), resident),         # b1
            pl.BlockSpec((f1, f2 + 2), resident),    # w2_ext
            pl.BlockSpec((1, f2), resident),         # b2
            pl.BlockSpec((n, d), resident),          # eps
            pl.BlockSpec((tile_rows, n), lambda p, t: (t, 0)),   # mask bias rows
        ],
        # Only phase 1 writes the output; `p*t` pins the index to block 0 during
        # phase 0 so every HBM writeback happens after the correct phase-1 write.
        out_specs=pl.BlockSpec((tile_rows, 3 * d), lambda p, t: (p * t, 0)),
        scratch_shapes=[pltpu.VMEM((n, f2 + 2), jnp.float32)],
    )
    return pl.pallas_call(
        recognition_kernel,
        out_shape=jax.ShapeDtypeStruct((n, 3 * d), jnp.float32),
        grid_spec=grid_spec,
        compiler_params=pltpu.CompilerParams(
            # phase axis is a true sequential dependency (layer 2 needs every
            # layer-1 row in the per-core VMEM scratch) -> cannot be 'parallel'.
            dimension_semantics=("arbitrary", "arbitrary"),
            vmem_limit_bytes=_VMEM_LIMIT),
        cost_estimate=_recognition_cost(n, f1, d),
    )(h1, as1_row, ad1, b1, w2_ext, b2, eps, mask_bias)


def gat_vae_generation(z, tile_rows):
    n, d = z.shape
    assert n % tile_rows == 0 and (tile_rows % 8 == 0 or tile_rows == n)
    return pl.pallas_call(
        generation_kernel,
        out_shape=jax.ShapeDtypeStruct((n, n), jnp.float32),
        grid_spec=pltpu.PrefetchScalarGridSpec(
            num_scalar_prefetch=0,
            grid=(n // tile_rows,),
            in_specs=[pl.BlockSpec((n, d), lambda t: (0, 0))],   # Z resident
            out_specs=pl.BlockSpec((tile_rows, n), lambda t: (t, 0)),
        ),
        compiler_params=pltpu.CompilerParams(
            dimension_semantics=("parallel",),       # megacore-sharded on v7x
            vmem_limit_bytes=_VMEM_LIMIT),
        cost_estimate=_generation_cost(n, d),
    )(z)


# --------------------------------------------------------------------------
# Parameters (deterministic init, shapes per GAT_VAE.__init__)
# --------------------------------------------------------------------------
def init_params(key, in_embd, layer_embd, out_embd):
    vocab_sizes = [35, 10, 5, 7, 5, 5]
    keys = jax.random.split(key, 16)

    def glorot(k, shape):
        fan_in, fan_out = shape
        s = jnp.sqrt(6.0 / (fan_in + fan_out))
        return jax.random.uniform(k, shape, jnp.float32, -s, s)

    return {
        "emb": [jax.random.normal(keys[i], (vocab_sizes[i], in_embd), jnp.float32)
                for i in range(6)],
        "w1": glorot(keys[6], (6 * in_embd, layer_embd)),
        "b1": jnp.zeros((1, layer_embd), jnp.float32),
        "a_src1": glorot(keys[7], (layer_embd, 1)),
        "a_dst1": glorot(keys[8], (layer_embd, 1)),
        "w2": glorot(keys[9], (layer_embd, 2 * out_embd)),
        "b2": jnp.zeros((1, 2 * out_embd), jnp.float32),
        "a_src2": glorot(keys[10], (2 * out_embd, 1)),
        "a_dst2": glorot(keys[11], (2 * out_embd, 1)),
    }


# --------------------------------------------------------------------------
# Forward (type_ == 'pretrain')
# --------------------------------------------------------------------------
def gat_vae_forward_pretrain(params, x, edge_index, eps_key, tile_rows=None):
    n = x.shape[0]
    out_embd = params["w2"].shape[1] // 2
    if tile_rows is None:
        tile_rows = _pick_tile_rows(n)

    # --- glue: embedding lookups (6 categorical features) + concat ---------
    x_emb = jnp.concatenate(
        [jnp.take(params["emb"][i], x[:, i], axis=0) for i in range(6)], axis=1)

    # --- glue: densify edge_index -> adjacency A and additive mask bias ----
    A = jnp.zeros((n, n), jnp.float32).at[edge_index[0], edge_index[1]].set(1.0)
    # messages flow source -> target; target i attends over {j : A[j,i]=1} + self
    # TODO(synk): verify the repo's edge_index (source, target) convention.
    mask = jnp.minimum(A.T + jnp.eye(n, dtype=jnp.float32), 1.0)
    mask_bias = ((mask - 1.0) * 1e30).astype(jnp.bfloat16)   # 0 / -1e30, bf16

    # --- glue: layer-1 projection + attention columns in one XLA pass ------
    h1e = x_emb @ params["w1"]                       # (N, layer_embd)
    as1_row = (h1e @ params["a_src1"]).T             # (1, N)
    ad1 = h1e @ params["a_dst1"]                     # (N, 1)

    # layer-2 projection happens in-kernel (its input never leaves VMEM)
    w2_ext = jnp.concatenate(
        [params["w2"], params["w2"] @ params["a_src2"],
         params["w2"] @ params["a_dst2"]], axis=1)   # (layer_embd, 2D+2)

    eps = jax.random.normal(eps_key, (n, out_embd), jnp.float32)

    # --- Pallas hot path ----------------------------------------------------
    mlz = gat_vae_recognition(h1e, as1_row, ad1, params["b1"], w2_ext,
                              params["b2"], eps, mask_bias, tile_rows)
    mu = mlz[:, :out_embd]
    logvar = mlz[:, out_embd:2 * out_embd]
    z = mlz[:, 2 * out_embd:]

    A_hat = gat_vae_generation(z, tile_rows)
    return A, A_hat, mu, logvar


# --------------------------------------------------------------------------
if __name__ == "__main__":
    in_embd, layer_embd, out_embd = 8, 32, 16
    N = 256
    TILE_ROWS = 128   # force >=2 row tiles so the pipelined grid is exercised

    key = jax.random.PRNGKey(0)
    k_param, k_x, k_eps = jax.random.split(key, 3)
    params = init_params(k_param, in_embd, layer_embd, out_embd)

    # node categorical features, one column per embedding table (valid ranges)
    vocab_sizes = jnp.array([35, 10, 5, 7, 5, 5], dtype=jnp.int32)
    raw = jax.random.randint(k_x, (N, 6), 0, 1000, dtype=jnp.int32)
    x = raw % vocab_sizes[None, :]

    # deterministic ring graph (both directions), edge_index shape (2, 2N)
    src = jnp.arange(N, dtype=jnp.int32)
    dst = (src + 1) % N
    edge_index = jnp.stack(
        [jnp.concatenate([src, dst]), jnp.concatenate([dst, src])], axis=0)

    fwd = jax.jit(gat_vae_forward_pretrain, static_argnames=("tile_rows",))
    A, A_hat, mu, logvar = fwd(params, x, edge_index, k_eps, tile_rows=TILE_ROWS)
    jax.block_until_ready((A, A_hat, mu, logvar))

    assert A.shape == (N, N)
    assert A_hat.shape == (N, N)
    assert mu.shape == (N, out_embd)
    assert logvar.shape == (N, out_embd)
    assert bool(jnp.all(jnp.isfinite(A_hat)))
    assert bool(jnp.all((A_hat >= 0.0) & (A_hat <= 1.0)))
    assert bool(jnp.all(jnp.isfinite(mu))) and bool(jnp.all(jnp.isfinite(logvar)))
    # mu/logvar are sigmoid outputs of a convex combination of sigmoid features
    assert bool(jnp.all((mu >= 0.0) & (mu <= 1.0)))
    assert bool(jnp.all((logvar >= 0.0) & (logvar <= 1.0)))

    print("KERNEL_OK")
</pallas_src>

<mosaic_0001>
module attributes {stable_mosaic.version = 11 : i64} {
  func.func @recognition_kernel(%arg0: i32, %arg1: i32, %arg2: memref<256x32xf32, #tpu.memory_space<vmem>>, %arg3: memref<1x256xf32, #tpu.memory_space<vmem>>, %arg4: memref<256x1xf32, #tpu.memory_space<vmem>>, %arg5: memref<1x32xf32, #tpu.memory_space<vmem>>, %arg6: memref<32x34xf32, #tpu.memory_space<vmem>>, %arg7: memref<1x32xf32, #tpu.memory_space<vmem>>, %arg8: memref<256x16xf32, #tpu.memory_space<vmem>>, %arg9: memref<128x256xbf16, #tpu.memory_space<vmem>>, %arg10: memref<128x48xf32, #tpu.memory_space<vmem>>, %arg11: memref<256x34xf32, #tpu.memory_space<vmem>>) attributes {dimension_semantics = [#tpu.dimension_semantics<arbitrary>, #tpu.dimension_semantics<arbitrary>], iteration_bounds = array<i64: 2, 2>, scalar_prefetch = 0 : i64, scratch_operands = 1 : i64, tpu.core_type = #tpu.core_type<tc>, window_params = [{pipeline_mode = #tpu.pipeline_mode<synchronous>, transform_indices = @transform_0, window_bounds = array<i64: 256, 32>}, {pipeline_mode = #tpu.pipeline_mode<synchronous>, transform_indices = @transform_1, window_bounds = array<i64: 1, 256>}, {pipeline_mode = #tpu.pipeline_mode<synchronous>, transform_indices = @transform_2, window_bounds = array<i64: 256, 1>}, {pipeline_mode = #tpu.pipeline_mode<synchronous>, transform_indices = @transform_3, window_bounds = array<i64: 1, 32>}, {pipeline_mode = #tpu.pipeline_mode<synchronous>, transform_indices = @transform_4, window_bounds = array<i64: 32, 34>}, {pipeline_mode = #tpu.pipeline_mode<synchronous>, transform_indices = @transform_5, window_bounds = array<i64: 1, 32>}, {pipeline_mode = #tpu.pipeline_mode<synchronous>, transform_indices = @transform_6, window_bounds = array<i64: 256, 16>}, {transform_indices = @transform_7, window_bounds = array<i64: 128, 256>}, {transform_indices = @transform_8, window_bounds = array<i64: 128, 48>}]} {
    %c128_i32 = arith.constant 128 : i32
    %0 = arith.muli %arg1, %c128_i32 : i32
    %1 = tpu.assume_multiple %0, 128 : i32
    %c0 = arith.constant 0 : index
    %c0_0 = arith.constant 0 : index
    %2 = vector.load %arg9[%c0, %c0_0] : memref<128x256xbf16, #tpu.memory_space<vmem>>, vector<128x256xbf16>
    %3 = arith.extf %2 : vector<128x256xbf16> to vector<128x256xf32>
    %c0_i32 = arith.constant 0 : i32
    %4 = arith.cmpi eq, %arg0, %c0_i32 : i32
    %5 = arith.extui %4 : i1 to i32
    %c0_i32_1 = arith.constant 0 : i32
    %6 = arith.cmpi ne, %5, %c0_i32_1 : i32
    scf.if %6 {
      %10 = arith.index_cast %1 : i32 to index
      %c0_3 = arith.constant 0 : index
      %11 = vector.load %arg4[%10, %c0_3] : memref<256x1xf32, #tpu.memory_space<vmem>>, vector<128x1xf32>
      %c0_4 = arith.constant 0 : index
      %c0_5 = arith.constant 0 : index
      %12 = vector.load %arg3[%c0_4, %c0_5] : memref<1x256xf32, #tpu.memory_space<vmem>>, vector<1x256xf32>
      %c0_6 = arith.constant 0 : index
      %c0_7 = arith.constant 0 : index
      %13 = vector.load %arg2[%c0_6, %c0_7] : memref<256x32xf32, #tpu.memory_space<vmem>>, vector<256x32xf32>
      %c0_8 = arith.constant 0 : index
      %c0_9 = arith.constant 0 : index
      %14 = vector.load %arg5[%c0_8, %c0_9] : memref<1x32xf32, #tpu.memory_space<vmem>>, vector<1x32xf32>
      %15 = vector.broadcast %11 : vector<128x1xf32> to vector<128x256xf32>
      %16 = vector.broadcast %12 : vector<1x256xf32> to vector<128x256xf32>
      %17 = arith.addf %15, %16 : vector<128x256xf32>
      %cst = arith.constant 2.000000e-01 : f32
      %18 = vector.broadcast %cst : f32 to vector<128x256xf32>
      %19 = arith.mulf %18, %17 : vector<128x256xf32>
      %20 = arith.maximumf %17, %19 : vector<128x256xf32>
      %21 = arith.addf %20, %3 : vector<128x256xf32>
      %cst_10 = arith.constant dense<0xFF800000> : vector<128xf32>
      %22 = vector.multi_reduction <maximumf>, %21, %cst_10 [1] : vector<128x256xf32> to vector<128xf32>
      %23 = vector.shape_cast %22 : vector<128xf32> to vector<128x1xf32>
      %24 = vector.broadcast %23 : vector<128x1xf32> to vector<128x256xf32>
      %25 = arith.subf %21, %24 : vector<128x256xf32>
      %26 = math.exp %25 : vector<128x256xf32>
      %cst_11 = arith.constant dense<0.000000e+00> : vector<128xf32>
      %27 = vector.multi_reduction <add>, %26, %cst_11 [1] : vector<128x256xf32> to vector<128xf32>
      %28 = vector.shape_cast %27 : vector<128xf32> to vector<128x1xf32>
      %cst_12 = arith.constant 1.000000e+00 : f32
      %29 = vector.broadcast %cst_12 : f32 to vector<128x1xf32>
      %30 = arith.divf %29, %28 : vector<128x1xf32>
      %31 = vector.broadcast %30 : vector<128x1xf32> to vector<128x256xf32>
      %32 = arith.mulf %26, %31 : vector<128x256xf32>
      %cst_13 = arith.constant dense<0.000000e+00> : vector<128x32xf32>
      %33 = tpu.matmul %32, %13, %cst_13 {dimension_numbers = #tpu.dot_dimension_numbers<[1], [0], [0], [1], [0, 0, 1, 1], [], []>} : vector<128x256xf32>, vector<256x32xf32>, vector<128x32xf32> -> vector<128x32xf32>
      %34 = vector.broadcast %14 : vector<1x32xf32> to vector<128x32xf32>
      %35 = arith.addf %33, %34 : vector<128x32xf32>
      %cst_14 = arith.constant 0.000000e+00 : f32
      %36 = vector.broadcast %cst_14 : f32 to vector<128x32xf32>
      %37 = arith.subf %36, %35 : vector<128x32xf32>
      %38 = math.exp %37 : vector<128x32xf32>
      %cst_15 = arith.constant 1.000000e+00 : f32
      %39 = vector.broadcast %cst_15 : f32 to vector<128x32xf32>
      %40 = arith.addf %39, %38 : vector<128x32xf32>
      %cst_16 = arith.constant 1.000000e+00 : f32
      %41 = vector.broadcast %cst_16 : f32 to vector<128x32xf32>
      %42 = arith.divf %41, %40 : vector<128x32xf32>
      %c0_17 = arith.constant 0 : index
      %c0_18 = arith.constant 0 : index
      %43 = vector.load %arg6[%c0_17, %c0_18] : memref<32x34xf32, #tpu.memory_space<vmem>>, vector<32x34xf32>
      %cst_19 = arith.constant dense<0.000000e+00> : vector<128x34xf32>
      %44 = tpu.matmul %42, %43, %cst_19 {dimension_numbers = #tpu.dot_dimension_numbers<[1], [0], [0], [1], [0, 0, 1, 1], [], []>} : vector<128x32xf32>, vector<32x34xf32>, vector<128x34xf32> -> vector<128x34xf32>
      %45 = arith.index_cast %1 : i32 to index
      %c0_20 = arith.constant 0 : index
      %46 = vector.load %arg11[%45, %c0_20] : memref<256x34xf32, #tpu.memory_space<vmem>>, vector<128x34xf32>
      tpu.vector_store %arg11[%45, %c0_20], %44 {strides = array<i32>} : memref<256x34xf32, #tpu.memory_space<vmem>>, vector<128x34xf32>,
    } else {
    }
    %c1_i32 = arith.constant 1 : i32
    %7 = arith.cmpi eq, %arg0, %c1_i32 : i32
    %8 = arith.extui %7 : i1 to i32
    %c0_i32_2 = arith.constant 0 : i32
    %9 = arith.cmpi ne, %8, %c0_i32_2 : i32
    scf.if %9 {
      %c0_3 = arith.constant 0 : index
      %c0_4 = arith.constant 0 : index
      %10 = vector.load %arg11[%c0_3, %c0_4] : memref<256x34xf32, #tpu.memory_space<vmem>>, vector<256x32xf32>
      %c0_5 = arith.constant 0 : index
      %c32 = arith.constant 32 : index
      %11 = vector.load %arg11[%c0_5, %c32] : memref<256x34xf32, #tpu.memory_space<vmem>>, vector<256x1xf32>
      %12 = tpu.transpose %11, [1, 0] : vector<256x1xf32> -> vector<1x256xf32>
      %13 = arith.index_cast %1 : i32 to index
      %c0_6 = arith.constant 0 : index
      %14 = vector.load %arg11[%13, %c0_6] : memref<256x34xf32, #tpu.memory_space<vmem>>, vector<128x34xf32>
      %15 = vector.extract_strided_slice %14 {offsets = [0, 33], sizes = [128, 1], strides = [1, 1]} : vector<128x34xf32> to vector<128x1xf32>
      %c0_7 = arith.constant 0 : index
      %c0_8 = arith.constant 0 : index
      %16 = vector.load %arg7[%c0_7, %c0_8] : memref<1x32xf32, #tpu.memory_space<vmem>>, vector<1x32xf32>
      %17 = vector.broadcast %15 : vector<128x1xf32> to vector<128x256xf32>
      %18 = vector.broadcast %12 : vector<1x256xf32> to vector<128x256xf32>
      %19 = arith.addf %17, %18 : vector<128x256xf32>
      %cst = arith.constant 2.000000e-01 : f32
      %20 = vector.broadcast %cst : f32 to vector<128x256xf32>
      %21 = arith.mulf %20, %19 : vector<128x256xf32>
      %22 = arith.maximumf %19, %21 : vector<128x256xf32>
      %23 = arith.addf %22, %3 : vector<128x256xf32>
      %cst_9 = arith.constant dense<0xFF800000> : vector<128xf32>
      %24 = vector.multi_reduction <maximumf>, %23, %cst_9 [1] : vector<128x256xf32> to vector<128xf32>
      %25 = vector.shape_cast %24 : vector<128xf32> to vector<128x1xf32>
      %26 = vector.broadcast %25 : vector<128x1xf32> to vector<128x256xf32>
      %27 = arith.subf %23, %26 : vector<128x256xf32>
      %28 = math.exp %27 : vector<128x256xf32>
      %cst_10 = arith.constant dense<0.000000e+00> : vector<128xf32>
      %29 = vector.multi_reduction <add>, %28, %cst_10 [1] : vector<128x256xf32> to vector<128xf32>
      %30 = vector.shape_cast %29 : vector<128xf32> to vector<128x1xf32>
      %cst_11 = arith.constant 1.000000e+00 : f32
      %31 = vector.broadcast %cst_11 : f32 to vector<128x1xf32>
      %32 = arith.divf %31, %30 : vector<128x1xf32>
      %33 = vector.broadcast %32 : vector<128x1xf32> to vector<128x256xf32>
      %34 = arith.mulf %28, %33 : vector<128x256xf32>
      %cst_12 = arith.constant dense<0.000000e+00> : vector<128x32xf32>
      %35 = tpu.matmul %34, %10, %cst_12 {dimension_numbers = #tpu.dot_dimension_numbers<[1], [0], [0], [1], [0, 0, 1, 1], [], []>} : vector<128x256xf32>, vector<256x32xf32>, vector<128x32xf32> -> vector<128x32xf32>
      %36 = vector.broadcast %16 : vector<1x32xf32> to vector<128x32xf32>
      %37 = arith.addf %35, %36 : vector<128x32xf32>
      %cst_13 = arith.constant 0.000000e+00 : f32
      %38 = vector.broadcast %cst_13 : f32 to vector<128x32xf32>
      %39 = arith.subf %38, %37 : vector<128x32xf32>
      %40 = math.exp %39 : vector<128x32xf32>
      %cst_14 = arith.constant 1.000000e+00 : f32
      %41 = vector.broadcast %cst_14 : f32 to vector<128x32xf32>
      %42 = arith.addf %41, %40 : vector<128x32xf32>
      %cst_15 = arith.constant 1.000000e+00 : f32
      %43 = vector.broadcast %cst_15 : f32 to vector<128x32xf32>
      %44 = arith.divf %43, %42 : vector<128x32xf32>
      %45 = vector.extract_strided_slice %44 {offsets = [0, 0], sizes = [128, 16], strides = [1, 1]} : vector<128x32xf32> to vector<128x16xf32>
      %46 = vector.extract_strided_slice %44 {offsets = [0, 16], sizes = [128, 16], strides = [1, 1]} : vector<128x32xf32> to vector<128x16xf32>
      %cst_16 = arith.constant 5.000000e-01 : f32
      %47 = vector.broadcast %cst_16 : f32 to vector<128x16xf32>
      %48 = arith.mulf %47, %46 : vector<128x16xf32>
      %49 = math.exp %48 : vector<128x16xf32>
      %50 = arith.index_cast %1 : i32 to index
      %c0_17 = arith.constant 0 : index
      %51 = vector.load %arg8[%50, %c0_17] : memref<256x16xf32, #tpu.memory_space<vmem>>, vector<128x16xf32>
      %52 = arith.mulf %51, %49 : vector<128x16xf32>
      %53 = arith.addf %52, %45 : vector<128x16xf32>
      %c0_18 = arith.constant 0 : index
      %c0_19 = arith.constant 0 : index
      %54 = vector.load %arg10[%c0_18, %c0_19] : memref<128x48xf32, #tpu.memory_space<vmem>>, vector<128x32xf32>
      tpu.vector_store %arg10[%c0_18, %c0_19], %44 {strides = array<i32>} : memref<128x48xf32, #tpu.memory_space<vmem>>, vector<128x32xf32>,
      %c0_20 = arith.constant 0 : index
      %c32_21 = arith.constant 32 : index
      %55 = vector.load %arg10[%c0_20, %c32_21] : memref<128x48xf32, #tpu.memory_space<vmem>>, vector<128x16xf32>
      tpu.vector_store %arg10[%c0_20, %c32_21], %53 {strides = array<i32>} : memref<128x48xf32, #tpu.memory_space<vmem>>, vector<128x16xf32>,
    } else {
    }
    return
  }
  func.func @transform_0(%arg0: i32, %arg1: i32) -> (i32, i32) {
    %c0_i32 = arith.constant 0 : i32
    %c0_i32_0 = arith.constant 0 : i32
    %c0_i32_1 = arith.constant 0 : i32
    return %c0_i32, %c0_i32_0 : i32, i32
  }
  func.func @transform_1(%arg0: i32, %arg1: i32) -> (i32, i32) {
    %c0_i32 = arith.constant 0 : i32
    %c0_i32_0 = arith.constant 0 : i32
    %c0_i32_1 = arith.constant 0 : i32
    return %c0_i32, %c0_i32_0 : i32, i32
  }
  func.func @transform_2(%arg0: i32, %arg1: i32) -> (i32, i32) {
    %c0_i32 = arith.constant 0 : i32
    %c0_i32_0 = arith.constant 0 : i32
    %c0_i32_1 = arith.constant 0 : i32
    return %c0_i32, %c0_i32_0 : i32, i32
  }
  func.func @transform_3(%arg0: i32, %arg1: i32) -> (i32, i32) {
    %c0_i32 = arith.constant 0 : i32
    %c0_i32_0 = arith.constant 0 : i32
    %c0_i32_1 = arith.constant 0 : i32
    return %c0_i32, %c0_i32_0 : i32, i32
  }
  func.func @transform_4(%arg0: i32, %arg1: i32) -> (i32, i32) {
    %c0_i32 = arith.constant 0 : i32
    %c0_i32_0 = arith.constant 0 : i32
    %c0_i32_1 = arith.constant 0 : i32
    return %c0_i32, %c0_i32_0 : i32, i32
  }
  func.func @transform_5(%arg0: i32, %arg1: i32) -> (i32, i32) {
    %c0_i32 = arith.constant 0 : i32
    %c0_i32_0 = arith.constant 0 : i32
    %c0_i32_1 = arith.constant 0 : i32
    return %c0_i32, %c0_i32_0 : i32, i32
  }
  func.func @transform_6(%arg0: i32, %arg1: i32) -> (i32, i32) {
    %c0_i32 = arith.constant 0 : i32
    %c0_i32_0 = arith.constant 0 : i32
    %c0_i32_1 = arith.constant 0 : i32
    return %c0_i32, %c0_i32_0 : i32, i32
  }
  func.func @transform_7(%arg0: i32, %arg1: i32) -> (i32, i32) {
    %c0_i32 = arith.constant 0 : i32
    %c0_i32_0 = arith.constant 0 : i32
    return %arg1, %c0_i32 : i32, i32
  }
  func.func @transform_8(%arg0: i32, %arg1: i32) -> (i32, i32) {
    %0 = arith.muli %arg0, %arg1 : i32
    %c0_i32 = arith.constant 0 : i32
    %c0_i32_0 = arith.constant 0 : i32
    return %0, %c0_i32 : i32, i32
  }
}

module attributes {stable_mosaic.version = 11 : i64} {
  func.func @generation_kernel(%arg0: i32, %arg1: memref<256x16xf32, #tpu.memory_space<vmem>>, %arg2: memref<128x256xf32, #tpu.memory_space<vmem>>) attributes {dimension_semantics = [#tpu.dimension_semantics<parallel>], iteration_bounds = array<i64: 2>, scalar_prefetch = 0 : i64, scratch_operands = 0 : i64, tpu.core_type = #tpu.core_type<tc>, window_params = [{pipeline_mode = #tpu.pipeline_mode<synchronous>, transform_indices = @transform_0, window_bounds = array<i64: 256, 16>}, {transform_indices = @transform_1, window_bounds = array<i64: 128, 256>}]} {
    %c128_i32 = arith.constant 128 : i32
    %0 = arith.muli %arg0, %c128_i32 : i32
    %1 = tpu.assume_multiple %0, 128 : i32
    %2 = arith.index_cast %1 : i32 to index
    %c0 = arith.constant 0 : index
    %3 = vector.load %arg1[%2, %c0] : memref<256x16xf32, #tpu.memory_space<vmem>>, vector<128x16xf32>
    %c0_0 = arith.constant 0 : index
    %c0_1 = arith.constant 0 : index
    %4 = vector.load %arg1[%c0_0, %c0_1] : memref<256x16xf32, #tpu.memory_space<vmem>>, vector<256x16xf32>
    %cst = arith.constant dense<0.000000e+00> : vector<128x256xf32>
    %5 = tpu.matmul %3, %4, %cst {dimension_numbers = #tpu.dot_dimension_numbers<[1], [1], [0], [0], [0, 0, 1, 0], [], []>} : vector<128x16xf32>, vector<256x16xf32>, vector<128x256xf32> -> vector<128x256xf32>
    %cst_2 = arith.constant 5.000000e-01 : f32
    %6 = vector.broadcast %cst_2 : f32 to vector<128x256xf32>
    %7 = arith.mulf %6, %5 : vector<128x256xf32>
    %8 = math.tanh %7 : vector<128x256xf32>
    %cst_3 = arith.constant 5.000000e-01 : f32
    %9 = vector.broadcast %cst_3 : f32 to vector<128x256xf32>
    %10 = arith.mulf %9, %8 : vector<128x256xf32>
    %cst_4 = arith.constant 5.000000e-01 : f32
    %11 = vector.broadcast %cst_4 : f32 to vector<128x256xf32>
    %12 = arith.addf %10, %11 : vector<128x256xf32>
    %c0_5 = arith.constant 0 : index
    %c0_6 = arith.constant 0 : index
    %13 = vector.load %arg2[%c0_5, %c0_6] : memref<128x256xf32, #tpu.memory_space<vmem>>, vector<128x256xf32>
    tpu.vector_store %arg2[%c0_5, %c0_6], %12 {strides = array<i32>} : memref<128x256xf32, #tpu.memory_space<vmem>>, vector<128x256xf32>,
    return
  }
  func.func @transform_0(%arg0: i32) -> (i32, i32) {
    %c0_i32 = arith.constant 0 : i32
    %c0_i32_0 = arith.constant 0 : i32
    %c0_i32_1 = arith.constant 0 : i32
    return %c0_i32, %c0_i32_0 : i32, i32
  }
  func.func @transform_1(%arg0: i32) -> (i32, i32) {
    %c0_i32 = arith.constant 0 : i32
    %c0_i32_0 = arith.constant 0 : i32
    return %arg0, %c0_i32 : i32, i32
  }
}

</mosaic_0001>

<bundles_post_ra>
// kernel: gat_vae_forward_pretrain.3
= control target key start
LH: loop header
LB: loop body
LE: loop exit
PB: predicated region body
PF: predicated region fallthrough
CT: control target
= control target key end

     0   :  { %6 = vsyncpa [#allocation3], 0  ;;  %s1273_s0 = inlined_call_operand.vmem [shape: f32[256,16], index: 0, kind: input, shape index: {}]   ;;  %s1274_s1 = inlined_call_operand.hbm [shape: f32[256,256], index: 1, kind: output, shape index: {}]  }
   0x1   :  { %8 = vsyncpa [#allocation3 + $0x1], 0  ;;  %s940_s6 = smov 0   ;;  %s942_s7 = smov 0  }
   0x2   :  { %s944_s8 = smov 0   ;;  %s946_s9 = smov 0  }
   0x3 LB: > { %s961_s10 = sadd.s32 4294967295, %s926_s9   ;;  %s650_s11 = sadd.s32 4294967294, %s926_s9   ;;  %s926_s9 = sphi %s946_s9, %s1280_s9   ;;  %s922_s8 = sphi %s944_s8, %s1279_s8   ;;  %s918_s7 = sphi %s942_s7, %s1278_s7   ;;  %s914_s6 = sphi %s940_s6, %s1277_s6  }
   0x4   : > { %s965_s12 = sadd.s32 1, %s926_s9   ;;  %s42_s13 = sadd.s32 1, %s922_s8 }
   0x5   : > { %s39_s14 = ssub.s32 %s926_s9, %s965_s12  ;;  %p52_p0 = scmp.ne.s32.totalorder %s922_s8, %s918_s7 }
   0x6   : > { %p40_p1 = scmp.eq.s32.totalorder %s39_s14, 0  ;;  %p53_p2 = scmp.eq.s32.totalorder %s961_s10, 1 }
   0x7   : > { %p58_p3 = scmp.ne.s32.totalorder %s918_s7, %s914_s6  ;;  %p59_p4 = scmp.eq.s32.totalorder %s650_s11, 1 }
   0x8   : > { %s976_s15 = scalar_select %p40_p1, %s922_s8, %s42_s13  }
   0x9   : > { %p978_p5 = por %p53_p2, %p52_p0  ;;  %p982_p6 = por %p59_p4, %p58_p3 }
   0xa   : > { %p652_p7 = scmp.ge.s32.totalorder %s926_s9, 1  ;;  %p80_p8 = scmp.lt.s32.totalorder %s926_s9, 3 }
   0xc   : > { %p81_p9 = pnand %p652_p7, %p80_p8 }
   0xd   : > { %s654_s18 = sshll.u32 (!%p81_p9), %s961_s10, 7  ;;  %s92_s26 = sand.u32 (!%p81_p9), 1, %s918_s7  }
   0xe   : > { %84 = sbr.rel (%p81_p9) target bundleno = 289 (0x121), region = 24  ;;  %s1148_s25 = scalar_lea.vmem (!%p81_p9), %s1273_s0, %s654_s18 }
   0xf   : > { %s653_s27 = sshll.u32 (!%p81_p9), %s92_s26, 8  ;;  %s726_s29 = sshll.u32 (!%p81_p9), %s961_s10, 8 }
  0x10   : > { %s1205_s28 = scalar_lea.vmem (!%p81_p9), [#allocation2], %s653_s27  ;;  %s594_s3 = scalar_lea.hbm (!%p81_p9), %s1274_s1, %s726_s29 }
  0x11   : > { %s595_s10 = sshll.u32 (!%p81_p9), %s1205_s28, 4  ;;  %s597_s4 = sshll.u32 (!%p81_p9), %s594_s3, 4  ;;  %s596_s10 = int_to_ptr.vmem [resolvable:$true] %s595_s10  ;;  %s598_s4 = int_to_ptr.hbm [resolvable:$true] %s597_s4 }
  0x12   : > { %s582_s5 = scalar_lea.sflag (!%p81_p9), [#allocation3], %s92_s26  ;;  %s878_s11 = sshra.s32 (!%p81_p9), %s598_s4, 4  ;;  %s879_s11 = int_to_ptr.hbm [resolvable:$true] %s878_s11 }
  0x13   : > { %v129_v0 = vld [vmem:[%s1273_s0 + $0x78] sm:$0xff]  ;;  %vm146_vm0 = vcmask 130048   ;;  %v128_v2 = vld [vmem:[%s1273_s0 + $0x70] sm:$0xff]  ;;  %v127_v4 = vld [vmem:[%s1273_s0 + $0x68] sm:$0xff]  ;;  %s880_s13 = scalar_lea.hbm %s879_s11, 256  ;;  %s884_s19 = scalar_lea.hbm %s1274_s1, 512 }
  0x14   : > { %v145_v1 = vld [vmem:[%s1273_s0 + $0xf8] sm:$0xff]  ;;  %727 = vmatpush.xpose.msk.msra.mxu2 %vm146_vm0, %v129_v0  ;;  %v144_v3 = vld [vmem:[%s1273_s0 + $0xf0] sm:$0xff]  ;;  %655 = vmatpush.xpose.msk.msra.mxu0 %vm146_vm0, %v129_v0  ;;  %v143_v5 = vld [vmem:[%s1273_s0 + $0xe8] sm:$0xff]  ;;  %p881_p10 = scmp.ne.s32.totalorder %s879_s11, %s880_s13  ;;  %p885_p13 = scmp.lt.s32.totalorder %s879_s11, %s1274_s1 }
  0x15   : > { %743 = vmatpush.xpose.msk.msra.mxu3 %vm146_vm0, %v145_v1  ;;  %687 = vmatpush.xpose.msk.msra.mxu1 %vm146_vm0, %v145_v1  ;;  %v126_v6 = vld [vmem:[%s1273_s0 + $0x60] sm:$0xff]  ;;  %v125_v8 = vld [vmem:[%s1273_s0 + $0x58] sm:$0xff]  ;;  %v124_v10 = vld [vmem:[%s1273_s0 + $0x50] sm:$0xff]  ;;  %p886_p0 = scmp.lt.s32.totalorder %s884_s19, %s880_s13 }
  0x16   : > { %v142_v7 = vld [vmem:[%s1273_s0 + $0xe0] sm:$0xff]  ;;  %v141_v9 = vld [vmem:[%s1273_s0 + $0xd8] sm:$0xff]  ;;  %v140_v11 = vld [vmem:[%s1273_s0 + $0xd0] sm:$0xff]  ;;  %p882_p11 = pnand %p881_p10, %p978_p5 }
  0x17   : > { %v123_v12 = vld [vmem:[%s1273_s0 + $0x48] sm:$0xff]  ;;  %v122_v14 = vld [vmem:[%s1273_s0 + $0x40] sm:$0xff]  ;;  %v121_v16 = vld [vmem:[%s1273_s0 + $0x38] sm:$0xff]  ;;  %p887_p1 = por %p886_p0, %p885_p13 }
  0x18   : > { %728 = vmatpush.xpose.msk.msra.mxu2 %vm146_vm0, %v128_v2  ;;  %656 = vmatpush.xpose.msk.msra.mxu0 %vm146_vm0, %v128_v2  ;;  %v139_v13 = vld [vmem:[%s1273_s0 + $0xc8] sm:$0xff]  ;;  %v138_v15 = vld [vmem:[%s1273_s0 + $0xc0] sm:$0xff]  ;;  %v137_v17 = vld [vmem:[%s1273_s0 + $0xb8] sm:$0xff]  ;;  %p883_p12 = pneg %p882_p11 }
  0x19   : > { %744 = vmatpush.xpose.msk.msra.mxu3 %vm146_vm0, %v144_v3  ;;  %688 = vmatpush.xpose.msk.msra.mxu1 %vm146_vm0, %v144_v3  ;;  %v120_v18 = vld [vmem:[%s1273_s0 + $0x30] sm:$0xff]  ;;  %v119_v20 = vld [vmem:[%s1273_s0 + $0x28] sm:$0xff]  ;;  %v118_v22 = vld [vmem:[%s1273_s0 + $0x20] sm:$0xff] }
  0x1a   : > { %v136_v19 = vld [vmem:[%s1273_s0 + $0xb0] sm:$0xff]  ;;  %v135_v21 = vld [vmem:[%s1273_s0 + $0xa8] sm:$0xff]  ;;  %v134_v23 = vld [vmem:[%s1273_s0 + $0xa0] sm:$0xff]  ;;  %p888_p2 = pnand %p887_p1, %p883_p12 }
  0x1b   : > { %v117_v24 = vld [vmem:[%s1273_s0 + $0x18] sm:$0xff]  ;;  %v116_v26 = vld [vmem:[%s1273_s0 + $0x10] sm:$0xff]  ;;  %v115_v28 = vld [vmem:[%s1273_s0 + $0x8] sm:$0xff] }
  0x1c   : > { %729 = vmatpush.xpose.msk.msra.mxu2 %vm146_vm0, %v127_v4  ;;  %657 = vmatpush.xpose.msk.msra.mxu0 %vm146_vm0, %v127_v4  ;;  %v133_v25 = vld [vmem:[%s1273_s0 + $0x98] sm:$0xff]  ;;  %v132_v27 = vld [vmem:[%s1273_s0 + $0x90] sm:$0xff]  ;;  %v131_v29 = vld [vmem:[%s1273_s0 + $0x88] sm:$0xff] }
  0x1d   : > { %745 = vmatpush.xpose.msk.msra.mxu3 %vm146_vm0, %v143_v5  ;;  %689 = vmatpush.xpose.msk.msra.mxu1 %vm146_vm0, %v143_v5  ;;  %v114_v30 = vld [vmem:[%s1273_s0] sm:$0xff]  ;;  %v107_v34 = vld [vmem:[%s1148_s25 + $0x48] sm:$0xff]  ;;  %v108_v36 = vld [vmem:[%s1148_s25 + $0x50] sm:$0xff] }
  0x1e   : > { %v130_v31 = vld [vmem:[%s1273_s0 + $0x80] sm:$0xff]  ;;  %v99_v35 = vld [vmem:[%s1148_s25 + $0x8] sm:$0xff]  ;;  %v100_v37 = vld [vmem:[%s1148_s25 + $0x10] sm:$0xff] }
  0x1f   : > { %v106_v32 = vld [vmem:[%s1148_s25 + $0x40] sm:$0xff]  ;;  %v109_v38 = vld [vmem:[%s1148_s25 + $0x58] sm:$0xff]  ;;  %v111_v42 = vld [vmem:[%s1148_s25 + $0x68] sm:$0xff] }
  0x20   : > { %730 = vmatpush.xpose.msk.msra.mxu2 %vm146_vm0, %v126_v6  ;;  %658 = vmatpush.xpose.msk.msra.mxu0 %vm146_vm0, %v126_v6  ;;  %v98_v33 = vld [vmem:[%s1148_s25] sm:$0xff]  ;;  %v101_v39 = vld [vmem:[%s1148_s25 + $0x18] sm:$0xff]  ;;  %v103_v43 = vld [vmem:[%s1148_s25 + $0x28] sm:$0xff] }
  0x21   : > { %746 = vmatpush.xpose.msk.msra.mxu3 %vm146_vm0, %v142_v7  ;;  %690 = vmatpush.xpose.msk.msra.mxu1 %vm146_vm0, %v142_v7  ;;  %v110_v40 = vld [vmem:[%s1148_s25 + $0x60] sm:$0xff]  ;;  %v112_v44 = vld [vmem:[%s1148_s25 + $0x70] sm:$0xff]  ;;  %v113_v46 = vld [vmem:[%s1148_s25 + $0x78] sm:$0xff] }
  0x22   : > { %v102_v41 = vld [vmem:[%s1148_s25 + $0x20] sm:$0xff]  ;;  %v104_v45 = vld [vmem:[%s1148_s25 + $0x30] sm:$0xff]  ;;  %v105_v47 = vld [vmem:[%s1148_s25 + $0x38] sm:$0xff] }
  0x24   : > { %731 = vmatpush.xpose.msk.msra.mxu2 %vm146_vm0, %v125_v8  ;;  %659 = vmatpush.xpose.msk.msra.mxu0 %vm146_vm0, %v125_v8 }
  0x25   : > { %747 = vmatpush.xpose.msk.msra.mxu3 %vm146_vm0, %v141_v9  ;;  %691 = vmatpush.xpose.msk.msra.mxu1 %vm146_vm0, %v141_v9 }
  0x28   : > { %732 = vmatpush.xpose.msk.msra.mxu2 %vm146_vm0, %v124_v10  ;;  %660 = vmatpush.xpose.msk.msra.mxu0 %vm146_vm0, %v124_v10 }
  0x29   : > { %748 = vmatpush.xpose.msk.msra.mxu3 %vm146_vm0, %v140_v11  ;;  %692 = vmatpush.xpose.msk.msra.mxu1 %vm146_vm0, %v140_v11 }
  0x2c   : > { %733 = vmatpush.xpose.msk.msra.mxu2 %vm146_vm0, %v123_v12  ;;  %661 = vmatpush.xpose.msk.msra.mxu0 %vm146_vm0, %v123_v12 }
  0x2d   : > { %749 = vmatpush.xpose.msk.msra.mxu3 %vm146_vm0, %v139_v13  ;;  %693 = vmatpush.xpose.msk.msra.mxu1 %vm146_vm0, %v139_v13 }
  0x30   : > { %734 = vmatpush.xpose.msk.msra.mxu2 %vm146_vm0, %v122_v14  ;;  %662 = vmatpush.xpose.msk.msra.mxu0 %vm146_vm0, %v122_v14 }
  0x31   : > { %750 = vmatpush.xpose.msk.msra.mxu3 %vm146_vm0, %v138_v15  ;;  %694 = vmatpush.xpose.msk.msra.mxu1 %vm146_vm0, %v138_v15 }
  0x34   : > { %735 = vmatpush.xpose.msk.msra.mxu2 %vm146_vm0, %v121_v16  ;;  %663 = vmatpush.xpose.msk.msra.mxu0 %vm146_vm0, %v121_v16 }
  0x35   : > { %751 = vmatpush.xpose.msk.msra.mxu3 %vm146_vm0, %v137_v17  ;;  %695 = vmatpush.xpose.msk.msra.mxu1 %vm146_vm0, %v137_v17 }
  0x38   : > { %736 = vmatpush.xpose.msk.msra.mxu2 %vm146_vm0, %v120_v18  ;;  %664 = vmatpush.xpose.msk.msra.mxu0 %vm146_vm0, %v120_v18 }
  0x39   : > { %752 = vmatpush.xpose.msk.msra.mxu3 %vm146_vm0, %v136_v19  ;;  %696 = vmatpush.xpose.msk.msra.mxu1 %vm146_vm0, %v136_v19 }
  0x3c   : > { %737 = vmatpush.xpose.msk.msra.mxu2 %vm146_vm0, %v119_v20  ;;  %665 = vmatpush.xpose.msk.msra.mxu0 %vm146_vm0, %v119_v20 }
  0x3d   : > { %753 = vmatpush.xpose.msk.msra.mxu3 %vm146_vm0, %v135_v21  ;;  %697 = vmatpush.xpose.msk.msra.mxu1 %vm146_vm0, %v135_v21 }
  0x40   : > { %738 = vmatpush.xpose.msk.msra.mxu2 %vm146_vm0, %v118_v22  ;;  %666 = vmatpush.xpose.msk.msra.mxu0 %vm146_vm0, %v118_v22 }
  0x41   : > { %754 = vmatpush.xpose.msk.msra.mxu3 %vm146_vm0, %v134_v23  ;;  %698 = vmatpush.xpose.msk.msra.mxu1 %vm146_vm0, %v134_v23 }
  0x44   : > { %739 = vmatpush.xpose.msk.msra.mxu2 %vm146_vm0, %v117_v24  ;;  %667 = vmatpush.xpose.msk.msra.mxu0 %vm146_vm0, %v117_v24 }
  0x45   : > { %755 = vmatpush.xpose.msk.msra.mxu3 %vm146_vm0, %v133_v25  ;;  %699 = vmatpush.xpose.msk.msra.mxu1 %vm146_vm0, %v133_v25 }
  0x48   : > { %740 = vmatpush.xpose.msk.msra.mxu2 %vm146_vm0, %v116_v26  ;;  %668 = vmatpush.xpose.msk.msra.mxu0 %vm146_vm0, %v116_v26 }
  0x49   : > { %756 = vmatpush.xpose.msk.msra.mxu3 %vm146_vm0, %v132_v27  ;;  %700 = vmatpush.xpose.msk.msra.mxu1 %vm146_vm0, %v132_v27 }
  0x4c   : > { %741 = vmatpush.xpose.msk.msra.mxu2 %vm146_vm0, %v115_v28  ;;  %669 = vmatpush.xpose.msk.msra.mxu0 %vm146_vm0, %v115_v28 }
  0x4d   : > { %757 = vmatpush.xpose.msk.msra.mxu3 %vm146_vm0, %v131_v29  ;;  %701 = vmatpush.xpose.msk.msra.mxu1 %vm146_vm0, %v131_v29 }
  0x50   : > { %742 = vmatpush.xpose.msk.msra.mxu2 %vm146_vm0, %v114_v30  ;;  %670 = vmatpush.xpose.msk.msra.mxu0 %vm146_vm0, %v114_v30 }
  0x51   : > { %758 = vmatpush.xpose.msk.msra.mxu3 %vm146_vm0, %v130_v31  ;;  %702 = vmatpush.xpose.msk.msra.mxu1 %vm146_vm0, %v130_v31 }
  0x53   : > { %679 = vmatmul.msk.f32.vlgmr.msra.gmra.mxu2 %vm146_vm0, %v106_v32  ;;  %671 = vmatmul.msk.f32.vlgmr.msra.gmra.mxu0 %vm146_vm0, %v98_v33 }
  0x54   : > { %711 = vmatmul.msk.f32.vlgmr.msra.gmra.mxu3 %vm146_vm0, %v106_v32  ;;  %703 = vmatmul.msk.f32.vlgmr.msra.gmra.mxu1 %vm146_vm0, %v98_v33 }
  0x5b   : > { %680 = vmatmul.msk.f32.gmra.mxu2 %vm146_vm0, %v107_v34  ;;  %672 = vmatmul.msk.f32.gmra.mxu0 %vm146_vm0, %v99_v35 }
  0x5c   : > { %712 = vmatmul.msk.f32.gmra.mxu3 %vm146_vm0, %v107_v34  ;;  %704 = vmatmul.msk.f32.gmra.mxu1 %vm146_vm0, %v99_v35 }
  0x63   : > { %681 = vmatmul.msk.f32.gmra.mxu2 %vm146_vm0, %v108_v36  ;;  %673 = vmatmul.msk.f32.gmra.mxu0 %vm146_vm0, %v100_v37 }
  0x64   : > { %713 = vmatmul.msk.f32.gmra.mxu3 %vm146_vm0, %v108_v36  ;;  %705 = vmatmul.msk.f32.gmra.mxu1 %vm146_vm0, %v100_v37 }
  0x6b   : > { %682 = vmatmul.msk.f32.gmra.mxu2 %vm146_vm0, %v109_v38  ;;  %674 = vmatmul.msk.f32.gmra.mxu0 %vm146_vm0, %v101_v39 }
  0x6c   : > { %714 = vmatmul.msk.f32.gmra.mxu3 %vm146_vm0, %v109_v38  ;;  %706 = vmatmul.msk.f32.gmra.mxu1 %vm146_vm0, %v101_v39 }
  0x73   : > { %683 = vmatmul.msk.f32.gmra.mxu2 %vm146_vm0, %v110_v40  ;;  %675 = vmatmul.msk.f32.gmra.mxu0 %vm146_vm0, %v102_v41 }
  0x74   : > { %715 = vmatmul.msk.f32.gmra.mxu3 %vm146_vm0, %v110_v40  ;;  %707 = vmatmul.msk.f32.gmra.mxu1 %vm146_vm0, %v102_v41 }
  0x7b   : > { %684 = vmatmul.msk.f32.gmra.mxu2 %vm146_vm0, %v111_v42  ;;  %676 = vmatmul.msk.f32.gmra.mxu0 %vm146_vm0, %v103_v43 }
  0x7c   : > { %716 = vmatmul.msk.f32.gmra.mxu3 %vm146_vm0, %v111_v42  ;;  %708 = vmatmul.msk.f32.gmra.mxu1 %vm146_vm0, %v103_v43 }
  0x83   : > { %685 = vmatmul.msk.f32.gmra.mxu2 %vm146_vm0, %v112_v44  ;;  %677 = vmatmul.msk.f32.gmra.mxu0 %vm146_vm0, %v104_v45 }
  0x84   : > { %717 = vmatmul.msk.f32.gmra.mxu3 %vm146_vm0, %v112_v44  ;;  %709 = vmatmul.msk.f32.gmra.mxu1 %vm146_vm0, %v104_v45 }
  0x8b   : > { %686 = vmatmul.msk.f32.gmra.mxu2 %vm146_vm0, %v113_v46  ;;  %678 = vmatmul.msk.f32.gmra.mxu0 %vm146_vm0, %v105_v47 }
  0x8c   : > { %718 = vmatmul.msk.f32.gmra.mxu3 %vm146_vm0, %v113_v46  ;;  %710 = vmatmul.msk.f32.gmra.mxu1 %vm146_vm0, %v105_v47 }
  0xd0   : > { %v308_v48 = vpop.f32.mrf.mxu0 }
  0xd1   : > { %v373_v49 = vpop.f32.mrf.mxu1  ;;  %v421_v50 = vmul.f32 0.5, %v308_v48 }
  0xd2   : > { %v422_v51 = vmul.f32 0.5, %v373_v49 }
  0xd3   : > { %800 = vtanh.f32 %v421_v50 }
  0xd4   : > { %802 = vtanh.f32 %v422_v51 }
  0xd6   : > { %v332_v52 = vpop.f32.mrf.mxu2 }
  0xd7   : > { %v397_v53 = vpop.f32.mrf.mxu3  ;;  %v437_v54 = vmul.f32 0.5, %v332_v52 }
  0xd8   : > { %v438_v55 = vmul.f32 0.5, %v397_v53  ;;  %v311_v56 = vpop.f32.mrf.mxu0 }
  0xd9   : > { %804 = vtanh.f32 %v437_v54  ;;  %v376_v57 = vpop.f32.mrf.mxu1  ;;  %v801_v58 = vpop.eup %800  ;;  %v423_v59 = vmul.f32 0.5, %v311_v56 }
  0xda   : > { %806 = vtanh.f32 %v438_v55  ;;  %v424_v60 = vmul.f32 0.5, %v376_v57  ;;  %v803_v61 = vpop.eup %802  ;;  %v485_v62 = vmul.f32 0.5, %v801_v58 }
  0xdb   : > { %v486_v63 = vmul.f32 0.5, %v803_v61  ;;  %808 = vtanh.f32 %v423_v59 }
  0xdc   : > { %v517_v0 = vadd.f32 0.5, %v485_v62  ;;  %810 = vtanh.f32 %v424_v60 }
  0xdd   : > { %v518_v1 = vadd.f32 0.5, %v486_v63 }
  0xde   : > { %v335_v2 = vpop.f32.mrf.mxu2  ;;  %549 = vst [vmem:[%s1205_s28] sm:$0xff] %v517_v0 }
  0xdf   : > { %v400_v3 = vpop.f32.mrf.mxu3  ;;  %v805_v4 = vpop.eup %804  ;;  %v439_v5 = vmul.f32 0.5, %v335_v2  ;;  %550 = vst [vmem:[%s1205_s28 + $0x8] sm:$0xff] %v518_v1 }
  0xe0   : > { %v440_v6 = vmul.f32 0.5, %v400_v3  ;;  %v807_v7 = vpop.eup %806  ;;  %v501_v8 = vmul.f32 0.5, %v805_v4  ;;  %v314_v10 = vpop.f32.mrf.mxu0 }
  0xe1   : > { %v502_v9 = vmul.f32 0.5, %v807_v7  ;;  %812 = vtanh.f32 %v439_v5  ;;  %v379_v11 = vpop.f32.mrf.mxu1  ;;  %v809_v12 = vpop.eup %808  ;;  %v425_v14 = vmul.f32 0.5, %v314_v10 }
  0xe2   : > { %v533_v13 = vadd.f32 0.5, %v501_v8  ;;  %814 = vtanh.f32 %v440_v6  ;;  %v426_v15 = vmul.f32 0.5, %v379_v11  ;;  %v811_v16 = vpop.eup %810  ;;  %v487_v18 = vmul.f32 0.5, %v809_v12 }
  0xe3   : > { %v534_v17 = vadd.f32 0.5, %v502_v9  ;;  %v488_v19 = vmul.f32 0.5, %v811_v16  ;;  %816 = vtanh.f32 %v425_v14 }
  0xe4   : > { %565 = vst [vmem:[%s1205_s28 + $0x80] sm:$0xff] %v533_v13  ;;  %v519_v20 = vadd.f32 0.5, %v487_v18  ;;  %818 = vtanh.f32 %v426_v15 }
  0xe5   : > { %566 = vst [vmem:[%s1205_s28 + $0x88] sm:$0xff] %v534_v17  ;;  %v520_v21 = vadd.f32 0.5, %v488_v19 }
  0xe6   : > { %v338_v22 = vpop.f32.mrf.mxu2  ;;  %551 = vst [vmem:[%s1205_s28 + $0x10] sm:$0xff] %v519_v20 }
  0xe7   : > { %v403_v23 = vpop.f32.mrf.mxu3  ;;  %v813_v24 = vpop.eup %812  ;;  %v441_v25 = vmul.f32 0.5, %v338_v22  ;;  %552 = vst [vmem:[%s1205_s28 + $0x18] sm:$0xff] %v520_v21 }
  0xe8   : > { %v442_v26 = vmul.f32 0.5, %v403_v23  ;;  %v815_v27 = vpop.eup %814  ;;  %v503_v28 = vmul.f32 0.5, %v813_v24  ;;  %v317_v30 = vpop.f32.mrf.mxu0 }
  0xe9   : > { %v504_v29 = vmul.f32 0.5, %v815_v27  ;;  %820 = vtanh.f32 %v441_v25  ;;  %v382_v31 = vpop.f32.mrf.mxu1  ;;  %v817_v32 = vpop.eup %816  ;;  %v427_v34 = vmul.f32 0.5, %v317_v30 }
  0xea   : > { %v535_v33 = vadd.f32 0.5, %v503_v28  ;;  %822 = vtanh.f32 %v442_v26  ;;  %v428_v35 = vmul.f32 0.5, %v382_v31  ;;  %v819_v36 = vpop.eup %818  ;;  %v489_v38 = vmul.f32 0.5, %v817_v32 }
  0xeb   : > { %v536_v37 = vadd.f32 0.5, %v504_v29  ;;  %v490_v39 = vmul.f32 0.5, %v819_v36  ;;  %824 = vtanh.f32 %v427_v34 }
  0xec   : > { %567 = vst [vmem:[%s1205_s28 + $0x90] sm:$0xff] %v535_v33  ;;  %v521_v40 = vadd.f32 0.5, %v489_v38  ;;  %826 = vtanh.f32 %v428_v35 }
  0xed   : > { %568 = vst [vmem:[%s1205_s28 + $0x98] sm:$0xff] %v536_v37  ;;  %v522_v41 = vadd.f32 0.5, %v490_v39 }
  0xee   : > { %v341_v42 = vpop.f32.mrf.mxu2  ;;  %553 = vst [vmem:[%s1205_s28 + $0x20] sm:$0xff] %v521_v40 }
  0xef   : > { %v406_v43 = vpop.f32.mrf.mxu3  ;;  %v821_v44 = vpop.eup %820  ;;  %v443_v45 = vmul.f32 0.5, %v341_v42  ;;  %554 = vst [vmem:[%s1205_s28 + $0x28] sm:$0xff] %v522_v41 }
  0xf0   : > { %v444_v46 = vmul.f32 0.5, %v406_v43  ;;  %v823_v47 = vpop.eup %822  ;;  %v505_v48 = vmul.f32 0.5, %v821_v44  ;;  %v320_v50 = vpop.f32.mrf.mxu0 }
  0xf1   : > { %v506_v49 = vmul.f32 0.5, %v823_v47  ;;  %828 = vtanh.f32 %v443_v45  ;;  %v385_v51 = vpop.f32.mrf.mxu1  ;;  %v825_v52 = vpop.eup %824  ;;  %v429_v54 = vmul.f32 0.5, %v320_v50 }
  0xf2   : > { %v537_v53 = vadd.f32 0.5, %v505_v48  ;;  %830 = vtanh.f32 %v444_v46  ;;  %v430_v55 = vmul.f32 0.5, %v385_v51  ;;  %v827_v56 = vpop.eup %826  ;;  %v491_v58 = vmul.f32 0.5, %v825_v52 }
  0xf3   : > { %v538_v57 = vadd.f32 0.5, %v506_v49  ;;  %v492_v59 = vmul.f32 0.5, %v827_v56  ;;  %832 = vtanh.f32 %v429_v54 }
  0xf4   : > { %569 = vst [vmem:[%s1205_s28 + $0xa0] sm:$0xff] %v537_v53  ;;  %v523_v60 = vadd.f32 0.5, %v491_v58  ;;  %834 = vtanh.f32 %v430_v55 }
  0xf5   : > { %570 = vst [vmem:[%s1205_s28 + $0xa8] sm:$0xff] %v538_v57  ;;  %v524_v61 = vadd.f32 0.5, %v492_v59 }
  0xf6   : > { %v344_v62 = vpop.f32.mrf.mxu2  ;;  %555 = vst [vmem:[%s1205_s28 + $0x30] sm:$0xff] %v523_v60 }
  0xf7   : > { %v409_v63 = vpop.f32.mrf.mxu3  ;;  %v829_v0 = vpop.eup %828  ;;  %v445_v1 = vmul.f32 0.5, %v344_v62  ;;  %556 = vst [vmem:[%s1205_s28 + $0x38] sm:$0xff] %v524_v61 }
  0xf8   : > { %v446_v2 = vmul.f32 0.5, %v409_v63  ;;  %v831_v3 = vpop.eup %830  ;;  %v507_v4 = vmul.f32 0.5, %v829_v0  ;;  %v323_v6 = vpop.f32.mrf.mxu0 }
  0xf9   : > { %v508_v5 = vmul.f32 0.5, %v831_v3  ;;  %836 = vtanh.f32 %v445_v1  ;;  %v388_v7 = vpop.f32.mrf.mxu1  ;;  %v833_v8 = vpop.eup %832  ;;  %v431_v10 = vmul.f32 0.5, %v323_v6 }
  0xfa   : > { %v539_v9 = vadd.f32 0.5, %v507_v4  ;;  %838 = vtanh.f32 %v446_v2  ;;  %v432_v11 = vmul.f32 0.5, %v388_v7  ;;  %v835_v12 = vpop.eup %834  ;;  %v493_v14 = vmul.f32 0.5, %v833_v8 }
  0xfb   : > { %v540_v13 = vadd.f32 0.5, %v508_v5  ;;  %v494_v15 = vmul.f32 0.5, %v835_v12  ;;  %840 = vtanh.f32 %v431_v10 }
  0xfc   : > { %571 = vst [vmem:[%s1205_s28 + $0xb0] sm:$0xff] %v539_v9  ;;  %v525_v16 = vadd.f32 0.5, %v493_v14  ;;  %842 = vtanh.f32 %v432_v11 }
  0xfd   : > { %572 = vst [vmem:[%s1205_s28 + $0xb8] sm:$0xff] %v540_v13  ;;  %v526_v17 = vadd.f32 0.5, %v494_v15 }
  0xfe   : > { %v347_v18 = vpop.f32.mrf.mxu2  ;;  %557 = vst [vmem:[%s1205_s28 + $0x40] sm:$0xff] %v525_v16 }
  0xff   : > { %v412_v19 = vpop.f32.mrf.mxu3  ;;  %v837_v20 = vpop.eup %836  ;;  %v447_v21 = vmul.f32 0.5, %v347_v18  ;;  %558 = vst [vmem:[%s1205_s28 + $0x48] sm:$0xff] %v526_v17 }
 0x100   : > { %v448_v22 = vmul.f32 0.5, %v412_v19  ;;  %v839_v23 = vpop.eup %838  ;;  %v509_v24 = vmul.f32 0.5, %v837_v20  ;;  %v326_v26 = vpop.f32.mrf.mxu0 }
 0x101   : > { %v510_v25 = vmul.f32 0.5, %v839_v23  ;;  %844 = vtanh.f32 %v447_v21  ;;  %v391_v27 = vpop.f32.mrf.mxu1  ;;  %v841_v28 = vpop.eup %840  ;;  %v433_v30 = vmul.f32 0.5, %v326_v26 }
 0x102   : > { %v541_v29 = vadd.f32 0.5, %v509_v24  ;;  %846 = vtanh.f32 %v448_v22  ;;  %v434_v31 = vmul.f32 0.5, %v391_v27  ;;  %v843_v32 = vpop.eup %842  ;;  %v495_v34 = vmul.f32 0.5, %v841_v28 }
 0x103   : > { %v542_v33 = vadd.f32 0.5, %v510_v25  ;;  %v496_v35 = vmul.f32 0.5, %v843_v32  ;;  %848 = vtanh.f32 %v433_v30 }
 0x104   : > { %573 = vst [vmem:[%s1205_s28 + $0xc0] sm:$0xff] %v541_v29  ;;  %v527_v36 = vadd.f32 0.5, %v495_v34  ;;  %850 = vtanh.f32 %v434_v31 }
 0x105   : > { %574 = vst [vmem:[%s1205_s28 + $0xc8] sm:$0xff] %v542_v33  ;;  %v528_v37 = vadd.f32 0.5, %v496_v35 }
 0x106   : > { %v350_v38 = vpop.f32.mrf.mxu2  ;;  %559 = vst [vmem:[%s1205_s28 + $0x50] sm:$0xff] %v527_v36 }
 0x107   : > { %v415_v39 = vpop.f32.mrf.mxu3  ;;  %v845_v40 = vpop.eup %844  ;;  %v449_v41 = vmul.f32 0.5, %v350_v38  ;;  %560 = vst [vmem:[%s1205_s28 + $0x58] sm:$0xff] %v528_v37 }
 0x108   : > { %v450_v42 = vmul.f32 0.5, %v415_v39  ;;  %v847_v43 = vpop.eup %846  ;;  %v511_v44 = vmul.f32 0.5, %v845_v40  ;;  %v329_v46 = vpop.f32.mrf.mxu0 }
 0x109   : > { %v512_v45 = vmul.f32 0.5, %v847_v43  ;;  %852 = vtanh.f32 %v449_v41  ;;  %v394_v47 = vpop.f32.mrf.mxu1  ;;  %v849_v48 = vpop.eup %848  ;;  %v435_v50 = vmul.f32 0.5, %v329_v46 }
 0x10a   : > { %v543_v49 = vadd.f32 0.5, %v511_v44  ;;  %854 = vtanh.f32 %v450_v42  ;;  %v436_v51 = vmul.f32 0.5, %v394_v47  ;;  %v851_v52 = vpop.eup %850  ;;  %v497_v54 = vmul.f32 0.5, %v849_v48 }
 0x10b   : > { %v544_v53 = vadd.f32 0.5, %v512_v45  ;;  %v498_v55 = vmul.f32 0.5, %v851_v52  ;;  %856 = vtanh.f32 %v435_v50 }
 0x10c   : > { %575 = vst [vmem:[%s1205_s28 + $0xd0] sm:$0xff] %v543_v49  ;;  %v529_v56 = vadd.f32 0.5, %v497_v54  ;;  %858 = vtanh.f32 %v436_v51 }
 0x10d   : > { %576 = vst [vmem:[%s1205_s28 + $0xd8] sm:$0xff] %v544_v53  ;;  %v530_v57 = vadd.f32 0.5, %v498_v55 }
 0x10e   : > { %v353_v58 = vpop.f32.mrf.mxu2  ;;  %561 = vst [vmem:[%s1205_s28 + $0x60] sm:$0xff] %v529_v56 }
 0x10f   : > { %v418_v59 = vpop.f32.mrf.mxu3  ;;  %v853_v60 = vpop.eup %852  ;;  %v451_v61 = vmul.f32 0.5, %v353_v58  ;;  %562 = vst [vmem:[%s1205_s28 + $0x68] sm:$0xff] %v530_v57 }
 0x110   : > { %v452_v62 = vmul.f32 0.5, %v418_v59  ;;  %v855_v63 = vpop.eup %854  ;;  %v513_v0 = vmul.f32 0.5, %v853_v60 }
 0x111   : > { %v514_v1 = vmul.f32 0.5, %v855_v63  ;;  %860 = vtanh.f32 %v451_v61  ;;  %v857_v2 = vpop.eup %856 }
 0x112   : > { %v545_v3 = vadd.f32 0.5, %v513_v0  ;;  %862 = vtanh.f32 %v452_v62  ;;  %v859_v4 = vpop.eup %858  ;;  %v499_v6 = vmul.f32 0.5, %v857_v2 }
 0x113   : > { %v546_v5 = vadd.f32 0.5, %v514_v1  ;;  %v500_v7 = vmul.f32 0.5, %v859_v4 }
 0x114   : > { %577 = vst [vmem:[%s1205_s28 + $0xe0] sm:$0xff] %v545_v3  ;;  %v531_v8 = vadd.f32 0.5, %v499_v6 }
 0x115   : > { %578 = vst [vmem:[%s1205_s28 + $0xe8] sm:$0xff] %v546_v5  ;;  %v532_v9 = vadd.f32 0.5, %v500_v7 }
 0x116   : > { %563 = vst [vmem:[%s1205_s28 + $0x70] sm:$0xff] %v531_v8 }
 0x117   : > { %v861_v10 = vpop.eup %860  ;;  %564 = vst [vmem:[%s1205_s28 + $0x78] sm:$0xff] %v532_v9 }
 0x118   : > { %v863_v11 = vpop.eup %862  ;;  %v515_v12 = vmul.f32 0.5, %v861_v10 }
 0x119   : > { %v516_v13 = vmul.f32 0.5, %v863_v11 }
 0x11a   : > { %v547_v14 = vadd.f32 0.5, %v515_v12 }
 0x11b   : > { %v548_v15 = vadd.f32 0.5, %v516_v13 }
 0x11c   : > { %579 = vst [vmem:[%s1205_s28 + $0xf0] sm:$0xff] %v547_v14 }
 0x11d   : > { %580 = vst [vmem:[%s1205_s28 + $0xf8] sm:$0xff] %v548_v15 }
 0x11e   : > { %891 = shalt.err (!%p888_p2)
}
 0x11f   : > { %s928_s22 = smov 256   ;;  %s929_s23 = smov 16  }
 0x120   : > { %759 = dma.vmem_to_hbm [thread:$0]  (%p978_p5), %s596_s10, 4096, %s598_s4, %s582_s5, %s928_s22, %s928_s22, %s929_s23  }
 0x121 PF: > { %p765_p3 = scmp.ge.s32.totalorder %s926_s9, 2  ;;  %s612_s24 = sand.u32 1, %s914_s6  }
 0x122   : > { %s613_s25 = scalar_lea.sflag [#allocation3], %s612_s24 }
 0x123   : > { %p762_p4 = pnand %p765_p3, %p982_p6 }
 0x125   : > { %p763_p7 = pneg %p762_p4 }
 0x127   : > { %909 = dma.done.wait (%p763_p7), %s613_s25, 4096  }
 0x128   : > { %911 = vsyncadd (%p763_p7), %s613_s25, 4294963200  ;;  %p11_p8 = scmp.ge.s32.totalorder %s965_s12, 4   ;;  %s1277_s6 = smov %s918_s7 }
 0x129   : > { %s1278_s7 = smov %s922_s8  ;;  %s1279_s8 = smov %s976_s15 }
 0x12a   : > { %s1280_s9 = smov %s965_s12  ;;  %13 = sbr.rel (!%p11_p8) target bundleno = 3 (0x3), region = 57 }
 0x12f   :  { %619 = vsyncpa [#allocation3], 1 }
 0x130   :  { %621 = vsyncpa [#allocation3 + $0x1], 1 }

// kernel: gat_vae_forward_pretrain.2
= control target key start
LH: loop header
LB: loop body
LE: loop exit
PB: predicated region body
PF: predicated region fallthrough
CT: control target
= control target key end

     0   :  { %s3973_s27 = smov 0   ;;  %s3975_s28 = smov 0   ;;  %s5816_s0 = inlined_call_operand.vmem [shape: f32[256,32], index: 0, kind: input, shape index: {}]   ;;  %s5817_s1 = inlined_call_operand.vmem [shape: f32[1,256], index: 1, kind: input, shape index: {}]   ;;  %s5818_s2 = inlined_call_operand.vmem [shape: f32[256,1], index: 2, kind: input, shape index: {}]   ;;  %s5819_s3 = inlined_call_operand.vmem [shape: f32[1,32], index: 3, kind: input, shape index: {}]   ;;  %s5820_s4 = inlined_call_operand.vmem [shape: f32[32,34], index: 4, kind: input, shape index: {}]   ;;  %s5821_s5 = inlined_call_operand.vmem [shape: f32[1,32], index: 5, kind: input, shape index: {}]   ;;  %s5822_s6 = inlined_call_operand.vmem [shape: f32[256,16], index: 6, kind: input, shape index: {}]   ;;  %s5823_s7 = inlined_call_operand.vmem [shape: bf16[256,256], index: 7, kind: input, shape index: {}]   ;;  %s5824_s8 = inlined_call_operand.vmem [shape: f32[256,48], index: 8, kind: output, shape index: {}]  }
   0x1   :  { %s3977_s29 = smov 0   ;;  %s3979_s30 = smov 0  }
   0x2   :  { %s3981_s9 = smov 0  }
   0x3 LB: > { %s27_s10 = sadd.s32 1, %s3913_s29  ;;  %s30_s11 = sadd.s32 1, %s3917_s30  ;;  %s3921_s9 = sphi %s3981_s9, %s18_s9   ;;  %s3917_s30 = sphi %s3979_s30, %s5944_s30   ;;  %s3913_s29 = sphi %s3977_s29, %s5943_s29   ;;  %s3909_s28 = sphi %s3975_s28, %s5942_s28   ;;  %s3905_s27 = sphi %s3973_s27, %s5941_s27  }
   0x4   : > { %p28_p0 = scmp.ge.s32.totalorder %s27_s10, 2  ;;  %p3382_p1 = scmp.ge.s32.totalorder %s3921_s9, 1 }
   0x5   : > { %p278_p2 = scmp.lt.s32.totalorder %s3921_s9, 5 }
   0x6   : > { %s5946_s10 = smov (%p28_p0, %s27_s10), 0  ;;  %s5948_s11 = smov (!%p28_p0, %s30_s11), %s3917_s30 }
   0x7   : > { %p279_p3 = pnand %p3382_p1, %p278_p2  ;;  %p32_p4 = scmp.ge.s32.totalorder %s5948_s11, 2 }
   0x9   : > { %s5950_s11 = smov (%p32_p4, %s5948_s11), 0  ;;  %282 = sbr.rel (%p279_p3) target bundleno = 2092 (0x82c), region = 52 }
   0xe   : > { %s3383_s12 = sshll.u32 %s3905_s27, 4  ;;  %s321_s13 = smul.u32 %s3905_s27, %s3909_s28 }
   0xf   : > { %p315_p5 = scmp.lt.s32.totalorder %s3383_s12, 31  ;;  %s4006_s14 = sshll.u32 %s3905_s27, 7 }
  0x10   : > { %s3386_s15 = sshll.u32 %s321_s13, 4  ;;  %p3389_p7 = scmp.ne.s32.totalorder %s3909_s28, 0 }
  0x11   : > { %s5952_s12 = smov (!%p315_p5, %s3383_s12), 31  ;;  %p323_p6 = scmp.lt.s32.totalorder %s3386_s15, 31 }
  0x12   : > { %s3409_s16 = sshll.u32 %s5952_s12, 3  ;;  %s4103_s26 = scalar_lea.vmem (!%p3389_p7), %s5818_s2, %s4006_s14 }
  0x13   : > { %s4011_s19 = scalar_lea.vmem %s5823_s7, %s3409_s16  ;;  %s5954_s15 = smov (!%p323_p6, %s3386_s15), 31 }
  0x14   : > { %v4014_v0 = vld [vmem:[%s4011_s19] sm:$0xff]  ;;  %v4017_v1 = vld [vmem:[%s4011_s19 + $0x8] sm:$0xff]  ;;  %v4020_v2 = vld [vmem:[%s4011_s19 + $0x10] sm:$0xff]  ;;  %s3387_s20 = sshll.u32 %s5954_s15, 3  ;;  %s4803_s18 = scalar_lea.vmem (!%p3389_p7), [#allocation2], %s4006_s14 }
  0x15   : > { %v4023_v3 = vld [vmem:[%s4011_s19 + $0x18] sm:$0xff]  ;;  %v4026_v4 = vld [vmem:[%s4011_s19 + $0x20] sm:$0xff]  ;;  %v4029_v5 = vld [vmem:[%s4011_s19 + $0x28] sm:$0xff]  ;;  %v5829_v6 = vunpack.c.l.bf16 %v4014_v0  ;;  %v5830_v7 = vunpack.c.h.bf16 %v4014_v0  ;;  %v5827_v8 = vunpack.c.l.bf16 %v4017_v1  ;;  %v5828_v9 = vunpack.c.h.bf16 %v4017_v1  ;;  %s4051_s23 = scalar_lea.vmem %s5824_s8, %s3387_s20 }
  0x16   : > { %5862 = vst [vmem:[#allocation3_spill] sm:$0xff] %v4023_v3  ;;  %v4036_v10 = vld [vmem:[%s4011_s19 + $0x30] sm:$0xff]  ;;  %v4039_v11 = vld [vmem:[%s4011_s19 + $0x38] sm:$0xff]  ;;  %v4042_v12 = vld [vmem:[%s4011_s19 + $0x40] sm:$0xff]  ;;  %v5826_v13 = vunpack.c.l.bf16 %v4020_v2  ;;  %v5825_v14 = vunpack.c.h.bf16 %v4020_v2  ;;  %v5840_v15 = vunpack.c.l.bf16 %v4023_v3  ;;  %v5839_v16 = vunpack.c.h.bf16 %v4023_v3 }
  0x17   : > { %5863 = vst [vmem:[#allocation4_spill] sm:$0xff] %v4036_v10  ;;  %v4054_v17 = vld [vmem:[%s4011_s19 + $0x48] sm:$0xff]  ;;  %v4057_v18 = vld [vmem:[%s4011_s19 + $0x50] sm:$0xff]  ;;  %v4060_v19 = vld [vmem:[%s4011_s19 + $0x58] sm:$0xff]  ;;  %v5844_v20 = vunpack.c.l.bf16 %v4026_v4  ;;  %v5843_v21 = vunpack.c.h.bf16 %v4026_v4  ;;  %v5842_v22 = vunpack.c.l.bf16 %v4029_v5  ;;  %v5841_v23 = vunpack.c.h.bf16 %v4029_v5 }
  0x18   : > { %5864 = vst [vmem:[#allocation5_spill] sm:$0xff] %v4039_v11  ;;  %v4067_v24 = vld [vmem:[%s4011_s19 + $0x60] sm:$0xff]  ;;  %v4070_v25 = vld [vmem:[%s4011_s19 + $0x68] sm:$0xff]  ;;  %v5834_v26 = vunpack.c.l.bf16 %v4036_v10  ;;  %v5833_v27 = vunpack.c.h.bf16 %v4036_v10  ;;  %v5832_v28 = vunpack.c.l.bf16 %v4039_v11  ;;  %v5831_v29 = vunpack.c.h.bf16 %v4039_v11  ;;  %v4077_v30 = vld [vmem:[%s4011_s19 + $0x70] sm:$0xff] }
  0x19   : > { %5865 = vst [vmem:[#allocation6_spill] sm:$0xff] %v4060_v19  ;;  %v4080_v31 = vld [vmem:[%s4011_s19 + $0x78] sm:$0xff]  ;;  %v5845_v32 = vunpack.c.l.bf16 %v4042_v12  ;;  %v5838_v40 = vunpack.c.l.bf16 %v4067_v24  ;;  %v5837_v41 = vunpack.c.h.bf16 %v4067_v24  ;;  %v5836_v42 = vunpack.c.l.bf16 %v4070_v25  ;;  %381 = sbr.rel (%p3389_p7) target bundleno = 945 (0x3b1), region = 56 }
  0x1a   : > { %5866 = vst [vmem:[#allocation7_spill] sm:$0xff] %v4067_v24  ;;  %v5835_v43 = vunpack.c.h.bf16 %v4070_v25 }
  0x1b   : > { %5867 = vst [vmem:[#allocation8_spill] sm:$0xff] %v4070_v25 }
  0x1c   : > { %5868 = vst [vmem:[#allocation9_spill] sm:$0xff] %v4077_v30 }
  0x1d   : > { %5869 = vst [vmem:[#allocation10_spill] sm:$0xff] %v4080_v31 }
  0x1e   : > { %v3923_v48 = vmov 0   ;;  %v385_v49 = vld [vmem:[%s4103_s26 + $0x10] sm:$0xff]  ;;  %v383_v50 = vld [vmem:[%s4103_s26] sm:$0xff]  ;;  %v384_v51 = vld [vmem:[%s4103_s26 + $0x8] sm:$0xff] }
  0x1f   : > { %3524 = vset.pattern.permute.xlu1 %v3923_v48  ;;  %3523 = vset.pattern.permute.xlu0 %v3923_v48  ;;  %v386_v52 = vld [vmem:[%s4103_s26 + $0x18] sm:$0xff]  ;;  %v387_v53 = vld [vmem:[%s4103_s26 + $0x20] sm:$0xff]  ;;  %v389_v54 = vld [vmem:[%s4103_s26 + $0x30] sm:$0xff] }
  0x20   : > { %445 = vperm.xlu1 %3524, %v385_v49   ;;  %435 = vperm.xlu0 %3523, %v383_v50   ;;  %v388_v55 = vld [vmem:[%s4103_s26 + $0x28] sm:$0xff]  ;;  %v390_v56 = vld [vmem:[%s4103_s26 + $0x38] sm:$0xff]  ;;  %v395_v57 = vld [vmem:[%s4103_s26 + $0x60] sm:$0xff] }
  0x21   : > { %3525 = vset.pattern.permute.xlu2 %v3923_v48  ;;  %v396_v58 = vld [vmem:[%s4103_s26 + $0x68] sm:$0xff]  ;;  %v391_v60 = vld [vmem:[%s4103_s26 + $0x40] sm:$0xff] }
  0x22   : > { %455 = vperm.xlu2 %3525, %v387_v53   ;;  %v392_v59 = vld [vmem:[%s4103_s26 + $0x48] sm:$0xff]  ;;  %v399_v61 = vld [vmem:[%s5817_s1] sm:$0x3] }
  0x23   : > { %v4120_v62 = vperm.slane %v399_v61, 0  ;;  %v4122_v63 = vperm.slane %v399_v61, 1  ;;  %v400_v10 = vld [vmem:[%s5816_s0] sm:$0xff] }
  0x28   : > { %440 = vperm.xlu0 %3523, %v384_v51   ;;  %450 = vperm.xlu1 %3524, %v386_v52  }
  0x2a   : > { %460 = vperm.xlu2 %3525, %v388_v55  }
  0x30   : > { %465 = vperm.xlu0 %3523, %v389_v54  }
  0x32   : > { %495 = vperm.xlu2 %3525, %v395_v57  }
  0x38   : > { %470 = vperm.xlu0 %3523, %v390_v56  }
  0x3a   : > { %480 = vperm.xlu2 %3525, %v392_v59  }
  0x40   : > { %500 = vperm.xlu0 %3523, %v396_v58  }
  0x48   : > { %475 = vperm.xlu0 %3523, %v391_v60  }
  0x92   : > { %v446_v48 = vpop.permute.xlu1 %445  ;;  %v436_v49 = vpop.permute.xlu0 %435 }
  0x93   : > { %v522_v50 = vadd.f32 %v4120_v62, %v446_v48  ;;  %v523_v51 = vadd.f32 %v4122_v63, %v446_v48  ;;  %v518_v52 = vadd.f32 %v4120_v62, %v436_v49  ;;  %v519_v53 = vadd.f32 %v4122_v63, %v436_v49 }
  0x95   : > { %v554_v54 = vmul.f32 0.2, %v522_v50  ;;  %v555_v55 = vmul.f32 0.2, %v523_v51  ;;  %v550_v56 = vmul.f32 0.2, %v518_v52 }
  0x96   : > { %v551_v57 = vmul.f32 0.2, %v519_v53 }
  0x97   : > { %v586_v58 = vmax.f32 %v522_v50, %v554_v54  ;;  %v587_v59 = vmax.f32 %v523_v51, %v555_v55  ;;  %v582_v60 = vmax.f32 %v518_v52, %v550_v56 }
  0x98   : > { %v583_v39 = vmax.f32 %v519_v53, %v551_v57 }
  0x99   : > { %v4130_v61 = vadd.f32 %v586_v58, %v5826_v13  ;;  %v4134_v38 = vadd.f32 %v587_v59, %v5825_v14  ;;  %v4138_v48 = vadd.f32 %v582_v60, %v5829_v6  ;;  %v397_v14 = vld [vmem:[%s4103_s26 + $0x70] sm:$0xff]  ;;  %v394_v13 = vld [vmem:[%s4103_s26 + $0x58] sm:$0xff] }
  0x9a   : > { %v441_v49 = vpop.permute.xlu0 %440  ;;  %v4142_v50 = vadd.f32 %v583_v39, %v5830_v7 }
  0x9b   : > { %v520_v51 = vadd.f32 %v4120_v62, %v441_v49  ;;  %v521_v52 = vadd.f32 %v4122_v63, %v441_v49  ;;  %v652_v53 = vmax.f32 %v4130_v61, %v4134_v38  ;;  %v393_v49 = vld [vmem:[%s4103_s26 + $0x50] sm:$0xff] }
  0x9c   : > { %v646_v54 = vmax.f32 %v4138_v48, %v4142_v50 }
  0x9d   : > { %v552_v55 = vmul.f32 0.2, %v520_v51  ;;  %v553_v56 = vmul.f32 0.2, %v521_v52  ;;  %653 = vmax.xlane.f32.xlu0 %v652_v53  ;;  %v451_v53 = vpop.permute.xlu1 %450 }
  0x9e   : > { %647 = vmax.xlane.f32.xlu1 %v646_v54  ;;  %v524_v54 = vadd.f32 %v4120_v62, %v451_v53 }
  0x9f   : > { %v584_v57 = vmax.f32 %v520_v51, %v552_v55  ;;  %v585_v39 = vmax.f32 %v521_v52, %v553_v56  ;;  %v398_v51 = vld [vmem:[%s4103_s26 + $0x78] sm:$0xff]  ;;  %v456_v52 = vpop.permute.xlu2 %455  ;;  %v525_v56 = vadd.f32 %v4122_v63, %v451_v53 }
  0xa1   : > { %v4152_v58 = vadd.f32 %v584_v57, %v5827_v8  ;;  %v4156_v59 = vadd.f32 %v585_v39, %v5828_v9  ;;  %v527_v8 = vadd.f32 %v4122_v63, %v456_v52 }
  0xa3   : > { %v649_v60 = vmax.f32 %v4152_v58, %v4156_v59  ;;  %v559_v36 = vmul.f32 0.2, %v527_v8 }
  0xa5   : > { %650 = vmax.xlane.f32.xlu2 %v649_v60  ;;  %v556_v60 = vmul.f32 0.2, %v524_v54  ;;  %v591_v44 = vmax.f32 %v527_v8, %v559_v36 }
  0xa7   : > { %v461_v55 = vpop.permute.xlu2 %460  ;;  %v588_v53 = vmax.f32 %v524_v54, %v556_v60  ;;  %v4194_v36 = vadd.f32 %v591_v44, %v5843_v21  ;;  %v5871_v21 = vunpack.c.l.bf16 %v4077_v30 }
  0xa8   : > { %v528_v57 = vadd.f32 %v4120_v62, %v461_v55  ;;  %v529_v39 = vadd.f32 %v4122_v63, %v461_v55 }
  0xaa   : > { %v560_v9 = vmul.f32 0.2, %v528_v57 }
  0xac   : > { %v592_v46 = vmax.f32 %v528_v57, %v560_v9 }
  0xb1   : > { %485 = vperm.xlu0 %3523, %v393_v49   ;;  %v526_v49 = vadd.f32 %v4120_v62, %v456_v52  ;;  %v4174_v52 = vadd.f32 %v588_v53, %v5840_v15 }
  0xb3   : > { %v558_v37 = vmul.f32 0.2, %v526_v49 }
  0xb5   : > { %v590_v45 = vmax.f32 %v526_v49, %v558_v37  ;;  %v496_v37 = vpop.permute.xlu2 %495 }
  0xb7   : > { %505 = vperm.xlu1 %3524, %v397_v14   ;;  %v466_v14 = vpop.permute.xlu0 %465  ;;  %v4190_v8 = vadd.f32 %v590_v45, %v5844_v20  ;;  %v5872_v20 = vunpack.c.h.bf16 %v4077_v30 }
  0xb8   : > { %v530_v6 = vadd.f32 %v4120_v62, %v466_v14  ;;  %v531_v7 = vadd.f32 %v4122_v63, %v466_v14  ;;  %v4182_v14 = vadd.f32 %v592_v46, %v5842_v22  ;;  %v543_v46 = vadd.f32 %v4122_v63, %v496_v37 }
  0xb9   : > { %490 = vperm.xlu0 %3523, %v394_v13   ;;  %v557_v13 = vmul.f32 0.2, %v525_v56 }
  0xba   : > { %v562_v55 = vmul.f32 0.2, %v530_v6  ;;  %v563_v34 = vmul.f32 0.2, %v531_v7  ;;  %v575_v45 = vmul.f32 0.2, %v543_v46 }
  0xbb   : > { %v589_v47 = vmax.f32 %v525_v56, %v557_v13 }
  0xbc   : > { %v594_v54 = vmax.f32 %v530_v6, %v562_v55  ;;  %v595_v56 = vmax.f32 %v531_v7, %v563_v34  ;;  %v658_v7 = vmax.f32 %v4190_v8, %v4194_v36 }
  0xbd   : > { %510 = vperm.xlu2 %3525, %v398_v51   ;;  %v561_v51 = vmul.f32 0.2, %v529_v39  ;;  %v4178_v33 = vadd.f32 %v589_v47, %v5839_v16  ;;  %v542_v47 = vadd.f32 %v4120_v62, %v496_v37 }
  0xbe   : > { %v4206_v44 = vadd.f32 %v594_v54, %v5834_v26 }
  0xbf   : > { %v593_v35 = vmax.f32 %v529_v39, %v561_v51  ;;  %v655_v57 = vmax.f32 %v4174_v52, %v4178_v33  ;;  %v471_v34 = vpop.permute.xlu0 %470  ;;  %v4210_v39 = vadd.f32 %v595_v56, %v5833_v27  ;;  %v607_v51 = vmax.f32 %v543_v46, %v575_v45 }
  0xc0   : > { %v532_v60 = vadd.f32 %v4120_v62, %v471_v34  ;;  %v533_v49 = vadd.f32 %v4122_v63, %v471_v34 }
  0xc1   : > { %v4186_v9 = vadd.f32 %v593_v35, %v5841_v23  ;;  %v574_v35 = vmul.f32 0.2, %v542_v47  ;;  %v664_v53 = vmax.f32 %v4206_v44, %v4210_v39  ;;  %v4222_v56 = vadd.f32 %v607_v51, %v5837_v41 }
  0xc2   : > { %v564_v55 = vmul.f32 0.2, %v532_v60  ;;  %v565_v37 = vmul.f32 0.2, %v533_v49 }
  0xc3   : > { %v661_v6 = vmax.f32 %v4182_v14, %v4186_v9  ;;  %v606_v13 = vmax.f32 %v542_v47, %v574_v35 }
  0xc5   : > { %v4218_v54 = vadd.f32 %v606_v13, %v5838_v40 }
  0xc7   : > { %v682_v47 = vmax.f32 %v4218_v54, %v4222_v56  ;;  %v501_v35 = vpop.permute.xlu0 %500 }
  0xcf   : > { %v476_v45 = vpop.permute.xlu0 %475 }
  0xe1   : > { %656 = vmax.xlane.f32.xlu1 %v655_v57  ;;  %v596_v57 = vmax.f32 %v532_v60, %v564_v55  ;;  %v481_v60 = vpop.permute.xlu2 %480 }
  0xe3   : > { %662 = vmax.xlane.f32.xlu0 %v661_v6  ;;  %v597_v6 = vmax.f32 %v533_v49, %v565_v37  ;;  %v4228_v46 = vadd.f32 %v596_v57, %v5832_v28  ;;  %v545_v28 = vadd.f32 %v4122_v63, %v501_v35 }
  0xe6   : > { %659 = vmax.xlane.f32.xlu2 %v658_v7  ;;  %v4232_v7 = vadd.f32 %v597_v6, %v5831_v29 }
  0xe8   : > { %v667_v34 = vmax.f32 %v4228_v46, %v4232_v7 }
  0xe9   : > { %665 = vmax.xlane.f32.xlu1 %v664_v53 }
  0xf1   : > { %683 = vmax.xlane.f32.xlu1 %v682_v47 }
  0xf9   : > { %668 = vmax.xlane.f32.xlu1 %v667_v34  ;;  %v544_v34 = vadd.f32 %v4120_v62, %v501_v35  ;;  %v535_v35 = vadd.f32 %v4122_v63, %v476_v45 }
 0x110   : > { %v654_v49 = vpop.xlane.xlu0 %653 }
 0x111   : > { %v648_v13 = vpop.xlane.xlu1 %647  ;;  %v698_v51 = vsub.f32 %v4130_v61, %v654_v49  ;;  %v699_v53 = vsub.f32 %v4134_v38, %v654_v49  ;;  %v577_v49 = vmul.f32 0.2, %v545_v28 }
 0x112   : > { %v694_v55 = vsub.f32 %v4138_v48, %v648_v13  ;;  %v695_v37 = vsub.f32 %v4142_v50, %v648_v13  ;;  %v576_v48 = vmul.f32 0.2, %v544_v34 }
 0x113   : > { %v734_v57 = vmul.f32 1.442695, %v698_v51  ;;  %v736_v29 = vmul.f32 1.442695, %v699_v53 }
 0x114   : > { %v726_v6 = vmul.f32 1.442695, %v694_v55  ;;  %v728_v47 = vmul.f32 1.442695, %v695_v37  ;;  %v534_v55 = vadd.f32 %v4120_v62, %v476_v45 }
 0x115   : > { %3527 = vpow2.f32 %v734_v57  ;;  %v609_v57 = vmax.f32 %v545_v28, %v577_v49  ;;  %v536_v49 = vadd.f32 %v4120_v62, %v481_v60 }
 0x116   : > { %3529 = vpow2.f32 %v726_v6  ;;  %v566_v6 = vmul.f32 0.2, %v534_v55 }
 0x117   : > { %3531 = vpow2.f32 %v728_v47  ;;  %v567_v47 = vmul.f32 0.2, %v535_v35 }
 0x118   : > { %3533 = vpow2.f32 %v736_v29  ;;  %v651_v27 = vpop.xlane.xlu2 %650 }
 0x119   : > { %v696_v61 = vsub.f32 %v4152_v58, %v651_v27  ;;  %v697_v38 = vsub.f32 %v4156_v59, %v651_v27  ;;  %v608_v58 = vmax.f32 %v544_v34, %v576_v48  ;;  %v599_v48 = vmax.f32 %v535_v35, %v567_v47 }
 0x11b   : > { %v4244_v50 = vpop.eup %3527  ;;  %v730_v13 = vmul.f32 1.442695, %v696_v61  ;;  %v732_v51 = vmul.f32 1.442695, %v697_v38  ;;  %v4260_v45 = vadd.f32 %v608_v58, %v5836_v42  ;;  %v4264_v61 = vadd.f32 %v609_v57, %v5835_v43 }
 0x11c   : > { %v4246_v53 = vpop.eup %3529  ;;  %v598_v38 = vmax.f32 %v534_v55, %v566_v6  ;;  %v5870_v55 = vunpack.c.h.bf16 %v4042_v12 }
 0x11d   : > { %v4250_v37 = vpop.eup %3531  ;;  %3535 = vpow2.f32 %v730_v13  ;;  %v537_v13 = vadd.f32 %v4122_v63, %v481_v60  ;;  %v685_v58 = vmax.f32 %v4260_v45, %v4264_v61 }
 0x11e   : > { %v4252_v29 = vpop.eup %3533  ;;  %3537 = vpow2.f32 %v732_v51  ;;  %v790_v27 = vadd.f32 %v4250_v37, %v4246_v53  ;;  %v4278_v57 = vadd.f32 %v598_v38, %v5845_v32  ;;  %v4282_v35 = vadd.f32 %v599_v48, %v5870_v55 }
 0x11f   : > { %v796_v59 = vadd.f32 %v4252_v29, %v4244_v50  ;;  %v569_v6 = vmul.f32 0.2, %v537_v13 }
 0x120   : > { %791 = vadd.xlane.f32.xlu2 %v790_v27  ;;  %v511_v27 = vpop.permute.xlu2 %510  ;;  %v670_v38 = vmax.f32 %v4278_v57, %v4282_v35 }
 0x121   : > { %797 = vadd.xlane.f32.xlu0 %v796_v59  ;;  %v568_v59 = vmul.f32 0.2, %v536_v49  ;;  %v548_v60 = vadd.f32 %v4120_v62, %v511_v27  ;;  %v549_v47 = vadd.f32 %v4122_v63, %v511_v27  ;;  %v601_v48 = vmax.f32 %v537_v13, %v569_v6 }
 0x123   : > { %v4266_v28 = vpop.eup %3535  ;;  %v600_v40 = vmax.f32 %v536_v49, %v568_v59  ;;  %v580_v55 = vmul.f32 0.2, %v548_v60  ;;  %v581_v16 = vmul.f32 0.2, %v549_v47  ;;  %v5873_v49 = vunpack.c.l.bf16 %v4054_v17 }
 0x124   : > { %v4268_v34 = vpop.eup %3537  ;;  %v5874_v59 = vunpack.c.h.bf16 %v4054_v17 }
 0x125   : > { %v793_v51 = vadd.f32 %v4268_v34, %v4266_v28  ;;  %v612_v11 = vmax.f32 %v548_v60, %v580_v55  ;;  %v4302_v13 = vadd.f32 %v600_v40, %v5873_v49  ;;  %v5878_v55 = vunpack.c.h.bf16 %v4057_v18 }
 0x126   : > { %v4306_v6 = vadd.f32 %v601_v48, %v5874_v59 }
 0x127   : > { %794 = vadd.xlane.f32.xlu1 %v793_v51 }
 0x128   : > { %686 = vmax.xlane.f32.xlu2 %v685_v58  ;;  %v486_v58 = vpop.permute.xlu0 %485 }
 0x129   : > { %v506_v26 = vpop.permute.xlu1 %505  ;;  %v538_v15 = vadd.f32 %v4120_v62, %v486_v58  ;;  %v539_v23 = vadd.f32 %v4122_v63, %v486_v58  ;;  %v5876_v58 = vunpack.c.h.bf16 %v4080_v31 }
 0x12a   : > { %v546_v43 = vadd.f32 %v4120_v62, %v506_v26  ;;  %v547_v51 = vadd.f32 %v4122_v63, %v506_v26 }
 0x12c   : > { %v578_v42 = vmul.f32 0.2, %v546_v43  ;;  %v579_v41 = vmul.f32 0.2, %v547_v51 }
 0x12e   : > { %v610_v27 = vmax.f32 %v546_v43, %v578_v42  ;;  %v611_v22 = vmax.f32 %v547_v51, %v579_v41  ;;  %v613_v42 = vmax.f32 %v549_v47, %v581_v16  ;;  %v570_v41 = vmul.f32 0.2, %v538_v15 }
 0x12f   : > { %v571_v43 = vmul.f32 0.2, %v539_v23  ;;  %v5875_v51 = vunpack.c.l.bf16 %v4080_v31  ;;  %v5877_v47 = vunpack.c.l.bf16 %v4057_v18  ;;  %v401_v31 = vld [vmem:[%s5816_s0 + $0x8] sm:$0xff] }
 0x130   : > { %671 = vmax.xlane.f32.xlu2 %v670_v38  ;;  %v4294_v26 = vadd.f32 %v610_v27, %v5871_v21  ;;  %v4298_v32 = vadd.f32 %v611_v22, %v5872_v20  ;;  %v673_v20 = vmax.f32 %v4302_v13, %v4306_v6  ;;  %v602_v22 = vmax.f32 %v538_v15, %v570_v41 }
 0x131   : > { %v603_v60 = vmax.f32 %v539_v23, %v571_v43  ;;  %v4314_v40 = vadd.f32 %v612_v11, %v5875_v51  ;;  %v4318_v38 = vadd.f32 %v613_v42, %v5876_v58  ;;  %v491_v23 = vpop.permute.xlu0 %490 }
 0x132   : > { %v688_v21 = vmax.f32 %v4294_v26, %v4298_v32  ;;  %v4324_v48 = vadd.f32 %v602_v22, %v5877_v47  ;;  %v4335_v42 = vadd.f32 %v4120_v62, %v491_v23 }
 0x133   : > { %v691_v16 = vmax.f32 %v4314_v40, %v4318_v38  ;;  %v4328_v15 = vadd.f32 %v603_v60, %v5878_v55  ;;  %v4340_v60 = vadd.f32 %v4122_v63, %v491_v23  ;;  %v4351_v63 = vld [vmem:[%s5816_s0 + $0xf8] sm:$0xff]  ;;  %v4360_v55 = vld [vmem:[%s5816_s0 + $0xf0] sm:$0xff] }
 0x134   : > { %689 = vmax.xlane.f32.xlu1 %v688_v21  ;;  %1178 = vmatpush.msra.mxu1 %v4351_v63 }
 0x135   : > { %v676_v11 = vmax.f32 %v4324_v48, %v4328_v15 }
 0x136   : > { %1179 = vmatpush.msra.mxu1 %v4360_v55 }
 0x138   : > { %674 = vmax.xlane.f32.xlu2 %v673_v20 }
 0x13c   : > { %692 = vmax.xlane.f32.xlu1 %v691_v16 }
 0x140   : > { %677 = vmax.xlane.f32.xlu2 %v676_v11  ;;  %v573_v11 = vmul.f32 0.2, %v4340_v60 }
 0x154   : > { %v657_v27 = vpop.xlane.xlu1 %656 }
 0x155   : > { %v700_v49 = vsub.f32 %v4174_v52, %v657_v27  ;;  %v701_v59 = vsub.f32 %v4178_v33, %v657_v27  ;;  %v572_v52 = vmul.f32 0.2, %v4335_v42 }
 0x156   : > { %v663_v41 = vpop.xlane.xlu0 %662 }
 0x157   : > { %v738_v43 = vmul.f32 1.442695, %v700_v49  ;;  %v740_v21 = vmul.f32 1.442695, %v701_v59  ;;  %v704_v20 = vsub.f32 %v4182_v14, %v663_v41  ;;  %v705_v22 = vsub.f32 %v4186_v9, %v663_v41  ;;  %v415_v14 = vld [vmem:[%s5816_s0 + $0x78] sm:$0xff]  ;;  %v414_v9 = vld [vmem:[%s5816_s0 + $0x70] sm:$0xff] }
 0x158   : > { %1113 = vmatpush.msra.mxu0 %v415_v14  ;;  %v413_v49 = vld [vmem:[%s5816_s0 + $0x68] sm:$0xff]  ;;  %3410 = vmatpush.msra.mxu3 %v415_v14  ;;  %v4412_v14 = vld [vmem:[%s5816_s0 + $0xd0] sm:$0xff] }
 0x159   : > { %3539 = vpow2.f32 %v738_v43  ;;  %v746_v51 = vmul.f32 1.442695, %v704_v20  ;;  %v748_v58 = vmul.f32 1.442695, %v705_v22  ;;  %v660_v16 = vpop.xlane.xlu2 %659  ;;  %v4371_v59 = vld [vmem:[%s5816_s0 + $0xe8] sm:$0xff] }
 0x15a   : > { %3541 = vpow2.f32 %v740_v21  ;;  %v702_v33 = vsub.f32 %v4190_v8, %v660_v16  ;;  %v703_v62 = vsub.f32 %v4194_v36, %v660_v16  ;;  %1114 = vmatpush.msra.mxu0 %v414_v9  ;;  %3411 = vmatpush.msra.mxu3 %v414_v9  ;;  %v604_v21 = vmax.f32 %v4335_v42, %v572_v52  ;;  %v4399_v42 = vld [vmem:[%s5816_s0 + $0xd8] sm:$0xff]  ;;  %v410_v52 = vld [vmem:[%s5816_s0 + $0x50] sm:$0xff] }
 0x15b   : > { %3543 = vpow2.f32 %v746_v51  ;;  %1180 = vmatpush.msra.mxu1 %v4371_v59  ;;  %v605_v51 = vmax.f32 %v4340_v60, %v573_v11 }
 0x15c   : > { %3545 = vpow2.f32 %v748_v58  ;;  %v742_v8 = vmul.f32 1.442695, %v702_v33  ;;  %v744_v47 = vmul.f32 1.442695, %v703_v62  ;;  %v666_v36 = vpop.xlane.xlu1 %665  ;;  %1115 = vmatpush.msra.mxu0 %v413_v49  ;;  %v411_v33 = vld [vmem:[%s5816_s0 + $0x58] sm:$0xff]  ;;  %3412 = vmatpush.msra.mxu3 %v413_v49  ;;  %v5880_v49 = vunpack.c.h.bf16 %v4060_v19 }
 0x15d   : > { %v706_v23 = vsub.f32 %v4206_v44, %v666_v36  ;;  %v707_v27 = vsub.f32 %v4210_v39, %v666_v36  ;;  %v412_v44 = vld [vmem:[%s5816_s0 + $0x60] sm:$0xff] }
 0x15e   : > { %3547 = vpow2.f32 %v742_v8  ;;  %v4382_v39 = vld [vmem:[%s5816_s0 + $0xe0] sm:$0xff]  ;;  %1116 = vmatpush.msra.mxu0 %v412_v44  ;;  %3413 = vmatpush.msra.mxu3 %v412_v44  ;;  %v4427_v44 = vadd.f32 %v605_v51, %v5880_v49 }
 0x15f   : > { %v4374_v41 = vpop.eup %3539  ;;  %3549 = vpow2.f32 %v744_v47  ;;  %v750_v20 = vmul.f32 1.442695, %v706_v23  ;;  %v752_v58 = vmul.f32 1.442695, %v707_v27  ;;  %1181 = vmatpush.msra.mxu1 %v4382_v39  ;;  %v5879_v47 = vunpack.c.l.bf16 %v4060_v19 }
 0x160   : > { %v4384_v43 = vpop.eup %3541  ;;  %1117 = vmatpush.msra.mxu0 %v411_v33  ;;  %3414 = vmatpush.msra.mxu3 %v411_v33 }
 0x161   : > { %v4388_v22 = vpop.eup %3543  ;;  %v799_v16 = vadd.f32 %v4384_v43, %v4374_v41  ;;  %3551 = vpow2.f32 %v750_v20  ;;  %v4418_v36 = vadd.f32 %v604_v21, %v5879_v47  ;;  %1182 = vmatpush.msra.mxu1 %v4399_v42 }
 0x162   : > { %v4401_v62 = vpop.eup %3545  ;;  %3553 = vpow2.f32 %v752_v58  ;;  %1118 = vmatpush.msra.mxu0 %v410_v52  ;;  %3415 = vmatpush.msra.mxu3 %v410_v52 }
 0x163   : > { %800 = vadd.xlane.f32.xlu0 %v799_v16  ;;  %v805_v60 = vadd.f32 %v4401_v62, %v4388_v22  ;;  %1183 = vmatpush.msra.mxu1 %v4412_v14 }
 0x164   : > { %v4414_v9 = vpop.eup %3547  ;;  %v684_v8 = vpop.xlane.xlu1 %683 }
 0x165   : > { %v4421_v11 = vpop.eup %3549  ;;  %v718_v23 = vsub.f32 %v4218_v54, %v684_v8  ;;  %v719_v27 = vsub.f32 %v4222_v56, %v684_v8  ;;  %806 = vadd.xlane.f32.xlu2 %v805_v60  ;;  %v679_v54 = vmax.f32 %v4418_v36, %v4427_v44 }
 0x166   : > { %v802_v21 = vadd.f32 %v4421_v11, %v4414_v9 }
 0x167   : > { %v774_v20 = vmul.f32 1.442695, %v718_v23  ;;  %v776_v16 = vmul.f32 1.442695, %v719_v27  ;;  %v4434_v56 = vpop.eup %3551 }
 0x168   : > { %803 = vadd.xlane.f32.xlu1 %v802_v21  ;;  %v4436_v51 = vpop.eup %3553  ;;  %v408_v21 = vld [vmem:[%s5816_s0 + $0x40] sm:$0xff] }
 0x169   : > { %3555 = vpow2.f32 %v774_v20  ;;  %v808_v8 = vadd.f32 %v4436_v51, %v4434_v56  ;;  %v424_v20 = vld [vmem:[%s5816_s0 + $0xc0] sm:$0xff] }
 0x16a   : > { %3557 = vpow2.f32 %v776_v16 }
 0x16b   : > { %680 = vmax.xlane.f32.xlu0 %v679_v54 }
 0x16c   : > { %v669_v58 = vpop.xlane.xlu1 %668 }
 0x16d   : > { %v708_v33 = vsub.f32 %v4228_v46, %v669_v58  ;;  %v709_v60 = vsub.f32 %v4232_v7, %v669_v58  ;;  %v409_v46 = vld [vmem:[%s5816_s0 + $0x48] sm:$0xff]  ;;  %v407_v58 = vld [vmem:[%s5816_s0 + $0x38] sm:$0xff] }
 0x16e   : > { %v425_v7 = vld [vmem:[%s5816_s0 + $0xc8] sm:$0xff]  ;;  %1119 = vmatpush.msra.mxu0 %v409_v46  ;;  %3416 = vmatpush.msra.mxu3 %v409_v46  ;;  %v404_v46 = vld [vmem:[%s5816_s0 + $0x20] sm:$0xff] }
 0x16f   : > { %v4442_v52 = vpop.eup %3555  ;;  %v754_v47 = vmul.f32 1.442695, %v708_v33  ;;  %v756_v23 = vmul.f32 1.442695, %v709_v60  ;;  %1184 = vmatpush.msra.mxu1 %v425_v7  ;;  %v423_v33 = vld [vmem:[%s5816_s0 + $0xb8] sm:$0xff] }
 0x170   : > { %v4444_v27 = vpop.eup %3557  ;;  %809 = vadd.xlane.f32.xlu1 %v808_v8  ;;  %1120 = vmatpush.msra.mxu0 %v408_v21  ;;  %v406_v8 = vld [vmem:[%s5816_s0 + $0x30] sm:$0xff] }
 0x171   : > { %3559 = vpow2.f32 %v754_v47  ;;  %v826_v49 = vadd.f32 %v4444_v27, %v4442_v52  ;;  %1185 = vmatpush.msra.mxu1 %v424_v20  ;;  %3417 = vmatpush.msra.mxu3 %v408_v21  ;;  %v422_v47 = vld [vmem:[%s5816_s0 + $0xb0] sm:$0xff]  ;;  %v420_v21 = vld [vmem:[%s5816_s0 + $0xa0] sm:$0xff] }
 0x172   : > { %3561 = vpow2.f32 %v756_v23  ;;  %1121 = vmatpush.msra.mxu0 %v407_v58  ;;  %v405_v23 = vld [vmem:[%s5816_s0 + $0x28] sm:$0xff] }
 0x173   : > { %827 = vadd.xlane.f32.xlu0 %v826_v49  ;;  %1186 = vmatpush.msra.mxu1 %v423_v33  ;;  %v421_v49 = vld [vmem:[%s5816_s0 + $0xa8] sm:$0xff] }
 0x174   : > { %3418 = vmatpush.msra.mxu3 %v407_v58  ;;  %1122 = vmatpush.msra.mxu0 %v406_v8  ;;  %v403_v58 = vld [vmem:[%s5816_s0 + $0x18] sm:$0xff] }
 0x175   : > { %1187 = vmatpush.msra.mxu1 %v422_v47 }
 0x176   : > { %3419 = vmatpush.msra.mxu3 %v406_v8  ;;  %1123 = vmatpush.msra.mxu0 %v405_v23  ;;  %v402_v8 = vld [vmem:[%s5816_s0 + $0x10] sm:$0xff] }
 0x177   : > { %v4460_v16 = vpop.eup %3559  ;;  %1188 = vmatpush.msra.mxu1 %v421_v49 }
 0x178   : > { %v4462_v54 = vpop.eup %3561  ;;  %3420 = vmatpush.msra.mxu3 %v405_v23  ;;  %1124 = vmatpush.msra.mxu0 %v404_v46  ;;  %v418_v23 = vld [vmem:[%s5816_s0 + $0x90] sm:$0xff] }
 0x179   : > { %v811_v60 = vadd.f32 %v4462_v54, %v4460_v16  ;;  %1189 = vmatpush.msra.mxu1 %v420_v21 }
 0x17a   : > { %3421 = vmatpush.msra.mxu3 %v404_v46  ;;  %1125 = vmatpush.msra.mxu0 %v403_v58  ;;  %v417_v46 = vld [vmem:[%s5816_s0 + $0x88] sm:$0xff] }
 0x17b   : > { %812 = vadd.xlane.f32.xlu2 %v811_v60  ;;  %v419_v60 = vld [vmem:[%s5816_s0 + $0x98] sm:$0xff] }
 0x17c   : > { %1190 = vmatpush.msra.mxu1 %v419_v60  ;;  %3422 = vmatpush.msra.mxu3 %v403_v58  ;;  %v4514_v58 = vld [vmem:[%s5816_s0 + $0x80] sm:$0xff] }
 0x17d   : > { %1126 = vmatpush.msra.mxu0 %v402_v8 }
 0x17e   : > { %1191 = vmatpush.msra.mxu1 %v418_v23  ;;  %3423 = vmatpush.msra.mxu3 %v402_v8 }
 0x17f   : > { %1127 = vmatpush.msra.mxu0 %v401_v31 }
 0x180   : > { %1192 = vmatpush.msra.mxu1 %v417_v46  ;;  %3424 = vmatpush.msra.mxu3 %v401_v31 }
 0x181   : > { %1128 = vmatpush.msra.mxu0 %v400_v10 }
 0x182   : > { %1193 = vmatpush.msra.mxu1 %v4514_v58  ;;  %3425 = vmatpush.msra.mxu3 %v400_v10 }
 0x184   : > { %3426 = vmatpush.msrb.mxu3 %v4351_v63 }
 0x186   : > { %3427 = vmatpush.msrb.mxu3 %v4360_v55 }
 0x188   : > { %3428 = vmatpush.msrb.mxu3 %v4371_v59 }
 0x18a   : > { %3429 = vmatpush.msrb.mxu3 %v4382_v39 }
 0x18c   : > { %3430 = vmatpush.msrb.mxu3 %v4399_v42 }
 0x18e   : > { %3431 = vmatpush.msrb.mxu3 %v4412_v14 }
 0x190   : > { %3432 = vmatpush.msrb.mxu3 %v425_v7 }
 0x192   : > { %3433 = vmatpush.msrb.mxu3 %v424_v20 }
 0x193   : > { %v792_v8 = vpop.xlane.xlu2 %791 }
 0x194   : > { %3563 = vrcp.f32 %v792_v8  ;;  %v4523_v30 = vpop.xlane.xlu0 %797  ;;  %3434 = vmatpush.msrb.mxu3 %v423_v33  ;;  %v849_v20 = vand.u32 2147483648, %v792_v8  ;;  %v847_v3 = vand.u32 2147483647, %v792_v8  ;;  %vm843_vm1 = vweird.f32 %v792_v8 }
 0x195   : > { %3565 = vrcp.f32 %v4523_v30  ;;  %vm873_vm6 = vweird.f32 %v4523_v30 }
 0x196   : > { %3435 = vmatpush.msrb.mxu3 %v422_v47  ;;  %vm848_vm3 = vcmp.eq.f32.partialorder %v847_v3, 8.507059e+37 }
 0x198   : > { %3436 = vmatpush.msrb.mxu3 %v421_v49 }
 0x19a   : > { %v3564_v10 = vpop.eup %3563  ;;  %v4526_v31 = vpop.xlane.xlu1 %794  ;;  %3437 = vmatpush.msrb.mxu3 %v420_v21 }
 0x19b   : > { %v839_v63 = vmul.f32 %v3564_v10, %v792_v8  ;;  %3567 = vrcp.f32 %v4526_v31  ;;  %v687_v55 = vpop.xlane.xlu2 %686  ;;  %v4529_v59 = vpop.eup %3565  ;;  %vm844_vm0 = vweird.f32 %v3564_v10  ;;  %vm858_vm5 = vweird.f32 %v4526_v31 }
 0x19c   : > { %v720_v39 = vsub.f32 %v4260_v45, %v687_v55  ;;  %v721_v42 = vsub.f32 %v4264_v61, %v687_v55  ;;  %v869_v24 = vmul.f32 %v4529_v59, %v4523_v30  ;;  %3438 = vmatpush.msrb.mxu3 %v419_v60  ;;  %vm845_vm2 = vmor %vm843_vm1, %vm844_vm0  ;;  %v850_v61 = vor.u32 1.1754944e-38, %v849_v20 }
 0x19d   : > { %v840_v14 = vsub.f32 1.0, %v839_v63  ;;  %vm874_vm9 = vweird.f32 %v4529_v59 }
 0x19e   : > { %v778_v7 = vmul.f32 1.442695, %v720_v39  ;;  %v780_v25 = vmul.f32 1.442695, %v721_v42  ;;  %v870_v49 = vsub.f32 1.0, %v869_v24  ;;  %3439 = vmatpush.msrb.mxu3 %v418_v23  ;;  %vm4566_vm10 = vmor %vm873_vm6, %vm874_vm9 }
 0x19f   : > { %v841_v33 = vmul.f32 %v3564_v10, %v840_v14 }
 0x1a0   : > { %3569 = vpow2.f32 %v778_v7  ;;  %3440 = vmatpush.msrb.mxu3 %v417_v46  ;;  %v871_v23 = vmul.f32 %v4529_v59, %v870_v49 }
 0x1a1   : > { %v3568_v47 = vpop.eup %3567  ;;  %3571 = vpow2.f32 %v780_v25  ;;  %v842_v19 = vadd.f32 %v3564_v10, %v841_v33 }
 0x1a2   : > { %v854_v45 = vmul.f32 %v3568_v47, %v4526_v31  ;;  %vm859_vm4 = vweird.f32 %v3568_v47  ;;  %3441 = vmatpush.msrb.mxu3 %v4514_v58 }
 0x1a3   : > { %v672_v63 = vpop.xlane.xlu2 %671  ;;  %v846_v55 = vsel %vm845_vm2, %v3564_v10, %v842_v19  ;;  %v864_v19 = vand.u32 2147483648, %v4526_v31  ;;  %vm860_vm7 = vmor %vm858_vm5, %vm859_vm4 }
 0x1a4   : > { %v855_v39 = vsub.f32 1.0, %v854_v45  ;;  %v710_v42 = vsub.f32 %v4278_v57, %v672_v63  ;;  %v711_v21 = vsub.f32 %v4282_v35, %v672_v63  ;;  %v851_v14 = vsel %vm848_vm3, %v850_v61, %v846_v55 }
 0x1a5   : > { %v1078_v25 = vmul.f32 %v4246_v53, %v851_v14  ;;  %v1079_v8 = vmul.f32 %v4250_v37, %v851_v14  ;;  %v862_v53 = vand.u32 2147483647, %v4526_v31  ;;  %v865_v61 = vor.u32 1.1754944e-38, %v864_v19 }
 0x1a6   : > { %v4540_v60 = vpop.eup %3569  ;;  %v856_v7 = vmul.f32 %v3568_v47, %v855_v39  ;;  %v758_v20 = vmul.f32 1.442695, %v710_v42  ;;  %v760_v24 = vmul.f32 1.442695, %v711_v21  ;;  %v872_v63 = vadd.f32 %v4529_v59, %v871_v23 }
 0x1a7   : > { %v4543_v3 = vpop.eup %3571  ;;  %1129 = vmatmul.f32.vlgmr.msra.gmra.mxu0 %v1078_v25  ;;  %1194 = vmatmul.f32.vlgmr.msra.gmra.mxu1 %v1079_v8  ;;  %v690_v57 = vpop.xlane.xlu1 %689  ;;  %vm863_vm8 = vcmp.eq.f32.partialorder %v862_v53, 8.507059e+37  ;;  %v877_v21 = vand.u32 2147483647, %v4523_v30 }
 0x1a8   : > { %3573 = vpow2.f32 %v758_v20  ;;  %v722_v37 = vsub.f32 %v4294_v26, %v690_v57  ;;  %v723_v35 = vsub.f32 %v4298_v32, %v690_v57  ;;  %v829_v46 = vadd.f32 %v4543_v3, %v4540_v60 }
 0x1a9   : > { %3575 = vpow2.f32 %v760_v24  ;;  %v857_v10 = vadd.f32 %v3568_v47, %v856_v7  ;;  %v879_v26 = vand.u32 2147483648, %v4523_v30  ;;  %vm878_vm11 = vcmp.eq.f32.partialorder %v877_v21, 8.507059e+37 }
 0x1aa   : > { %v782_v33 = vmul.f32 1.442695, %v722_v37  ;;  %v784_v45 = vmul.f32 1.442695, %v723_v35  ;;  %830 = vadd.xlane.f32.xlu1 %v829_v46 }
 0x1ab   : > { %v675_v49 = vpop.xlane.xlu2 %674  ;;  %v861_v32 = vsel %vm860_vm7, %v3568_v47, %v857_v10 }
 0x1ac   : > { %3577 = vpow2.f32 %v782_v33  ;;  %v712_v58 = vsub.f32 %v4302_v13, %v675_v49  ;;  %v713_v31 = vsub.f32 %v4306_v6, %v675_v49  ;;  %v866_v55 = vsel %vm863_vm8, %v865_v61, %v861_v32 }
 0x1ad   : > { %3579 = vpow2.f32 %v784_v45  ;;  %v1080_v39 = vmul.f32 %v4266_v28, %v866_v55  ;;  %v1081_v42 = vmul.f32 %v4268_v34, %v866_v55  ;;  %v876_v28 = vsel %vm4566_vm10, %v4529_v59, %v872_v63 }
 0x1ae   : > { %v4562_v14 = vpop.eup %3573  ;;  %v762_v47 = vmul.f32 1.442695, %v712_v58  ;;  %v764_v25 = vmul.f32 1.442695, %v713_v31  ;;  %v880_v34 = vor.u32 1.1754944e-38, %v879_v26 }
 0x1af   : > { %v4570_v13 = vpop.eup %3575  ;;  %1132 = vmatmul.f32.gmra.mxu0 %v1080_v39  ;;  %1197 = vmatmul.f32.gmra.mxu1 %v1081_v42  ;;  %v693_v6 = vpop.xlane.xlu1 %692 }
 0x1b0   : > { %3581 = vpow2.f32 %v762_v47  ;;  %v724_v7 = vsub.f32 %v4314_v40, %v693_v6  ;;  %v725_v20 = vsub.f32 %v4318_v38, %v693_v6  ;;  %v814_v30 = vadd.f32 %v4570_v13, %v4562_v14 }
 0x1b1   : > { %3583 = vpow2.f32 %v764_v25  ;;  %v881_v57 = vsel %vm878_vm11, %v880_v34, %v876_v28 }
 0x1b2   : > { %v4579_v24 = vpop.eup %3577  ;;  %v786_v19 = vmul.f32 1.442695, %v724_v7  ;;  %v788_v23 = vmul.f32 1.442695, %v725_v20  ;;  %815 = vadd.xlane.f32.xlu0 %v814_v30  ;;  %v1082_v35 = vmul.f32 %v4244_v50, %v881_v57  ;;  %v1083_v46 = vmul.f32 %v4252_v29, %v881_v57 }
 0x1b3   : > { %v4581_v53 = vpop.eup %3579  ;;  %v678_v59 = vpop.xlane.xlu2 %677 }
 0x1b4   : > { %3585 = vpow2.f32 %v786_v19  ;;  %v714_v37 = vsub.f32 %v4324_v48, %v678_v59  ;;  %v715_v40 = vsub.f32 %v4328_v15, %v678_v59  ;;  %v832_v38 = vadd.f32 %v4581_v53, %v4579_v24 }
 0x1b5   : > { %3587 = vpow2.f32 %v788_v23 }
 0x1b6   : > { %v4589_v10 = vpop.eup %3581  ;;  %v766_v33 = vmul.f32 1.442695, %v714_v37  ;;  %v768_v45 = vmul.f32 1.442695, %v715_v40  ;;  %833 = vadd.xlane.f32.xlu2 %v832_v38 }
 0x1b7   : > { %v4591_v61 = vpop.eup %3583  ;;  %1135 = vmatmul.f32.gmra.mxu0 %v1082_v35  ;;  %1200 = vmatmul.f32.gmra.mxu1 %v1083_v46 }
 0x1b8   : > { %3589 = vpow2.f32 %v766_v33  ;;  %v817_v48 = vadd.f32 %v4591_v61, %v4589_v10 }
 0x1b9   : > { %3591 = vpow2.f32 %v768_v45 }
 0x1ba   : > { %v4595_v15 = vpop.eup %3585  ;;  %818 = vadd.xlane.f32.xlu1 %v817_v48 }
 0x1bb   : > { %v4597_v50 = vpop.eup %3587 }
 0x1bc   : > { %v835_v29 = vadd.f32 %v4597_v50, %v4595_v15 }
 0x1be   : > { %v4601_v26 = vpop.eup %3589  ;;  %836 = vadd.xlane.f32.xlu0 %v835_v29 }
 0x1bf   : > { %v4603_v49 = vpop.eup %3591 }
 0x1c0   : > { %v820_v32 = vadd.f32 %v4603_v49, %v4601_v26 }
 0x1c2   : > { %821 = vadd.xlane.f32.xlu2 %v820_v32 }
 0x1d6   : > { %v801_v63 = vpop.xlane.xlu0 %800 }
 0x1d7   : > { %3593 = vrcp.f32 %v801_v63  ;;  %v894_v34 = vand.u32 2147483648, %v801_v63  ;;  %v892_v19 = vand.u32 2147483647, %v801_v63  ;;  %vm888_vm13 = vweird.f32 %v801_v63 }
 0x1d8   : > { %v4607_v58 = vpop.xlane.xlu2 %806 }
 0x1d9   : > { %3595 = vrcp.f32 %v4607_v58  ;;  %vm893_vm15 = vcmp.eq.f32.partialorder %v892_v19, 8.507059e+37  ;;  %vm918_vm5 = vweird.f32 %v4607_v58 }
 0x1db   : > { %v804_v31 = vpop.xlane.xlu1 %803 }
 0x1dc   : > { %3597 = vrcp.f32 %v804_v31  ;;  %v909_v35 = vand.u32 2147483648, %v804_v31  ;;  %v907_v29 = vand.u32 2147483647, %v804_v31  ;;  %vm903_vm1 = vweird.f32 %v804_v31 }
 0x1dd   : > { %v3594_v55 = vpop.eup %3593 }
 0x1de   : > { %v884_v39 = vmul.f32 %v3594_v55, %v801_v63  ;;  %v681_v42 = vpop.xlane.xlu0 %680  ;;  %vm889_vm12 = vweird.f32 %v3594_v55  ;;  %vm908_vm3 = vcmp.eq.f32.partialorder %v907_v29, 8.507059e+37 }
 0x1df   : > { %v4610_v21 = vpop.eup %3595  ;;  %v716_v47 = vsub.f32 %v4418_v36, %v681_v42  ;;  %v717_v25 = vsub.f32 %v4427_v44, %v681_v42  ;;  %vm890_vm14 = vmor %vm888_vm13, %vm889_vm12  ;;  %v895_v44 = vor.u32 1.1754944e-38, %v894_v34 }
 0x1e0   : > { %v885_v8 = vsub.f32 1.0, %v884_v39  ;;  %v914_v30 = vmul.f32 %v4610_v21, %v4607_v58  ;;  %vm919_vm4 = vweird.f32 %v4610_v21 }
 0x1e1   : > { %v770_v6 = vmul.f32 1.442695, %v716_v47  ;;  %v772_v28 = vmul.f32 1.442695, %v717_v25  ;;  %vm920_vm6 = vmor %vm918_vm5, %vm919_vm4 }
 0x1e2   : > { %v3598_v7 = vpop.eup %3597  ;;  %v886_v20 = vmul.f32 %v3594_v55, %v885_v8  ;;  %v915_v37 = vsub.f32 1.0, %v914_v30  ;;  %v924_v30 = vand.u32 2147483648, %v4607_v58 }
 0x1e3   : > { %v899_v23 = vmul.f32 %v3598_v7, %v804_v31  ;;  %3599 = vpow2.f32 %v770_v6  ;;  %v4616_v57 = vpop.xlane.xlu1 %809  ;;  %vm904_vm0 = vweird.f32 %v3598_v7 }
 0x1e4   : > { %3601 = vpow2.f32 %v772_v28  ;;  %v887_v59 = vadd.f32 %v3594_v55, %v886_v20  ;;  %v916_v42 = vmul.f32 %v4610_v21, %v915_v37  ;;  %vm905_vm2 = vmor %vm903_vm1, %vm904_vm0  ;;  %vm933_vm13 = vweird.f32 %v4616_v57 }
 0x1e5   : > { %v900_v36 = vsub.f32 1.0, %v899_v23  ;;  %3603 = vrcp.f32 %v4616_v57 }
 0x1e6   : > { %v828_v40 = vpop.xlane.xlu0 %827  ;;  %v891_v38 = vsel %vm890_vm14, %v3594_v55, %v887_v59  ;;  %v917_v20 = vadd.f32 %v4610_v21, %v916_v42  ;;  %v922_v59 = vand.u32 2147483647, %v4607_v58 }
 0x1e7   : > { %v901_v46 = vmul.f32 %v3598_v7, %v900_v36  ;;  %3605 = vrcp.f32 %v828_v40  ;;  %v896_v33 = vsel %vm893_vm15, %v895_v44, %v891_v38  ;;  %v1027_v36 = vand.u32 2147483647, %v828_v40 }
 0x1e8   : > { %v1084_v45 = vmul.f32 %v4374_v41, %v896_v33  ;;  %v1085_v48 = vmul.f32 %v4384_v43, %v896_v33  ;;  %v910_v41 = vor.u32 1.1754944e-38, %v909_v35  ;;  %v1029_v44 = vand.u32 2147483648, %v828_v40 }
 0x1e9   : > { %v4621_v32 = vpop.eup %3599  ;;  %v902_v63 = vadd.f32 %v3598_v7, %v901_v46  ;;  %v921_v35 = vsel %vm920_vm6, %v4610_v21, %v917_v20  ;;  %v925_v46 = vor.u32 1.1754944e-38, %v924_v30  ;;  %vm923_vm8 = vcmp.eq.f32.partialorder %v922_v59, 8.507059e+37 }
 0x1ea   : > { %v4623_v39 = vpop.eup %3601  ;;  %1138 = vmatmul.f32.gmra.mxu0 %v1084_v45  ;;  %1203 = vmatmul.f32.gmra.mxu1 %v1085_v48  ;;  %vm1023_vm9 = vweird.f32 %v828_v40  ;;  %vm1028_vm11 = vcmp.eq.f32.partialorder %v1027_v36, 8.507059e+37  ;;  %v939_v21 = vand.u32 2147483648, %v4616_v57 }
 0x1eb   : > { %v3604_v55 = vpop.eup %3603  ;;  %v823_v47 = vadd.f32 %v4623_v39, %v4621_v32  ;;  %v906_v25 = vsel %vm905_vm2, %v3598_v7, %v902_v63 }
 0x1ec   : > { %v929_v43 = vmul.f32 %v3604_v55, %v4616_v57  ;;  %v911_v6 = vsel %vm908_vm3, %v910_v41, %v906_v25  ;;  %vm934_vm12 = vweird.f32 %v3604_v55  ;;  %v937_v25 = vand.u32 2147483647, %v4616_v57 }
 0x1ed   : > { %v3606_v8 = vpop.eup %3605  ;;  %824 = vadd.xlane.f32.xlu1 %v823_v47  ;;  %v1086_v19 = vmul.f32 %v4414_v9, %v911_v6  ;;  %v1087_v23 = vmul.f32 %v4421_v11, %v911_v6  ;;  %v926_v9 = vsel %vm923_vm8, %v925_v46, %v921_v35  ;;  %v1030_v11 = vor.u32 1.1754944e-38, %v1029_v44  ;;  %vm935_vm14 = vmor %vm933_vm13, %vm934_vm12  ;;  %v1548_v46 = vld [vmem:[%s5820_s4 + $0x8] sm:$0xff] }
 0x1ee   : > { %v930_v31 = vsub.f32 1.0, %v929_v43  ;;  %v1019_v28 = vmul.f32 %v3606_v8, %v828_v40  ;;  %v813_v34 = vpop.xlane.xlu2 %812  ;;  %vm1024_vm7 = vweird.f32 %v3606_v8  ;;  %v1088_v47 = vmul.f32 %v4388_v22, %v926_v9 }
 0x1ef   : > { %3607 = vrcp.f32 %v813_v34  ;;  %vm1025_vm10 = vmor %vm1023_vm9, %vm1024_vm7  ;;  %v1089_v41 = vmul.f32 %v4401_v62, %v926_v9  ;;  %v940_v6 = vor.u32 1.1754944e-38, %v939_v21  ;;  %vm938_vm15 = vcmp.eq.f32.partialorder %v937_v25, 8.507059e+37 }
 0x1f0   : > { %v1020_v7 = vsub.f32 1.0, %v1019_v28  ;;  %v931_v37 = vmul.f32 %v3604_v55, %v930_v31  ;;  %v954_v20 = vand.u32 2147483648, %v813_v34  ;;  %vm948_vm1 = vweird.f32 %v813_v34 }
 0x1f2   : > { %v1021_v38 = vmul.f32 %v3606_v8, %v1020_v7  ;;  %1141 = vmatmul.f32.gmra.mxu0 %v1086_v19  ;;  %1206 = vmatmul.f32.gmra.mxu1 %v1087_v23  ;;  %v932_v29 = vadd.f32 %v3604_v55, %v931_v37  ;;  %v955_v30 = vor.u32 1.1754944e-38, %v954_v20 }
 0x1f4   : > { %v1022_v33 = vadd.f32 %v3606_v8, %v1021_v38 }
 0x1f5   : > { %v3608_v45 = vpop.eup %3607 }
 0x1f6   : > { %v944_v58 = vmul.f32 %v3608_v45, %v813_v34  ;;  %v1026_v48 = vsel %vm1025_vm10, %v3606_v8, %v1022_v33  ;;  %v936_v8 = vsel %vm935_vm14, %v3604_v55, %v932_v29  ;;  %vm949_vm0 = vweird.f32 %v3608_v45 }
 0x1f7   : > { %v4637_v63 = vsel %vm1028_vm11, %v1030_v11, %v1026_v48  ;;  %v941_v31 = vsel %vm938_vm15, %v940_v6, %v936_v8  ;;  %vm950_vm2 = vmor %vm948_vm1, %vm949_vm0  ;;  %v1547_v48 = vld [vmem:[%s5820_s4] sm:$0xff] }
 0x1f8   : > { %v945_v42 = vsub.f32 1.0, %v944_v58  ;;  %v1102_v40 = vmul.f32 %v4442_v52, %v4637_v63  ;;  %v1090_v22 = vmul.f32 %v4434_v56, %v941_v31  ;;  %v952_v52 = vand.u32 2147483647, %v813_v34  ;;  %v4653_v56 = vld [vmem:[%s5819_s3] ss:$0 sm:$0xff] }
 0x1f9   : > { %v1091_v57 = vmul.f32 %v4436_v51, %v941_v31 }
 0x1fa   : > { %v946_v43 = vmul.f32 %v3608_v45, %v945_v42  ;;  %1144 = vmatmul.f32.gmra.mxu0 %v1088_v47  ;;  %1165 = vmatmul.f32.vlgmr.msra.gmra.mxu3 %v1102_v40  ;;  %vm953_vm3 = vcmp.eq.f32.partialorder %v952_v52, 8.507059e+37 }
 0x1fb   : > { %1209 = vmatmul.f32.gmra.mxu1 %v1089_v41 }
 0x1fc   : > { %v947_v28 = vadd.f32 %v3608_v45, %v946_v43 }
 0x1fe   : > { %v951_v62 = vsel %vm950_vm2, %v3608_v45, %v947_v28 }
 0x1ff   : > { %v956_v55 = vsel %vm953_vm3, %v955_v30, %v951_v62 }
 0x200   : > { %v1092_v7 = vmul.f32 %v4460_v16, %v956_v55  ;;  %v1093_v19 = vmul.f32 %v4462_v54, %v956_v55  ;;  %v1550_v16 = vld [vmem:[%s5820_s4 + $0x18] sm:$0xff]  ;;  %v1549_v54 = vld [vmem:[%s5820_s4 + $0x10] sm:$0xff] }
 0x201   : > { %1612 = vmatpush.msra.mxu2 %v1550_v16  ;;  %3442 = vmatpush.msra.mxu3 %v1550_v16 }
 0x202   : > { %1147 = vmatmul.f32.gmra.mxu0 %v1090_v22 }
 0x203   : > { %1212 = vmatmul.f32.gmra.mxu1 %v1091_v57  ;;  %1613 = vmatpush.msra.mxu2 %v1549_v54 }
 0x204   : > { %3443 = vmatpush.msra.mxu3 %v1549_v54 }
 0x205   : > { %1614 = vmatpush.msra.mxu2 %v1548_v46 }
 0x206   : > { %3444 = vmatpush.msra.mxu3 %v1548_v46 }
 0x207   : > { %1615 = vmatpush.msra.mxu2 %v1547_v48 }
 0x208   : > { %3445 = vmatpush.msra.mxu3 %v1547_v48 }
 0x20a   : > { %1150 = vmatmul.f32.gmra.mxu0 %v1092_v7 }
 0x20b   : > { %1215 = vmatmul.f32.gmra.mxu1 %v1093_v19 }
 0x21d   : > { %v831_v23 = vpop.xlane.xlu1 %830 }
 0x21e   : > { %3609 = vrcp.f32 %v831_v23  ;;  %v1042_v33 = vand.u32 2147483647, %v831_v23  ;;  %v1044_v45 = vand.u32 2147483648, %v831_v23  ;;  %vm1038_vm5 = vweird.f32 %v831_v23 }
 0x220   : > { %vm1043_vm7 = vcmp.eq.f32.partialorder %v1042_v33, 8.507059e+37  ;;  %v1045_v25 = vor.u32 1.1754944e-38, %v1044_v45 }
 0x224   : > { %v3610_v51 = vpop.eup %3609  ;;  %v1130_v34 = vpop.f32.mrf.mxu0 }
 0x225   : > { %v1195_v59 = vpop.f32.mrf.mxu1  ;;  %v1034_v36 = vmul.f32 %v3610_v51, %v831_v23  ;;  %v1131_v44 = vadd.f32 %v4653_v56, %v1130_v34  ;;  %v4656_v37 = vpop.xlane.xlu0 %815  ;;  %vm1039_vm4 = vweird.f32 %v3610_v51 }
 0x226   : > { %3611 = vrcp.f32 %v4656_v37  ;;  %vm1040_vm6 = vmor %vm1038_vm5, %vm1039_vm4  ;;  %v967_v41 = vand.u32 2147483647, %v4656_v37  ;;  %v969_v20 = vand.u32 2147483648, %v4656_v37  ;;  %vm963_vm8 = vweird.f32 %v4656_v37 }
 0x227   : > { %v1035_v38 = vsub.f32 1.0, %v1034_v36  ;;  %v1196_v35 = vadd.f32 %v1195_v59, %v1131_v44 }
 0x228   : > { %vm4691_vm9 = vcmp.eq.f32.partialorder %v967_v41, 8.507059e+37 }
 0x229   : > { %v1036_v9 = vmul.f32 %v3610_v51, %v1035_v38  ;;  %v1243_v11 = vsub.f32 0.0, %v1196_v35  ;;  %v4668_v58 = vpop.xlane.xlu2 %833 }
 0x22a   : > { %3613 = vrcp.f32 %v4668_v58  ;;  %v1057_v62 = vand.u32 2147483647, %v4668_v58  ;;  %v1059_v55 = vand.u32 2147483648, %v4668_v58  ;;  %vm1053_vm11 = vweird.f32 %v4668_v58 }
 0x22b   : > { %v1259_v29 = vmul.f32 1.442695, %v1243_v11  ;;  %v1037_v21 = vadd.f32 %v3610_v51, %v1036_v9 }
 0x22c   : > { %v3612_v42 = vpop.eup %3611  ;;  %v1133_v47 = vpop.f32.mrf.mxu0  ;;  %vm4697_vm12 = vcmp.eq.f32.partialorder %v1057_v62, 8.507059e+37  ;;  %v1060_v33 = vor.u32 1.1754944e-38, %v1059_v55 }
 0x22d   : > { %v1198_v40 = vpop.f32.mrf.mxu1  ;;  %3615 = vpow2.f32 %v1259_v29  ;;  %v959_v43 = vmul.f32 %v3612_v42, %v4656_v37  ;;  %v1134_v8 = vadd.f32 %v4653_v56, %v1133_v47  ;;  %v4677_v6 = vpop.xlane.xlu1 %818  ;;  %v1041_v31 = vsel %vm1040_vm6, %v3610_v51, %v1037_v21 }
 0x22e   : > { %3617 = vrcp.f32 %v4677_v6  ;;  %v4680_v28 = vsel %vm1043_vm7, %v1045_v25, %v1041_v31  ;;  %vm964_vm10 = vweird.f32 %v3612_v42  ;;  %vm978_vm13 = vweird.f32 %v4677_v6 }
 0x22f   : > { %v960_v22 = vsub.f32 1.0, %v959_v43  ;;  %v1199_v52 = vadd.f32 %v1198_v40, %v1134_v8  ;;  %v1104_v57 = vmul.f32 %v4540_v60, %v4680_v28  ;;  %v970_v60 = vor.u32 1.1754944e-38, %v969_v20  ;;  %vm965_vm14 = vmor %vm963_vm8, %vm964_vm10 }
 0x230   : > { %v3614_v30 = vpop.eup %3613  ;;  %v982_v45 = vand.u32 2147483647, %v4677_v6  ;;  %v984_v40 = vand.u32 2147483648, %v4677_v6 }
 0x231   : > { %v961_v7 = vmul.f32 %v3612_v42, %v960_v22  ;;  %v1049_v19 = vmul.f32 %v3614_v30, %v4668_v58  ;;  %v1244_v23 = vsub.f32 0.0, %v1199_v52  ;;  %1168 = vmatmul.f32.gmra.mxu3 %v1104_v57  ;;  %v4689_v51 = vpop.xlane.xlu0 %836  ;;  %vm1054_vm15 = vweird.f32 %v3614_v30 }
 0x232   : > { %3619 = vrcp.f32 %v4689_v51  ;;  %vm1068_vm0 = vweird.f32 %v4689_v51  ;;  %v1074_v52 = vand.u32 2147483648, %v4689_v51  ;;  %vm1055_vm1 = vmor %vm1053_vm11, %vm1054_vm15  ;;  %vm4725_vm3 = vcmp.eq.f32.partialorder %v982_v45, 8.507059e+37 }
 0x233   : > { %v3616_v59 = vpop.eup %3615  ;;  %v1050_v36 = vsub.f32 1.0, %v1049_v19  ;;  %v1261_v44 = vmul.f32 1.442695, %v1244_v23  ;;  %v962_v16 = vadd.f32 %v3612_v42, %v961_v7  ;;  %vm1551_vm11 = vcmask 261120  }
 0x234   : > { %v3618_v38 = vpop.eup %3617  ;;  %v4701_v35 = vadd.f32 1.0, %v3616_v59  ;;  %v1136_v46 = vpop.f32.mrf.mxu0  ;;  %v1072_v59 = vand.u32 2147483647, %v4689_v51 }
 0x235   : > { %v1051_v9 = vmul.f32 %v3614_v30, %v1050_v36  ;;  %3621 = vpow2.f32 %v1261_v44  ;;  %v974_v11 = vmul.f32 %v3618_v38, %v4677_v6  ;;  %v4706_v48 = vpop.xlane.xlu2 %821  ;;  %v1137_v29 = vadd.f32 %v4653_v56, %v1136_v46  ;;  %v1201_v21 = vpop.f32.mrf.mxu1 }
 0x236   : > { %3623 = vrcp.f32 %v4701_v35  ;;  %v966_v47 = vsel %vm965_vm14, %v3612_v42, %v962_v16  ;;  %vm979_vm2 = vweird.f32 %v3618_v38  ;;  %v1075_v46 = vor.u32 1.1754944e-38, %v1074_v52 }
 0x237   : > { %v975_v25 = vsub.f32 1.0, %v974_v11  ;;  %3625 = vrcp.f32 %v4706_v48  ;;  %v1202_v41 = vadd.f32 %v1201_v21, %v1137_v29  ;;  %v971_v43 = vsel %vm4691_vm9, %v970_v60, %v966_v47  ;;  %vm980_vm5 = vmor %vm978_vm13, %vm979_vm2 }
 0x238   : > { %v3620_v8 = vpop.eup %3619  ;;  %v1094_v37 = vmul.f32 %v4562_v14, %v971_v43  ;;  %v1095_v31 = vmul.f32 %v4570_v13, %v971_v43  ;;  %v1052_v20 = vadd.f32 %v3614_v30, %v1051_v9  ;;  %v985_v14 = vor.u32 1.1754944e-38, %v984_v40 }
 0x239   : > { %v976_v22 = vmul.f32 %v3618_v38, %v975_v25  ;;  %v1064_v42 = vmul.f32 %v3620_v8, %v4689_v51  ;;  %v1245_v57 = vsub.f32 0.0, %v1202_v41  ;;  %vm1069_vm4 = vweird.f32 %v3620_v8 }
 0x23a   : > { %1153 = vmatmul.f32.gmra.mxu0 %v1094_v37  ;;  %1218 = vmatmul.f32.gmra.mxu1 %v1095_v31  ;;  %v1056_v62 = vsel %vm1055_vm1, %v3614_v30, %v1052_v20  ;;  %vm1070_vm6 = vmor %vm1068_vm0, %vm1069_vm4  ;;  %v999_v29 = vand.u32 2147483648, %v4706_v48  ;;  %vm1073_vm7 = vcmp.eq.f32.partialorder %v1072_v59, 8.507059e+37  ;;  %v1318_v21 = vand.u32 2147483648, %v4701_v35 }
 0x23b   : > { %v3622_v13 = vpop.eup %3621  ;;  %v1065_v7 = vsub.f32 1.0, %v1064_v42  ;;  %v1263_v19 = vmul.f32 1.442695, %v1245_v57  ;;  %v4731_v23 = vsel %vm4697_vm12, %v1060_v33, %v1056_v62  ;;  %v977_v34 = vadd.f32 %v3618_v38, %v976_v22 }
 0x23c   : > { %v3624_v60 = vpop.eup %3623  ;;  %v4733_v58 = vadd.f32 1.0, %v3622_v13  ;;  %v1106_v30 = vmul.f32 %v4579_v24, %v4731_v23  ;;  %v1316_v25 = vand.u32 2147483647, %v4701_v35  ;;  %v997_v51 = vand.u32 2147483647, %v4706_v48 }
 0x23d   : > { %v3626_v36 = vpop.eup %3625  ;;  %v1066_v44 = vmul.f32 %v3620_v8, %v1065_v7  ;;  %3627 = vpow2.f32 %v1263_v19  ;;  %v981_v16 = vsel %vm980_vm5, %v3618_v38, %v977_v34  ;;  %v1308_v54 = vmul.f32 %v3624_v60, %v4701_v35 }
 0x23e   : > { %3629 = vrcp.f32 %v4733_v58  ;;  %v989_v33 = vmul.f32 %v3626_v36, %v4706_v48  ;;  %1171 = vmatmul.f32.gmra.mxu3 %v1106_v30  ;;  %v986_v24 = vsel %vm4725_vm3, %v985_v14, %v981_v16  ;;  %vm1313_vm8 = vweird.f32 %v3624_v60 }
 0x23f   : > { %v1096_v6 = vmul.f32 %v4589_v10, %v986_v24  ;;  %v1097_v45 = vmul.f32 %v4591_v61, %v986_v24  ;;  %v1067_v9 = vadd.f32 %v3620_v8, %v1066_v44  ;;  %v1309_v11 = vsub.f32 1.0, %v1308_v54 }
 0x240   : > { %v990_v38 = vsub.f32 1.0, %v989_v33  ;;  %vm994_vm9 = vweird.f32 %v3626_v36  ;;  %vm1312_vm10 = vweird.f32 %v4701_v35  ;;  %vm993_vm12 = vweird.f32 %v4706_v48 }
 0x241   : > { %v1071_v47 = vsel %vm1070_vm6, %v3620_v8, %v1067_v9  ;;  %v1310_v40 = vmul.f32 %v3624_v60, %v1309_v11  ;;  %vm1314_vm13 = vmor %vm1312_vm10, %vm1313_vm8  ;;  %v1319_v20 = vor.u32 1.1754944e-38, %v1318_v21  ;;  %v1000_v42 = vor.u32 1.1754944e-38, %v999_v29 }
 0x242   : > { %v991_v10 = vmul.f32 %v3626_v36, %v990_v38  ;;  %1156 = vmatmul.f32.gmra.mxu0 %v1096_v6  ;;  %1221 = vmatmul.f32.gmra.mxu1 %v1097_v45  ;;  %v4753_v61 = vsel %vm1073_vm7, %v1075_v46, %v1071_v47  ;;  %vm995_vm14 = vmor %vm993_vm12, %vm994_vm9  ;;  %vm1317_vm15 = vcmp.eq.f32.partialorder %v1316_v25, 8.507059e+37  ;;  %vm998_vm0 = vcmp.eq.f32.partialorder %v997_v51, 8.507059e+37 }
 0x243   : > { %v3628_v41 = vpop.eup %3627  ;;  %v1108_v43 = vmul.f32 %v4595_v15, %v4753_v61  ;;  %v1311_v37 = vadd.f32 %v3624_v60, %v1310_v40  ;;  %v1333_v13 = vand.u32 2147483648, %v4733_v58  ;;  %v1331_v19 = vand.u32 2147483647, %v4733_v58 }
 0x244   : > { %v3630_v8 = vpop.eup %3629  ;;  %v1293_v31 = vadd.f32 1.0, %v3628_v41  ;;  %v992_v22 = vadd.f32 %v3626_v36, %v991_v10  ;;  %vm1327_vm2 = vweird.f32 %v4733_v58  ;;  %v1103_v30 = vmul.f32 %v4444_v27, %v4637_v63 }
 0x245   : > { %v1315_v52 = vsel %vm1314_vm13, %v3624_v60, %v1311_v37  ;;  %v1323_v57 = vmul.f32 %v3630_v8, %v4733_v58  ;;  %vm1328_vm1 = vweird.f32 %v3630_v8  ;;  %v1334_v59 = vor.u32 1.1754944e-38, %v1333_v13 }
 0x246   : > { %3631 = vrcp.f32 %v1293_v31  ;;  %1174 = vmatmul.f32.gmra.mxu3 %v1108_v43  ;;  %v1320_v15 = vsel %vm1317_vm15, %v1319_v20, %v1315_v52  ;;  %v996_v35 = vsel %vm995_vm14, %v3626_v36, %v992_v22  ;;  %vm1329_vm3 = vmor %vm1327_vm2, %vm1328_vm1  ;;  %vm1332_vm4 = vcmp.eq.f32.partialorder %v1331_v19, 8.507059e+37 }
 0x247   : > { %3390 = vmatmul.msk.f32.vlgmr.msra.gmra.mxu2 %vm1551_vm11, %v1320_v15  ;;  %v1001_v48 = vsel %vm998_vm0, %v1000_v42, %v996_v35  ;;  %v1324_v62 = vsub.f32 1.0, %v1323_v57  ;;  %v1348_v16 = vand.u32 2147483648, %v1293_v31  ;;  %v1346_v46 = vand.u32 2147483647, %v1293_v31 }
 0x248   : > { %v1098_v55 = vmul.f32 %v4601_v26, %v1001_v48  ;;  %v1099_v14 = vmul.f32 %v4603_v49, %v1001_v48  ;;  %vm1342_vm6 = vweird.f32 %v1293_v31  ;;  %v1105_v58 = vmul.f32 %v4543_v3, %v4680_v28 }
 0x249   : > { %v1325_v7 = vmul.f32 %v3630_v8, %v1324_v62  ;;  %v1349_v27 = vor.u32 1.1754944e-38, %v1348_v16  ;;  %vm1347_vm8 = vcmp.eq.f32.partialorder %v1346_v46, 8.507059e+37  ;;  %v1107_v6 = vmul.f32 %v4581_v53, %v4731_v23 }
 0x24a   : > { %1159 = vmatmul.f32.gmra.mxu0 %v1098_v55  ;;  %1224 = vmatmul.f32.gmra.mxu1 %v1099_v14  ;;  %v1109_v9 = vmul.f32 %v4597_v50, %v4753_v61 }
 0x24b   : > { %v1326_v34 = vadd.f32 %v3630_v8, %v1325_v7 }
 0x24c   : > { %v3632_v60 = vpop.eup %3631 }
 0x24d   : > { %v1330_v26 = vsel %vm1329_vm3, %v3630_v8, %v1326_v34  ;;  %v1338_v49 = vmul.f32 %v3632_v60, %v1293_v31  ;;  %vm1343_vm5 = vweird.f32 %v3632_v60 }
 0x24e   : > { %1230 = vmatmul.f32.vlgmr.msrb.gmra.mxu3 %v1103_v30  ;;  %v1335_v36 = vsel %vm1332_vm4, %v1334_v59, %v1330_v26  ;;  %vm1344_vm7 = vmor %vm1342_vm6, %vm1343_vm5 }
 0x24f   : > { %3391 = vmatmul.msk.f32.gmra.mxu2 %vm1551_vm11, %v1335_v36  ;;  %v1339_v44 = vsub.f32 1.0, %v1338_v49 }
 0x251   : > { %v1340_v54 = vmul.f32 %v3632_v60, %v1339_v44 }
 0x253   : > { %v1341_v33 = vadd.f32 %v3632_v60, %v1340_v54 }
 0x255   : > { %v1345_v63 = vsel %vm1344_vm7, %v3632_v60, %v1341_v33 }
 0x256   : > { %1233 = vmatmul.f32.gmra.mxu3 %v1105_v58  ;;  %v1350_v24 = vsel %vm1347_vm8, %v1349_v27, %v1345_v63 }
 0x257   : > { %3392 = vmatmul.msk.f32.gmra.mxu2 %vm1551_vm11, %v1350_v24 }
 0x25e   : > { %1236 = vmatmul.f32.gmra.mxu3 %v1107_v6 }
 0x260   : > { %v825_v45 = vpop.xlane.xlu1 %824 }
 0x261   : > { %3633 = vrcp.f32 %v825_v45  ;;  %v1014_v40 = vand.u32 2147483648, %v825_v45  ;;  %v1012_v53 = vand.u32 2147483647, %v825_v45  ;;  %vm1008_vm10 = vweird.f32 %v825_v45 }
 0x263   : > { %v1015_v41 = vor.u32 1.1754944e-38, %v1014_v40  ;;  %vm1013_vm13 = vcmp.eq.f32.partialorder %v1012_v53, 8.507059e+37 }
 0x266   : > { %1239 = vmatmul.f32.gmra.mxu3 %v1109_v9 }
 0x267   : > { %v3634_v11 = vpop.eup %3633  ;;  %v1139_v3 = vpop.f32.mrf.mxu0 }
 0x268   : > { %v1204_v28 = vpop.f32.mrf.mxu1  ;;  %v1004_v38 = vmul.f32 %v3634_v11, %v825_v45  ;;  %v1140_v29 = vadd.f32 %v4653_v56, %v1139_v3  ;;  %vm1009_vm9 = vweird.f32 %v3634_v11 }
 0x269   : > { %vm1010_vm12 = vmor %vm1008_vm10, %vm1009_vm9 }
 0x26a   : > { %v1005_v21 = vsub.f32 1.0, %v1004_v38  ;;  %v1205_v47 = vadd.f32 %v1204_v28, %v1140_v29 }
 0x26c   : > { %v1006_v25 = vmul.f32 %v3634_v11, %v1005_v21  ;;  %v1246_v10 = vsub.f32 0.0, %v1205_v47 }
 0x26e   : > { %v1265_v23 = vmul.f32 1.442695, %v1246_v10  ;;  %v1007_v51 = vadd.f32 %v3634_v11, %v1006_v25 }
 0x26f   : > { %v1142_v50 = vpop.f32.mrf.mxu0 }
 0x270   : > { %v1207_v61 = vpop.f32.mrf.mxu1  ;;  %3635 = vpow2.f32 %v1265_v23  ;;  %v1143_v43 = vadd.f32 %v4653_v56, %v1142_v50  ;;  %v1011_v37 = vsel %vm1010_vm12, %v3634_v11, %v1007_v51 }
 0x271   : > { %v1016_v8 = vsel %vm1013_vm13, %v1015_v41, %v1011_v37 }
 0x272   : > { %v1208_v31 = vadd.f32 %v1207_v61, %v1143_v43  ;;  %v1100_v20 = vmul.f32 %v4621_v32, %v1016_v8  ;;  %v1101_v22 = vmul.f32 %v4623_v39, %v1016_v8 }
 0x274   : > { %v1247_v42 = vsub.f32 0.0, %v1208_v31  ;;  %1162 = vmatmul.f32.gmra.mxu0 %v1100_v20  ;;  %1227 = vmatmul.f32.gmra.mxu1 %v1101_v22 }
 0x276   : > { %v3636_v52 = vpop.eup %3635  ;;  %v1267_v57 = vmul.f32 1.442695, %v1247_v42 }
 0x277   : > { %v1294_v15 = vadd.f32 1.0, %v3636_v52  ;;  %v1145_v35 = vpop.f32.mrf.mxu0 }
 0x278   : > { %3637 = vpow2.f32 %v1267_v57  ;;  %v1146_v48 = vadd.f32 %v4653_v56, %v1145_v35  ;;  %v1210_v62 = vpop.f32.mrf.mxu1 }
 0x279   : > { %3639 = vrcp.f32 %v1294_v15  ;;  %v1361_v49 = vand.u32 2147483647, %v1294_v15  ;;  %v1363_v36 = vand.u32 2147483648, %v1294_v15  ;;  %vm1357_vm15 = vweird.f32 %v1294_v15 }
 0x27a   : > { %v1211_v55 = vadd.f32 %v1210_v62, %v1146_v48 }
 0x27b   : > { %vm1362_vm1 = vcmp.eq.f32.partialorder %v1361_v49, 8.507059e+37  ;;  %v1364_v24 = vor.u32 1.1754944e-38, %v1363_v36 }
 0x27c   : > { %v1248_v14 = vsub.f32 0.0, %v1211_v55 }
 0x27e   : > { %v3638_v13 = vpop.eup %3637  ;;  %v1269_v7 = vmul.f32 1.442695, %v1248_v14 }
 0x27f   : > { %v3640_v19 = vpop.eup %3639  ;;  %v1295_v32 = vadd.f32 1.0, %v3638_v13  ;;  %v1148_v34 = vpop.f32.mrf.mxu0 }
 0x280   : > { %3641 = vpow2.f32 %v1269_v7  ;;  %v1149_v39 = vadd.f32 %v4653_v56, %v1148_v34  ;;  %v1213_v60 = vpop.f32.mrf.mxu1  ;;  %v1353_v30 = vmul.f32 %v3640_v19, %v1294_v15  ;;  %vm1358_vm14 = vweird.f32 %v3640_v19 }
 0x281   : > { %3643 = vrcp.f32 %v1295_v32  ;;  %vm1359_vm0 = vmor %vm1357_vm15, %vm1358_vm14  ;;  %v1378_v29 = vand.u32 2147483648, %v1295_v32  ;;  %v1376_v40 = vand.u32 2147483647, %v1295_v32  ;;  %vm1372_vm3 = vweird.f32 %v1295_v32 }
 0x282   : > { %v1214_v59 = vadd.f32 %v1213_v60, %v1149_v39  ;;  %v1354_v26 = vsub.f32 1.0, %v1353_v30 }
 0x283   : > { %v1379_v41 = vor.u32 1.1754944e-38, %v1378_v29  ;;  %vm1377_vm5 = vcmp.eq.f32.partialorder %v1376_v40, 8.507059e+37 }
 0x284   : > { %v1249_v44 = vsub.f32 0.0, %v1214_v59  ;;  %v1355_v16 = vmul.f32 %v3640_v19, %v1354_v26 }
 0x286   : > { %v3642_v54 = vpop.eup %3641  ;;  %v1271_v46 = vmul.f32 1.442695, %v1249_v44  ;;  %v1356_v33 = vadd.f32 %v3640_v19, %v1355_v16 }
 0x287   : > { %v3644_v58 = vpop.eup %3643  ;;  %v1296_v27 = vadd.f32 1.0, %v3642_v54  ;;  %v1151_v63 = vpop.f32.mrf.mxu0 }
 0x288   : > { %3645 = vpow2.f32 %v1271_v46  ;;  %v1152_v6 = vadd.f32 %v4653_v56, %v1151_v63  ;;  %v1360_v45 = vsel %vm1359_vm0, %v3640_v19, %v1356_v33  ;;  %v1368_v9 = vmul.f32 %v3644_v58, %v1295_v32  ;;  %v1216_v11 = vpop.f32.mrf.mxu1  ;;  %v4791_v33 = vpop.f32.mrf.mxu3 }
 0x289   : > { %3647 = vrcp.f32 %v1296_v27  ;;  %v1365_v3 = vsel %vm1362_vm1, %v1364_v24, %v1360_v45  ;;  %vm1373_vm2 = vweird.f32 %v3644_v58  ;;  %v1393_v8 = vand.u32 2147483648, %v1296_v27 }
 0x28a   : > { %v1217_v28 = vadd.f32 %v1216_v11, %v1152_v6  ;;  %3393 = vmatmul.msk.f32.gmra.mxu2 %vm1551_vm11, %v1365_v3  ;;  %v1369_v38 = vsub.f32 1.0, %v1368_v9  ;;  %vm1374_vm4 = vmor %vm1372_vm3, %vm1373_vm2  ;;  %v1391_v20 = vand.u32 2147483647, %v1296_v27  ;;  %vm1387_vm7 = vweird.f32 %v1296_v27 }
 0x28b   : > { %v1394_v15 = vor.u32 1.1754944e-38, %v1393_v8  ;;  %vm1666_vm3 = vcmask 277504  }
 0x28c   : > { %v1250_v21 = vsub.f32 0.0, %v1217_v28  ;;  %v1370_v47 = vmul.f32 %v3644_v58, %v1369_v38  ;;  %vm1392_vm9 = vcmp.eq.f32.partialorder %v1391_v20, 8.507059e+37 }
 0x28e   : > { %v3646_v25 = vpop.eup %3645  ;;  %v1273_v10 = vmul.f32 1.442695, %v1250_v21  ;;  %v1371_v53 = vadd.f32 %v3644_v58, %v1370_v47 }
 0x28f   : > { %v3648_v23 = vpop.eup %3647  ;;  %v1297_v51 = vadd.f32 1.0, %v3646_v25 }
 0x290   : > { %3649 = vpow2.f32 %v1273_v10  ;;  %v1375_v50 = vsel %vm1374_vm4, %v3644_v58, %v1371_v53  ;;  %v1383_v61 = vmul.f32 %v3648_v23, %v1296_v27  ;;  %vm1388_vm6 = vweird.f32 %v3648_v23 }
 0x291   : > { %3651 = vrcp.f32 %v1297_v51  ;;  %v1380_v43 = vsel %vm1377_vm5, %v1379_v41, %v1375_v50  ;;  %vm1389_vm8 = vmor %vm1387_vm7, %vm1388_vm6  ;;  %v1408_v14 = vand.u32 2147483648, %v1297_v51  ;;  %v1406_v7 = vand.u32 2147483647, %v1297_v51 }
 0x292   : > { %3394 = vmatmul.msk.f32.gmra.mxu2 %vm1551_vm11, %v1380_v43  ;;  %v1384_v37 = vsub.f32 1.0, %v1383_v61  ;;  %vm1402_vm12 = vweird.f32 %v1297_v51 }
 0x293   : > { %v1409_v34 = vor.u32 1.1754944e-38, %v1408_v14  ;;  %vm1407_vm14 = vcmp.eq.f32.partialorder %v1406_v7, 8.507059e+37 }
 0x294   : > { %v1385_v31 = vmul.f32 %v3648_v23, %v1384_v37 }
 0x296   : > { %v3650_v22 = vpop.eup %3649  ;;  %v1386_v42 = vadd.f32 %v3648_v23, %v1385_v31 }
 0x297   : > { %v3652_v52 = vpop.eup %3651  ;;  %v1298_v57 = vadd.f32 1.0, %v3650_v22 }
 0x298   : > { %v1390_v35 = vsel %vm1389_vm8, %v3648_v23, %v1386_v42  ;;  %v1398_v48 = vmul.f32 %v3652_v52, %v1297_v51  ;;  %vm1403_vm10 = vweird.f32 %v3652_v52 }
 0x299   : > { %3653 = vrcp.f32 %v1298_v57  ;;  %v1395_v62 = vsel %vm1392_vm9, %v1394_v15, %v1390_v35  ;;  %vm1404_vm13 = vmor %vm1402_vm12, %vm1403_vm10  ;;  %v1423_v26 = vand.u32 2147483648, %v1298_v57  ;;  %v1421_v36 = vand.u32 2147483647, %v1298_v57 }
 0x29a   : > { %3395 = vmatmul.msk.f32.gmra.mxu2 %vm1551_vm11, %v1395_v62  ;;  %v1399_v55 = vsub.f32 1.0, %v1398_v48  ;;  %vm1417_vm0 = vweird.f32 %v1298_v57 }
 0x29b   : > { %v1424_v16 = vor.u32 1.1754944e-38, %v1423_v26  ;;  %vm1422_vm2 = vcmp.eq.f32.partialorder %v1421_v36, 8.507059e+37 }
 0x29c   : > { %v1400_v13 = vmul.f32 %v3652_v52, %v1399_v55 }
 0x29e   : > { %v1401_v19 = vadd.f32 %v3652_v52, %v1400_v13 }
 0x29f   : > { %v3654_v32 = vpop.eup %3653 }
 0x2a0   : > { %v1405_v39 = vsel %vm1404_vm13, %v3652_v52, %v1401_v19  ;;  %v1413_v60 = vmul.f32 %v3654_v32, %v1298_v57  ;;  %vm1418_vm15 = vweird.f32 %v3654_v32 }
 0x2a1   : > { %v1410_v30 = vsel %vm1407_vm14, %v1409_v34, %v1405_v39  ;;  %vm1419_vm1 = vmor %vm1417_vm0, %vm1418_vm15 }
 0x2a2   : > { %3396 = vmatmul.msk.f32.gmra.mxu2 %vm1551_vm11, %v1410_v30  ;;  %v1414_v59 = vsub.f32 1.0, %v1413_v60 }
 0x2a4   : > { %v1415_v49 = vmul.f32 %v3654_v32, %v1414_v59 }
 0x2a6   : > { %v1416_v44 = vadd.f32 %v3654_v32, %v1415_v49 }
 0x2a8   : > { %v1420_v54 = vsel %vm1419_vm1, %v3654_v32, %v1416_v44 }
 0x2a9   : > { %v1425_v46 = vsel %vm1422_vm2, %v1424_v16, %v1420_v54 }
 0x2aa   : > { %3397 = vmatmul.msk.f32.gmra.mxu2 %vm1551_vm11, %v1425_v46 }
 0x2b4   : > { %v4794_v24 = vpop.f32.mrf.mxu3 }
 0x2b7   : > { %v1154_v58 = vpop.f32.mrf.mxu0  ;;  %v1219_v27 = vpop.f32.mrf.mxu1 }
 0x2b8   : > { %v1155_v63 = vadd.f32 %v4653_v56, %v1154_v58 }
 0x2ba   : > { %v1220_v6 = vadd.f32 %v1219_v27, %v1155_v63 }
 0x2bc   : > { %v1251_v45 = vsub.f32 0.0, %v1220_v6  ;;  %v1167_v6 = vadd.f32 %v4653_v56, %v4791_v33 }
 0x2be   : > { %v1275_v9 = vmul.f32 1.442695, %v1251_v45 }
 0x2bf   : > { %v1157_v11 = vpop.f32.mrf.mxu0  ;;  %v1222_v3 = vpop.f32.mrf.mxu1 }
 0x2c0   : > { %3655 = vpow2.f32 %v1275_v9  ;;  %v1158_v28 = vadd.f32 %v4653_v56, %v1157_v11 }
 0x2c1   : > { %v4797_v38 = vpop.f32.mrf.mxu3 }
 0x2c2   : > { %v1223_v29 = vadd.f32 %v1222_v3, %v1158_v28 }
 0x2c4   : > { %v1252_v21 = vsub.f32 0.0, %v1223_v29 }
 0x2c6   : > { %v3656_v47 = vpop.eup %3655  ;;  %v1277_v40 = vmul.f32 1.442695, %v1252_v21 }
 0x2c7   : > { %v1299_v25 = vadd.f32 1.0, %v3656_v47  ;;  %v1160_v10 = vpop.f32.mrf.mxu0  ;;  %v1225_v23 = vpop.f32.mrf.mxu1 }
 0x2c8   : > { %3657 = vpow2.f32 %v1277_v40  ;;  %v1161_v53 = vadd.f32 %v4653_v56, %v1160_v10 }
 0x2c9   : > { %3659 = vrcp.f32 %v1299_v25  ;;  %v4800_v51 = vpop.f32.mrf.mxu3  ;;  %v1438_v57 = vand.u32 2147483648, %v1299_v25  ;;  %v1436_v35 = vand.u32 2147483647, %v1299_v25  ;;  %vm1432_vm5 = vweird.f32 %v1299_v25 }
 0x2ca   : > { %v1226_v41 = vadd.f32 %v1225_v23, %v1161_v53  ;;  %v1617_v50 = vpop.f32.mrf.mxu2  ;;  %v1176_v29 = vadd.f32 %v4653_v56, %v4800_v51 }
 0x2cb   : > { %1667 = vst.msk [vmem:[%s4803_s18] sm:$0xff] %vm1666_vm3, %v1617_v50  ;;  %v1439_v13 = vor.u32 1.1754944e-38, %v1438_v57  ;;  %vm1437_vm7 = vcmp.eq.f32.partialorder %v1436_v35, 8.507059e+37 }
 0x2cc   : > { %v1253_v61 = vsub.f32 0.0, %v1226_v41 }
 0x2ce   : > { %v3658_v43 = vpop.eup %3657  ;;  %v1279_v37 = vmul.f32 1.442695, %v1253_v61 }
 0x2cf   : > { %v3660_v8 = vpop.eup %3659  ;;  %v1300_v31 = vadd.f32 1.0, %v3658_v43 }
 0x2d0   : > { %3661 = vpow2.f32 %v1279_v37  ;;  %v1428_v20 = vmul.f32 %v3660_v8, %v1299_v25  ;;  %vm1433_vm4 = vweird.f32 %v3660_v8  ;;  %v1170_v25 = vadd.f32 %v4653_v56, %v4794_v24 }
 0x2d1   : > { %3663 = vrcp.f32 %v1300_v31  ;;  %v1231_v22 = vpop.f32.mrf.mxu3  ;;  %vm1434_vm6 = vmor %vm1432_vm5, %vm1433_vm4  ;;  %v1453_v30 = vand.u32 2147483648, %v1300_v31  ;;  %v1451_v26 = vand.u32 2147483647, %v1300_v31  ;;  %vm1447_vm9 = vweird.f32 %v1300_v31 }
 0x2d2   : > { %v1620_v42 = vpop.f32.mrf.mxu2  ;;  %v1429_v52 = vsub.f32 1.0, %v1428_v20  ;;  %v1232_v11 = vadd.f32 %v1231_v22, %v1167_v6 }
 0x2d3   : > { %1668 = vst.msk [vmem:[%s4803_s18 + $0x8] sm:$0xff] %vm1666_vm3, %v1620_v42  ;;  %v1454_v44 = vor.u32 1.1754944e-38, %v1453_v30  ;;  %vm1452_vm12 = vcmp.eq.f32.partialorder %v1451_v26, 8.507059e+37 }
 0x2d4   : > { %v1430_v15 = vmul.f32 %v3660_v8, %v1429_v52  ;;  %v1255_v10 = vsub.f32 0.0, %v1232_v11 }
 0x2d6   : > { %v3662_v48 = vpop.eup %3661  ;;  %v1431_v62 = vadd.f32 %v3660_v8, %v1430_v15  ;;  %v1283_v41 = vmul.f32 1.442695, %v1255_v10 }
 0x2d7   : > { %v3664_v55 = vpop.eup %3663  ;;  %v1301_v14 = vadd.f32 1.0, %v3662_v48 }
 0x2d8   : > { %v1435_v7 = vsel %vm1434_vm6, %v3660_v8, %v1431_v62  ;;  %v1443_v19 = vmul.f32 %v3664_v55, %v1300_v31  ;;  %vm1448_vm8 = vweird.f32 %v3664_v55  ;;  %v1173_v8 = vadd.f32 %v4653_v56, %v4797_v38 }
 0x2d9   : > { %3665 = vrcp.f32 %v1301_v14  ;;  %v1234_v32 = vpop.f32.mrf.mxu3  ;;  %v1440_v34 = vsel %vm1437_vm7, %v1439_v13, %v1435_v7  ;;  %vm1449_vm10 = vmor %vm1447_vm9, %vm1448_vm8  ;;  %v1468_v63 = vand.u32 2147483648, %v1301_v14  ;;  %v1466_v9 = vand.u32 2147483647, %v1301_v14 }
 0x2da   : > { %3398 = vmatmul.msk.f32.gmra.mxu2 %vm1551_vm11, %v1440_v34  ;;  %v1623_v39 = vpop.f32.mrf.mxu2  ;;  %v1444_v60 = vsub.f32 1.0, %v1443_v19  ;;  %vm1462_vm14 = vweird.f32 %v1301_v14  ;;  %v1235_v53 = vadd.f32 %v1234_v32, %v1170_v25 }
 0x2db   : > { %1669 = vst.msk [vmem:[%s4803_s18 + $0x10] sm:$0xff] %vm1666_vm3, %v1623_v39  ;;  %v1469_v28 = vor.u32 1.1754944e-38, %v1468_v63  ;;  %vm1467_vm0 = vcmp.eq.f32.partialorder %v1466_v9, 8.507059e+37 }
 0x2dc   : > { %v1445_v59 = vmul.f32 %v3664_v55, %v1444_v60  ;;  %v1256_v61 = vsub.f32 0.0, %v1235_v53 }
 0x2de   : > { %v1446_v49 = vadd.f32 %v3664_v55, %v1445_v59  ;;  %v1285_v31 = vmul.f32 1.442695, %v1256_v61 }
 0x2df   : > { %v3666_v36 = vpop.eup %3665 }
 0x2e0   : > { %v1450_v16 = vsel %vm1449_vm10, %v3664_v55, %v1446_v49  ;;  %v1458_v54 = vmul.f32 %v3666_v36, %v1301_v14  ;;  %vm1463_vm13 = vweird.f32 %v3666_v36 }
 0x2e1   : > { %v1237_v46 = vpop.f32.mrf.mxu3  ;;  %v1455_v58 = vsel %vm1452_vm12, %v1454_v44, %v1450_v16  ;;  %vm1464_vm15 = vmor %vm1462_vm14, %vm1463_vm13 }
 0x2e2   : > { %3399 = vmatmul.msk.f32.gmra.mxu2 %vm1551_vm11, %v1455_v58  ;;  %v1459_v27 = vsub.f32 1.0, %v1458_v54  ;;  %v1238_v22 = vadd.f32 %v1237_v46, %v1173_v8 }
 0x2e4   : > { %v1460_v45 = vmul.f32 %v3666_v36, %v1459_v27  ;;  %v1257_v35 = vsub.f32 0.0, %v1238_v22 }
 0x2e6   : > { %v1461_v3 = vadd.f32 %v3666_v36, %v1460_v45  ;;  %v1287_v55 = vmul.f32 1.442695, %v1257_v35 }
 0x2e8   : > { %v1465_v21 = vsel %vm1464_vm15, %v3666_v36, %v1461_v3 }
 0x2e9   : > { %v1240_v47 = vpop.f32.mrf.mxu3  ;;  %v1470_v40 = vsel %vm1467_vm0, %v1469_v28, %v1465_v21 }
 0x2ea   : > { %v1241_v33 = vadd.f32 %v1240_v47, %v1176_v29  ;;  %3400 = vmatmul.msk.f32.gmra.mxu2 %vm1551_vm11, %v1470_v40 }
 0x2ec   : > { %v1258_v23 = vsub.f32 0.0, %v1241_v33 }
 0x2ee   : > { %v1289_v50 = vmul.f32 1.442695, %v1258_v23 }
 0x2f0   : > { %3667 = vpow2.f32 %v1289_v50 }
 0x2f1   : > { %v1163_v43 = vpop.f32.mrf.mxu0  ;;  %3669 = vpow2.f32 %v1283_v41  ;;  %v1228_v37 = vpop.f32.mrf.mxu1 }
 0x2f2   : > { %v1164_v51 = vadd.f32 %v4653_v56, %v1163_v43  ;;  %3671 = vpow2.f32 %v1285_v31 }
 0x2f4   : > { %v1229_v24 = vadd.f32 %v1228_v37, %v1164_v51 }
 0x2f6   : > { %v3668_v20 = vpop.eup %3667  ;;  %v1254_v42 = vsub.f32 0.0, %v1229_v24 }
 0x2f7   : > { %v1306_v52 = vadd.f32 1.0, %v3668_v20  ;;  %v3670_v57 = vpop.eup %3669 }
 0x2f8   : > { %v1281_v15 = vmul.f32 1.442695, %v1254_v42  ;;  %v4823_v48 = vadd.f32 1.0, %v3670_v57  ;;  %v3672_v62 = vpop.eup %3671 }
 0x2f9   : > { %3673 = vrcp.f32 %v1306_v52  ;;  %v4826_v19 = vadd.f32 1.0, %v3672_v62  ;;  %v1543_v32 = vand.u32 2147483648, %v1306_v52  ;;  %v1541_v39 = vand.u32 2147483647, %v1306_v52 }
 0x2fa   : > { %3675 = vpow2.f32 %v1281_v15  ;;  %vm1537_vm2 = vweird.f32 %v1306_v52  ;;  %v1498_v23 = vand.u32 2147483648, %v4823_v48  ;;  %vm1492_vm12 = vweird.f32 %v4823_v48 }
 0x2fb   : > { %3677 = vrcp.f32 %v4823_v48  ;;  %v1544_v59 = vor.u32 1.1754944e-38, %v1543_v32  ;;  %vm1542_vm5 = vcmp.eq.f32.partialorder %v1541_v39, 8.507059e+37  ;;  %v1496_v41 = vand.u32 2147483647, %v4823_v48 }
 0x2fc   : > { %3679 = vpow2.f32 %v1287_v55  ;;  %v1499_v51 = vor.u32 1.1754944e-38, %v1498_v23  ;;  %v1513_v20 = vand.u32 2147483648, %v4826_v19  ;;  %vm1507_vm0 = vweird.f32 %v4826_v19 }
 0x2fd   : > { %vm1497_vm14 = vcmp.eq.f32.partialorder %v1496_v41, 8.507059e+37  ;;  %v1511_v22 = vand.u32 2147483647, %v4826_v19 }
 0x2fe   : > { %v1514_v57 = vor.u32 1.1754944e-38, %v1513_v20 }
 0x2ff   : > { %v3674_v14 = vpop.eup %3673 }
 0x300   : > { %v3676_v56 = vpop.eup %3675  ;;  %v1533_v38 = vmul.f32 %v3674_v14, %v1306_v52  ;;  %vm1538_vm1 = vweird.f32 %v3674_v14 }
 0x301   : > { %v1302_v13 = vadd.f32 1.0, %v3676_v56  ;;  %v3678_v60 = vpop.eup %3677  ;;  %vm1539_vm4 = vmor %vm1537_vm2, %vm1538_vm1  ;;  %vm1512_vm2 = vcmp.eq.f32.partialorder %v1511_v22, 8.507059e+37 }
 0x302   : > { %v1534_v7 = vsub.f32 1.0, %v1533_v38  ;;  %v3680_v26 = vpop.eup %3679  ;;  %v1488_v36 = vmul.f32 %v3678_v60, %v4823_v48  ;;  %vm1493_vm10 = vweird.f32 %v3678_v60 }
 0x303   : > { %3681 = vrcp.f32 %v1302_v13  ;;  %v4831_v46 = vadd.f32 1.0, %v3680_v26  ;;  %v1483_v45 = vand.u32 2147483648, %v1302_v13  ;;  %v1481_v11 = vand.u32 2147483647, %v1302_v13  ;;  %vm1494_vm13 = vmor %vm1492_vm12, %vm1493_vm10 }
 0x304   : > { %v1535_v34 = vmul.f32 %v3674_v14, %v1534_v7  ;;  %3683 = vrcp.f32 %v4826_v19  ;;  %v1489_v27 = vsub.f32 1.0, %v1488_v36  ;;  %vm1477_vm7 = vweird.f32 %v1302_v13 }
 0x305   : > { %3685 = vrcp.f32 %v4831_v46  ;;  %v1484_v21 = vor.u32 1.1754944e-38, %v1483_v45  ;;  %vm1482_vm9 = vcmp.eq.f32.partialorder %v1481_v11, 8.507059e+37  ;;  %v1528_v62 = vand.u32 2147483648, %v4831_v46 }
 0x306   : > { %v1536_v30 = vadd.f32 %v3674_v14, %v1535_v34  ;;  %v1490_v28 = vmul.f32 %v3678_v60, %v1489_v27  ;;  %v1526_v55 = vand.u32 2147483647, %v4831_v46 }
 0x307   : > { %v1529_v56 = vor.u32 1.1754944e-38, %v1528_v62 }
 0x308   : > { %v1540_v49 = vsel %vm1539_vm4, %v3674_v14, %v1536_v30  ;;  %v1491_v25 = vadd.f32 %v3678_v60, %v1490_v28 }
 0x309   : > { %v3682_v44 = vpop.eup %3681  ;;  %v1545_v16 = vsel %vm1542_vm5, %v1544_v59, %v1540_v49  ;;  %vm1522_vm5 = vweird.f32 %v4831_v46 }
 0x30a   : > { %3405 = vmatmul.msk.f32.vlgmr.msra.gmra.mxu3 %vm1551_vm11, %v1545_v16  ;;  %v1473_v54 = vmul.f32 %v3682_v44, %v1302_v13  ;;  %v3684_v63 = vpop.eup %3683  ;;  %vm1478_vm6 = vweird.f32 %v3682_v44  ;;  %v1495_v50 = vsel %vm1494_vm13, %v3678_v60, %v1491_v25 }
 0x30b   : > { %v1503_v29 = vmul.f32 %v3684_v63, %v4826_v19  ;;  %vm1479_vm8 = vmor %vm1477_vm7, %vm1478_vm6  ;;  %v3686_v33 = vpop.eup %3685  ;;  %v1500_v37 = vsel %vm1497_vm14, %v1499_v51, %v1495_v50  ;;  %vm1508_vm15 = vweird.f32 %v3684_v63  ;;  %vm1527_vm7 = vcmp.eq.f32.partialorder %v1526_v55, 8.507059e+37 }
 0x30c   : > { %v1474_v58 = vsub.f32 1.0, %v1473_v54  ;;  %v1518_v43 = vmul.f32 %v3686_v33, %v4831_v46  ;;  %vm1509_vm1 = vmor %vm1507_vm0, %vm1508_vm15  ;;  %vm1523_vm4 = vweird.f32 %v3686_v33 }
 0x30d   : > { %v1626_v6 = vpop.f32.mrf.mxu2  ;;  %v1504_v10 = vsub.f32 1.0, %v1503_v29  ;;  %vm1524_vm6 = vmor %vm1522_vm5, %vm1523_vm4 }
 0x30e   : > { %1670 = vst.msk [vmem:[%s4803_s18 + $0x18] sm:$0xff] %vm1666_vm3, %v1626_v6  ;;  %v1475_v9 = vmul.f32 %v3682_v44, %v1474_v58  ;;  %v1519_v31 = vsub.f32 1.0, %v1518_v43 }
 0x30f   : > { %v1505_v61 = vmul.f32 %v3684_v63, %v1504_v10 }
 0x310   : > { %v1476_v3 = vadd.f32 %v3682_v44, %v1475_v9  ;;  %v1520_v52 = vmul.f32 %v3686_v33, %v1519_v31 }
 0x311   : > { %v1506_v8 = vadd.f32 %v3684_v63, %v1505_v61 }
 0x312   : > { %v1480_v47 = vsel %vm1479_vm8, %v3682_v44, %v1476_v3  ;;  %v1521_v35 = vadd.f32 %v3686_v33, %v1520_v52 }
 0x313   : > { %v1485_v40 = vsel %vm1482_vm9, %v1484_v21, %v1480_v47  ;;  %v1510_v42 = vsel %vm1509_vm1, %v3684_v63, %v1506_v8 }
 0x314   : > { %3401 = vmatmul.msk.f32.gmra.mxu2 %vm1551_vm11, %v1485_v40  ;;  %v1515_v15 = vsel %vm1512_vm2, %v1514_v57, %v1510_v42  ;;  %v1525_v14 = vsel %vm1524_vm6, %v3686_v33, %v1521_v35 }
 0x315   : > { %v1629_v53 = vpop.f32.mrf.mxu2  ;;  %v1530_v38 = vsel %vm1527_vm7, %v1529_v56, %v1525_v14 }
 0x316   : > { %1671 = vst.msk [vmem:[%s4803_s18 + $0x20] sm:$0xff] %vm1666_vm3, %v1629_v53 }
 0x31c   : > { %3402 = vmatmul.msk.f32.gmra.mxu2 %vm1551_vm11, %v1500_v37 }
 0x31d   : > { %v1632_v24 = vpop.f32.mrf.mxu2 }
 0x31e   : > { %1672 = vst.msk [vmem:[%s4803_s18 + $0x28] sm:$0xff] %vm1666_vm3, %v1632_v24 }
 0x324   : > { %3403 = vmatmul.msk.f32.gmra.mxu2 %vm1551_vm11, %v1515_v15 }
 0x325   : > { %v1635_v48 = vpop.f32.mrf.mxu2 }
 0x326   : > { %1673 = vst.msk [vmem:[%s4803_s18 + $0x30] sm:$0xff] %vm1666_vm3, %v1635_v48 }
 0x32c   : > { %3404 = vmatmul.msk.f32.gmra.mxu2 %vm1551_vm11, %v1530_v38 }
 0x32d   : > { %v1638_v13 = vpop.f32.mrf.mxu2 }
 0x32e   : > { %1674 = vst.msk [vmem:[%s4803_s18 + $0x38] sm:$0xff] %vm1666_vm3, %v1638_v13 }
 0x35d   : > { %v1641_v7 = vpop.f32.mrf.mxu2 }
 0x35e   : > { %1675 = vst.msk [vmem:[%s4803_s18 + $0x40] sm:$0xff] %vm1666_vm3, %v1641_v7 }
 0x365   : > { %v1644_v19 = vpop.f32.mrf.mxu2 }
 0x366   : > { %1676 = vst.msk [vmem:[%s4803_s18 + $0x48] sm:$0xff] %vm1666_vm3, %v1644_v19 }
 0x36d   : > { %v1647_v32 = vpop.f32.mrf.mxu2 }
 0x36e   : > { %1677 = vst.msk [vmem:[%s4803_s18 + $0x50] sm:$0xff] %vm1666_vm3, %v1647_v32 }
 0x38d   : > { %v1662_v34 = vpop.f32.mrf.mxu3 }
 0x38e   : > { %1682 = vst.msk [vmem:[%s4803_s18 + $0x78] sm:$0xff] %vm1666_vm3, %v1662_v34 }
 0x397   : > { %v1650_v39 = vpop.f32.mrf.mxu2 }
 0x398   : > { %1678 = vst.msk [vmem:[%s4803_s18 + $0x58] sm:$0xff] %vm1666_vm3, %v1650_v39 }
 0x39f   : > { %v1653_v60 = vpop.f32.mrf.mxu2 }
 0x3a0   : > { %1679 = vst.msk [vmem:[%s4803_s18 + $0x60] sm:$0xff] %vm1666_vm3, %v1653_v60 }
 0x3a7   : > { %v1656_v30 = vpop.f32.mrf.mxu2 }
 0x3a8   : > { %1680 = vst.msk [vmem:[%s4803_s18 + $0x68] sm:$0xff] %vm1666_vm3, %v1656_v30 }
 0x3af   : > { %v1659_v59 = vpop.f32.mrf.mxu2 }
 0x3b0   : > { %1681 = vst.msk [vmem:[%s4803_s18 + $0x70] sm:$0xff] %vm1666_vm3, %v1659_v59 }
 0x3b1 PF: > { %p3406_p8 = scmp.ne.s32.totalorder %s3909_s28, 1 }
 0x3b2   : > { %s3924_s19 = smov (!%p3406_p8), 96   ;;  %s4982_s28 = scalar_lea.vmem (!%p3406_p8), [#allocation2], %s4006_s14 }
 0x3b3   : > { %1686 = sbr.rel (%p3406_p8) target bundleno = 2092 (0x82c), region = 60  ;;  %s3926_s22 = smov (!%p3406_p8), 112  }
 0x3b4   : > { %s5717_s26 = scalar_lea.vmem (!%p3406_p8), %s5822_s6, %s4006_s14  ;;  %s3927_s14 = smov (!%p3406_p8), 32  }
 0x3b8   : > { %v4876_v26 = vld [vmem:[#allocation2 + $0x10] sm:$0xff]  ;;  %v4878_v49 = vld [vmem:[#allocation2] sm:$0xff]  ;;  %v4880_v36 = vld [vmem:[#allocation2 + $0x8] sm:$0xff]  ;;  %v3925_v47 = vmov 33  }
 0x3b9   : > { %1755 = vrot.lane.b32.xlu2 %v4876_v26, %s3924_s19  ;;  %1751 = vrot.lane.b32.xlu0 %v4878_v49, %s3924_s19  ;;  %v4888_v44 = vld [vmem:[#allocation2 + $0x90] sm:$0xff]  ;;  %v4890_v16 = vld [vmem:[#allocation2 + $0x80] sm:$0xff]  ;;  %v4892_v54 = vld [vmem:[#allocation2 + $0x88] sm:$0xff] }
 0x3ba   : > { %1753 = vrot.lane.b32.xlu1 %v4880_v36, %s3924_s19  ;;  %v4900_v46 = vld [vmem:[#allocation2 + $0x20] sm:$0xff]  ;;  %v4902_v58 = vld [vmem:[#allocation2 + $0x18] sm:$0xff]  ;;  %v4912_v63 = vld [vmem:[#allocation2 + $0xa8] sm:$0xff]  ;;  %3687 = vset.pattern.permute.xlu2 %v3925_v47 }
 0x3bb   : > { %v4904_v27 = vld [vmem:[#allocation2 + $0x98] sm:$0xff]  ;;  %v4914_v6 = vld [vmem:[#allocation2 + $0xa0] sm:$0xff]  ;;  %v4916_v45 = vld [vmem:[#allocation2 + $0x28] sm:$0xff]  ;;  %3688 = vset.pattern.permute.xlu0 %v3925_v47  ;;  %3689 = vset.pattern.permute.xlu1 %v3925_v47 }
 0x3bc   : > { %v4924_v9 = vld [vmem:[#allocation2 + $0x38] sm:$0xff]  ;;  %v4926_v11 = vld [vmem:[#allocation2 + $0x30] sm:$0xff]  ;;  %v4936_v28 = vld [vmem:[#allocation2 + $0xc0] sm:$0xff] }
 0x3bd   : > { %v4928_v3 = vld [vmem:[#allocation2 + $0xb0] sm:$0xff]  ;;  %v4938_v29 = vld [vmem:[#allocation2 + $0xb8] sm:$0xff]  ;;  %v1695_v21 = vld [vmem:[#allocation2 + $0x40] sm:$0xff] }
 0x3be   : > { %v1697_v40 = vld [vmem:[#allocation2 + $0x50] sm:$0xff]  ;;  %v1696_v25 = vld [vmem:[#allocation2 + $0x48] sm:$0xff]  ;;  %v4947_v33 = vld [vmem:[#allocation2 + $0x78] sm:$0xff] }
 0x3bf   : > { %v1712_v10 = vld [vmem:[#allocation2 + $0xc8] sm:$0xff]  ;;  %v4950_v53 = vld [vmem:[#allocation2 + $0xf8] sm:$0xff]  ;;  %3446 = vmatpush.msra.mxu2 %v4947_v33  ;;  %v1701_v23 = vld [vmem:[#allocation2 + $0x70] sm:$0xff]  ;;  %2606 = vmatpush.msra.mxu0 %v4947_v33 }
 0x3c0   : > { %3462 = vmatpush.msra.mxu3 %v4950_v53  ;;  %v1717_v41 = vld [vmem:[#allocation2 + $0xf0] sm:$0xff]  ;;  %2671 = vmatpush.msra.mxu1 %v4950_v53  ;;  %v1700_v50 = vld [vmem:[#allocation2 + $0x68] sm:$0xff]  ;;  %v1714_v61 = vld [vmem:[#allocation2 + $0xd8] sm:$0xff] }
 0x3c1   : > { %1787 = vrot.lane.b32.xlu2 %v4888_v44, %s3924_s19  ;;  %1783 = vrot.lane.b32.xlu0 %v4890_v16, %s3924_s19  ;;  %v1713_v43 = vld [vmem:[#allocation2 + $0xd0] sm:$0xff]  ;;  %v1716_v51 = vld [vmem:[#allocation2 + $0xe8] sm:$0xff]  ;;  %v1698_v37 = vld [vmem:[#allocation2 + $0x58] sm:$0xff] }
 0x3c2   : > { %1785 = vrot.lane.b32.xlu1 %v4892_v54, %s3924_s19  ;;  %3447 = vmatpush.msra.mxu2 %v1701_v23  ;;  %v1699_v8 = vld [vmem:[#allocation2 + $0x60] sm:$0xff]  ;;  %v1913_v20 = vld [vmem:[%s4982_s28 + $0x8] sm:$0xff]  ;;  %v1922_v52 = vld [vmem:[%s4982_s28 + $0x50] sm:$0xff] }
 0x3c3   : > { %3463 = vmatpush.msra.mxu3 %v1717_v41  ;;  %2607 = vmatpush.msra.mxu0 %v1701_v23  ;;  %v1715_v31 = vld [vmem:[#allocation2 + $0xe0] sm:$0xff]  ;;  %v1921_v42 = vld [vmem:[%s4982_s28 + $0x48] sm:$0xff]  ;;  %v1914_v57 = vld [vmem:[%s4982_s28 + $0x10] sm:$0xff] }
 0x3c4   : > { %3448 = vmatpush.msra.mxu2 %v1700_v50  ;;  %2672 = vmatpush.msra.mxu1 %v1717_v41  ;;  %v1920_v24 = vld [vmem:[%s4982_s28 + $0x40] sm:$0xff]  ;;  %v1923_v15 = vld [vmem:[%s4982_s28 + $0x58] sm:$0xff]  ;;  %v1925_v19 = vld [vmem:[%s4982_s28 + $0x68] sm:$0xff] }
 0x3c5   : > { %3464 = vmatpush.msra.mxu3 %v1716_v51  ;;  %2608 = vmatpush.msra.mxu0 %v1700_v50  ;;  %v1912_v22 = vld [vmem:[%s4982_s28] sm:$0xff]  ;;  %v1915_v62 = vld [vmem:[%s4982_s28 + $0x18] sm:$0xff]  ;;  %v1917_v39 = vld [vmem:[%s4982_s28 + $0x28] sm:$0xff] }
 0x3c6   : > { %3449 = vmatpush.msra.mxu2 %v1699_v8  ;;  %2673 = vmatpush.msra.mxu1 %v1716_v51  ;;  %v1924_v14 = vld [vmem:[%s4982_s28 + $0x60] sm:$0xff]  ;;  %v1926_v59 = vld [vmem:[%s4982_s28 + $0x70] sm:$0xff] }
 0x3c7   : > { %3465 = vmatpush.msra.mxu3 %v1715_v31  ;;  %2609 = vmatpush.msra.mxu0 %v1699_v8  ;;  %v1916_v13 = vld [vmem:[%s4982_s28 + $0x20] sm:$0xff] }
 0x3c8   : > { %3450 = vmatpush.msra.mxu2 %v1698_v37  ;;  %2674 = vmatpush.msra.mxu1 %v1715_v31 }
 0x3c9   : > { %1759 = vrot.lane.b32.xlu2 %v4900_v46, %s3924_s19  ;;  %1757 = vrot.lane.b32.xlu0 %v4902_v58, %s3924_s19 }
 0x3ca   : > { %1789 = vrot.lane.b32.xlu1 %v4904_v27, %s3924_s19  ;;  %3466 = vmatpush.msra.mxu3 %v1714_v61 }
 0x3cb   : > { %3451 = vmatpush.msra.mxu2 %v1697_v40  ;;  %2610 = vmatpush.msra.mxu0 %v1698_v37 }
 0x3cc   : > { %3467 = vmatpush.msra.mxu3 %v1713_v43  ;;  %2675 = vmatpush.msra.mxu1 %v1714_v61 }
 0x3cd   : > { %3452 = vmatpush.msra.mxu2 %v1696_v25  ;;  %2611 = vmatpush.msra.mxu0 %v1697_v40 }
 0x3ce   : > { %3468 = vmatpush.msra.mxu3 %v1712_v10  ;;  %2676 = vmatpush.msra.mxu1 %v1713_v43 }
 0x3cf   : > { %3453 = vmatpush.msra.mxu2 %v1695_v21  ;;  %2612 = vmatpush.msra.mxu0 %v1696_v25 }
 0x3d0   : > { %3469 = vmatpush.msra.mxu3 %v4936_v28  ;;  %2677 = vmatpush.msra.mxu1 %v1712_v10 }
 0x3d1   : > { %1793 = vrot.lane.b32.xlu2 %v4912_v63, %s3924_s19  ;;  %1791 = vrot.lane.b32.xlu0 %v4914_v6, %s3924_s19 }
 0x3d2   : > { %1761 = vrot.lane.b32.xlu1 %v4916_v45, %s3924_s19  ;;  %3454 = vmatpush.msra.mxu2 %v4924_v9 }
 0x3d3   : > { %3470 = vmatpush.msra.mxu3 %v4938_v29  ;;  %2613 = vmatpush.msra.mxu0 %v1695_v21 }
 0x3d4   : > { %3455 = vmatpush.msra.mxu2 %v4926_v11  ;;  %2678 = vmatpush.msra.mxu1 %v4936_v28 }
 0x3d5   : > { %3471 = vmatpush.msra.mxu3 %v4928_v3  ;;  %2614 = vmatpush.msra.mxu0 %v4924_v9 }
 0x3d6   : > { %3456 = vmatpush.msra.mxu2 %v4916_v45  ;;  %2679 = vmatpush.msra.mxu1 %v4938_v29 }
 0x3d7   : > { %3472 = vmatpush.msra.mxu3 %v4912_v63  ;;  %2615 = vmatpush.msra.mxu0 %v4926_v11 }
 0x3d8   : > { %3457 = vmatpush.msra.mxu2 %v4900_v46  ;;  %2680 = vmatpush.msra.mxu1 %v4928_v3 }
 0x3d9   : > { %1765 = vrot.lane.b32.xlu2 %v4924_v9, %s3924_s19  ;;  %1763 = vrot.lane.b32.xlu0 %v4926_v11, %s3924_s19 }
 0x3da   : > { %1795 = vrot.lane.b32.xlu1 %v4928_v3, %s3924_s19  ;;  %3473 = vmatpush.msra.mxu3 %v4914_v6 }
 0x3db   : > { %3458 = vmatpush.msra.mxu2 %v4902_v58  ;;  %2616 = vmatpush.msra.mxu0 %v4916_v45 }
 0x3dc   : > { %3474 = vmatpush.msra.mxu3 %v4904_v27  ;;  %2681 = vmatpush.msra.mxu1 %v4912_v63 }
 0x3dd   : > { %3459 = vmatpush.msra.mxu2 %v4876_v26  ;;  %2617 = vmatpush.msra.mxu0 %v4900_v46 }
 0x3de   : > { %3475 = vmatpush.msra.mxu3 %v4888_v44  ;;  %2682 = vmatpush.msra.mxu1 %v4914_v6 }
 0x3df   : > { %3460 = vmatpush.msra.mxu2 %v4880_v36  ;;  %2618 = vmatpush.msra.mxu0 %v4902_v58 }
 0x3e0   : > { %3476 = vmatpush.msra.mxu3 %v4892_v54  ;;  %2683 = vmatpush.msra.mxu1 %v4904_v27 }
 0x3e1   : > { %1799 = vrot.lane.b32.xlu2 %v4936_v28, %s3924_s19  ;;  %1797 = vrot.lane.b32.xlu0 %v4938_v29, %s3924_s19 }
 0x3e2   : > { %1767 = vrot.lane.b32.xlu1 %v1695_v21, %s3924_s19  ;;  %3461 = vmatpush.msra.mxu2 %v4878_v49 }
 0x3e3   : > { %3477 = vmatpush.msra.mxu3 %v4890_v16  ;;  %2619 = vmatpush.msra.mxu0 %v4876_v26 }
 0x3e4   : > { %2684 = vmatpush.msra.mxu1 %v4888_v44 }
 0x3e5   : > { %2620 = vmatpush.msra.mxu0 %v4880_v36  ;;  %v1918_v36 = vld [vmem:[%s4982_s28 + $0x30] sm:$0xff] }
 0x3e6   : > { %2685 = vmatpush.msra.mxu1 %v4892_v54 }
 0x3e7   : > { %2621 = vmatpush.msra.mxu0 %v4878_v49 }
 0x3e8   : > { %2686 = vmatpush.msra.mxu1 %v4890_v16 }
 0x3e9   : > { %1771 = vrot.lane.b32.xlu2 %v1697_v40, %s3924_s19  ;;  %1769 = vrot.lane.b32.xlu0 %v1696_v25, %s3924_s19 }
 0x3ea   : > { %1801 = vrot.lane.b32.xlu1 %v1712_v10, %s3924_s19 }
 0x3f1   : > { %1805 = vrot.lane.b32.xlu2 %v1714_v61, %s3924_s19  ;;  %1803 = vrot.lane.b32.xlu0 %v1713_v43, %s3924_s19 }
 0x3f2   : > { %1773 = vrot.lane.b32.xlu1 %v1698_v37, %s3924_s19 }
 0x3f9   : > { %1777 = vrot.lane.b32.xlu2 %v1700_v50, %s3924_s19  ;;  %1775 = vrot.lane.b32.xlu0 %v1699_v8, %s3924_s19 }
 0x3fa   : > { %1807 = vrot.lane.b32.xlu1 %v1715_v31, %s3924_s19 }
 0x401   : > { %1811 = vrot.lane.b32.xlu2 %v1717_v41, %s3924_s19  ;;  %1809 = vrot.lane.b32.xlu0 %v1716_v51, %s3924_s19 }
 0x402   : > { %1779 = vrot.lane.b32.xlu1 %v1701_v23, %s3924_s19 }
 0x409   : > { %1971 = vperm.xlu2 %3687, %v1920_v24   ;;  %1781 = vrot.lane.b32.xlu0 %v4947_v33, %s3924_s19 }
 0x40a   : > { %1813 = vrot.lane.b32.xlu1 %v4950_v53, %s3924_s19 }
 0x411   : > { %1936 = vperm.xlu2 %3687, %v1913_v20   ;;  %1931 = vperm.xlu0 %3688, %v1912_v22  }
 0x412   : > { %1976 = vperm.xlu1 %3689, %v1921_v42  }
 0x413   : > { %v1756_v56 = vpop.permute.xlu2 %1755 }
 0x41a   : > { %1981 = vperm.xlu1 %3689, %v1922_v52  }
 0x41b   : > { %v1788_v7 = vpop.permute.xlu2 %1787 }
 0x422   : > { %1941 = vperm.xlu1 %3689, %v1914_v57  }
 0x423   : > { %v1760_v60 = vpop.permute.xlu2 %1759 }
 0x42a   : > { %1986 = vperm.xlu1 %3689, %v1923_v15  }
 0x42b   : > { %v1752_v35 = vpop.permute.xlu0 %1751  ;;  %v1794_v49 = vpop.permute.xlu2 %1793 }
 0x42c   : > { %v1754_v48 = vpop.permute.xlu1 %1753 }
 0x432   : > { %1946 = vperm.xlu1 %3689, %v1915_v62   ;;  %v5889_v62 = vunpack.c.l.bf16 %v4042_v12 }
 0x433   : > { %v1784_v55 = vpop.permute.xlu0 %1783  ;;  %v1766_v54 = vpop.permute.xlu2 %1765 }
 0x434   : > { %1879 = vxpose.xlu0.b32.start [1/16] (narrow) %v1784_v55, 8  ;;  %v1786_v38 = vpop.permute.xlu1 %1785 }
 0x437   : > { %1847 = vxpose.xlu2.b32.start [1/16] (narrow) %v1752_v35, 8 }
 0x43a   : > { %1991 = vperm.xlu1 %3689, %v1924_v14   ;;  %v5890_v14 = vunpack.c.h.bf16 %v4042_v12 }
 0x43b   : > { %v1758_v32 = vpop.permute.xlu0 %1757  ;;  %v1800_v27 = vpop.permute.xlu2 %1799 }
 0x43c   : > { %1880 = vxpose.xlu0.b32.cont [2/16] (narrow) %v1786_v38, 8  ;;  %v1790_v34 = vpop.permute.xlu1 %1789 }
 0x43f   : > { %1848 = vxpose.xlu2.b32.cont [2/16] (narrow) %v1754_v48, 8 }
 0x442   : > { %1951 = vperm.xlu1 %3689, %v1916_v13  }
 0x443   : > { %v1792_v30 = vpop.permute.xlu0 %1791  ;;  %v1772_v45 = vpop.permute.xlu2 %1771 }
 0x444   : > { %1881 = vxpose.xlu0.b32.cont [3/16] (narrow) %v1788_v7, 8  ;;  %v1762_v26 = vpop.permute.xlu1 %1761 }
 0x447   : > { %1849 = vxpose.xlu2.b32.cont [3/16] (narrow) %v1756_v56, 8 }
 0x44a   : > { %1996 = vperm.xlu1 %3689, %v1925_v19  }
 0x44b   : > { %v1764_v44 = vpop.permute.xlu0 %1763  ;;  %v1806_v3 = vpop.permute.xlu2 %1805 }
 0x44c   : > { %1882 = vxpose.xlu0.b32.cont [4/16] (narrow) %v1790_v34, 8  ;;  %v1796_v16 = vpop.permute.xlu1 %1795  ;;  %v5891_v34 = vunpack.c.h.bf16 %v4014_v0 }
 0x44f   : > { %1850 = vxpose.xlu2.b32.cont [4/16] (narrow) %v1758_v32, 8 }
 0x452   : > { %1956 = vperm.xlu1 %3689, %v1917_v39  }
 0x453   : > { %v1798_v46 = vpop.permute.xlu0 %1797  ;;  %v1778_v21 = vpop.permute.xlu2 %1777 }
 0x454   : > { %1883 = vxpose.xlu0.b32.cont [5/16] (narrow) %v1792_v30, 8  ;;  %v1768_v58 = vpop.permute.xlu1 %1767 }
 0x457   : > { %1851 = vxpose.xlu2.b32.cont [5/16] (narrow) %v1760_v60, 8  ;;  %v5892_v60 = vunpack.c.l.bf16 %v4014_v0 }
 0x45a   : > { %2001 = vperm.xlu1 %3689, %v1926_v59  }
 0x45b   : > { %v1770_v63 = vpop.permute.xlu0 %1769  ;;  %v1812_v25 = vpop.permute.xlu2 %1811 }
 0x45c   : > { %1884 = vxpose.xlu0.b32.cont [6/16] (narrow) %v1794_v49, 8  ;;  %v1802_v6 = vpop.permute.xlu1 %1801  ;;  %v1919_v49 = vld [vmem:[%s4982_s28 + $0x38] sm:$0xff] }
 0x45f   : > { %1852 = vxpose.xlu2.b32.cont [6/16] (narrow) %v1762_v26, 8 }
 0x462   : > { %1961 = vperm.xlu1 %3689, %v1918_v36  }
 0x463   : > { %v1804_v9 = vpop.permute.xlu0 %1803  ;;  %v1972_v53 = vpop.permute.xlu2 %1971 }
 0x464   : > { %1885 = vxpose.xlu0.b32.cont [7/16] (narrow) %v1796_v16, 8  ;;  %v1774_v11 = vpop.permute.xlu1 %1773 }
 0x467   : > { %1853 = vxpose.xlu2.b32.cont [7/16] (narrow) %v1764_v44, 8 }
 0x46b   : > { %v1776_v28 = vpop.permute.xlu0 %1775  ;;  %v1937_v23 = vpop.permute.xlu2 %1936 }
 0x46c   : > { %1886 = vxpose.xlu0.b32.cont [8/16] (narrow) %v1798_v46, 8  ;;  %v1808_v29 = vpop.permute.xlu1 %1807 }
 0x46f   : > { %1854 = vxpose.xlu2.b32.cont [8/16] (narrow) %v1766_v54, 8 }
 0x473   : > { %v1810_v47 = vpop.permute.xlu0 %1809 }
 0x474   : > { %1887 = vxpose.xlu0.b32.cont [9/16] (narrow) %v1800_v27, 8  ;;  %v1780_v40 = vpop.permute.xlu1 %1779 }
 0x477   : > { %1855 = vxpose.xlu2.b32.cont [9/16] (narrow) %v1768_v58, 8 }
 0x47b   : > { %v1782_v33 = vpop.permute.xlu0 %1781 }
 0x47c   : > { %1888 = vxpose.xlu0.b32.cont [10/16] (narrow) %v1802_v6, 8  ;;  %v1814_v10 = vpop.permute.xlu1 %1813 }
 0x47f   : > { %1856 = vxpose.xlu2.b32.cont [10/16] (narrow) %v1770_v63, 8 }
 0x483   : > { %v1932_v50 = vpop.permute.xlu0 %1931 }
 0x484   : > { %1889 = vxpose.xlu0.b32.cont [11/16] (narrow) %v1804_v9, 8  ;;  %v1977_v41 = vpop.permute.xlu1 %1976  ;;  %v5893_v9 = vunpack.c.l.bf16 %v4054_v17 }
 0x487   : > { %1857 = vxpose.xlu2.b32.cont [11/16] (narrow) %v1772_v45, 8  ;;  %v1927_v45 = vld [vmem:[%s4982_s28 + $0x78] sm:$0xff] }
 0x48c   : > { %1890 = vxpose.xlu0.b32.cont [12/16] (narrow) %v1806_v3, 8  ;;  %v5022_v51 = vpop.permute.xlu1 %1981  ;;  %v5894_v3 = vunpack.c.h.bf16 %v4054_v17  ;;  %v5895_v17 = vunpack.c.l.bf16 %v4026_v4 }
 0x48f   : > { %1858 = vxpose.xlu2.b32.cont [12/16] (narrow) %v1774_v11, 8 }
 0x494   : > { %1891 = vxpose.xlu0.b32.cont [13/16] (narrow) %v1808_v29, 8  ;;  %v5029_v42 = vpop.permute.xlu1 %1941 }
 0x497   : > { %1859 = vxpose.xlu2.b32.cont [13/16] (narrow) %v1776_v28, 8 }
 0x49c   : > { %1892 = vxpose.xlu0.b32.cont [14/16] (narrow) %v1810_v47, 8  ;;  %v1987_v32 = vpop.permute.xlu1 %1986 }
 0x49f   : > { %1860 = vxpose.xlu2.b32.cont [14/16] (narrow) %v1778_v21, 8 }
 0x4a4   : > { %1893 = vxpose.xlu0.b32.cont [15/16] (narrow) %v1812_v25, 8  ;;  %v5052_v59 = vpop.permute.xlu1 %1946 }
 0x4a7   : > { %1861 = vxpose.xlu2.b32.cont [15/16] (narrow) %v1780_v40, 8 }
 0x4ac   : > { %1894 = vxpose.xlu0.b32.end [16/16] (narrow) %v1814_v10, 8  ;;  %v5054_v26 = vpop.permute.xlu1 %1991 }
 0x4af   : > { %1862 = vxpose.xlu2.b32.end [16/16] (narrow) %v1782_v33, 8 }
 0x4b4   : > { %v1952_v36 = vpop.permute.xlu1 %1951 }
 0x4bc   : > { %v5059_v54 = vpop.permute.xlu1 %1996 }
 0x4c4   : > { %v1957_v47 = vpop.permute.xlu1 %1956 }
 0x4d0   : > { %v1863_v61 = vpop.trf.xlu2 }
 0x4d1   : > { %v5020_v43 = vperm.slane %v1863_v61, 0  ;;  %v5896_v61 = vunpack.c.h.bf16 %v4026_v4 }
 0x4d3   : > { %v2027_v37 = vadd.f32 %v5020_v43, %v1972_v53  ;;  %v2011_v15 = vadd.f32 %v5020_v43, %v1932_v50  ;;  %v2029_v44 = vadd.f32 %v5020_v43, %v1977_v41  ;;  %v2019_v63 = vadd.f32 %v5020_v43, %v1952_v36 }
 0x4d4   : > { %v2021_v40 = vadd.f32 %v5020_v43, %v1957_v47 }
 0x4d5   : > { %v2059_v24 = vmul.f32 0.2, %v2027_v37  ;;  %v2043_v38 = vmul.f32 0.2, %v2011_v15  ;;  %v2061_v0 = vmul.f32 0.2, %v2029_v44 }
 0x4d6   : > { %v2051_v29 = vmul.f32 0.2, %v2019_v63 }
 0x4d7   : > { %v2091_v57 = vmax.f32 %v2027_v37, %v2059_v24  ;;  %v2075_v19 = vmax.f32 %v2011_v15, %v2043_v38  ;;  %v2093_v58 = vmax.f32 %v2029_v44, %v2061_v0 }
 0x4d8   : > { %v1895_v8 = vpop.trf.xlu0  ;;  %v2083_v10 = vmax.f32 %v2019_v63, %v2051_v29 }
 0x4d9   : > { %v5025_v31 = vperm.slane %v1895_v8, 0  ;;  %v5034_v55 = vadd.f32 %v2091_v57, %v5889_v62  ;;  %v5048_v30 = vadd.f32 %v2075_v19, %v5892_v60  ;;  %v5066_v11 = vadd.f32 %v2093_v58, %v5893_v9 }
 0x4da   : > { %v2053_v8 = vmul.f32 0.2, %v2021_v40  ;;  %v2031_v62 = vadd.f32 %v5020_v43, %v5022_v51  ;;  %v5899_v19 = vunpack.c.h.bf16 %v4017_v1  ;;  %v2033_v58 = vadd.f32 %v5020_v43, %v1987_v32 }
 0x4db   : > { %v2028_v20 = vadd.f32 %v5025_v31, %v1972_v53  ;;  %v2012_v22 = vadd.f32 %v5025_v31, %v1932_v50  ;;  %v2030_v16 = vadd.f32 %v5025_v31, %v1977_v41  ;;  %v2020_v6 = vadd.f32 %v5025_v31, %v1952_v36 }
 0x4dc   : > { %v2022_v53 = vadd.f32 %v5025_v31, %v1957_v47  ;;  %v2014_v41 = vadd.f32 %v5025_v31, %v1937_v23  ;;  %v5079_v50 = vadd.f32 %v2083_v10, %v5895_v17  ;;  %v2085_v57 = vmax.f32 %v2021_v40, %v2053_v8 }
 0x4dd   : > { %v2060_v52 = vmul.f32 0.2, %v2028_v20  ;;  %v2044_v48 = vmul.f32 0.2, %v2012_v22  ;;  %v2062_v46 = vmul.f32 0.2, %v2030_v16  ;;  %v2032_v4 = vadd.f32 %v5025_v31, %v5022_v51 }
 0x4de   : > { %v2052_v21 = vmul.f32 0.2, %v2020_v6  ;;  %v2054_v24 = vmul.f32 0.2, %v2022_v53  ;;  %v2063_v60 = vmul.f32 0.2, %v2031_v62  ;;  %v5900_v51 = vunpack.c.l.bf16 %v4017_v1 }
 0x4df   : > { %v2092_v35 = vmax.f32 %v2028_v20, %v2060_v52  ;;  %v2076_v7 = vmax.f32 %v2012_v22, %v2044_v48  ;;  %v2094_v27 = vmax.f32 %v2030_v16, %v2062_v46  ;;  %v2013_v20 = vadd.f32 %v5020_v43, %v1937_v23 }
 0x4e0   : > { %v2084_v33 = vmax.f32 %v2020_v6, %v2052_v21  ;;  %v2046_v22 = vmul.f32 0.2, %v2014_v41  ;;  %v2086_v15 = vmax.f32 %v2022_v53, %v2054_v24  ;;  %v5898_v23 = vunpack.c.h.bf16 %v4029_v5  ;;  %v5905_v24 = vld [vmem:[#allocation6_spill] sm:$0xff] }
 0x4e1   : > { %v5038_v56 = vadd.f32 %v2092_v35, %v5890_v14  ;;  %v5044_v39 = vadd.f32 %v2076_v7, %v5891_v34  ;;  %v5070_v28 = vadd.f32 %v2094_v27, %v5894_v3  ;;  %v2045_v35 = vmul.f32 0.2, %v2013_v20 }
 0x4e2   : > { %v5083_v37 = vadd.f32 %v2084_v33, %v5896_v61  ;;  %v2078_v48 = vmax.f32 %v2014_v41, %v2046_v22  ;;  %v5897_v14 = vunpack.c.l.bf16 %v4029_v5  ;;  %v2015_v5 = vadd.f32 %v5020_v43, %v5029_v42 }
 0x4e3   : > { %v2163_v13 = vmax.f32 %v5034_v55, %v5038_v56  ;;  %v2139_v12 = vmax.f32 %v5048_v30, %v5044_v39  ;;  %v2166_v25 = vmax.f32 %v5066_v11, %v5070_v28  ;;  %v2077_v7 = vmax.f32 %v2013_v20, %v2045_v35 }
 0x4e4   : > { %v2151_v52 = vmax.f32 %v5079_v50, %v5083_v37  ;;  %v5094_v38 = vadd.f32 %v2085_v57, %v5897_v14  ;;  %v5102_v34 = vadd.f32 %v2078_v48, %v5899_v19  ;;  %v2095_v16 = vmax.f32 %v2031_v62, %v2063_v60  ;;  %v5908_v14 = vld [vmem:[#allocation3_spill] sm:$0xff] }
 0x4e5   : > { %2164 = vmax.xlane.f32.xlu1 %v2163_v13  ;;  %v5098_v13 = vadd.f32 %v2086_v15, %v5898_v23  ;;  %v5108_v36 = vadd.f32 %v2077_v7, %v5900_v51  ;;  %v2016_v46 = vadd.f32 %v5025_v31, %v5029_v42  ;;  %v2034_v27 = vadd.f32 %v5025_v31, %v1987_v32  ;;  %v2002_v51 = vpop.permute.xlu1 %2001 }
 0x4e6   : > { %v5901_v1 = vunpack.c.l.bf16 %v4057_v18  ;;  %v5902_v6 = vunpack.c.h.bf16 %v4057_v18  ;;  %v2047_v9 = vmul.f32 0.2, %v2015_v5  ;;  %v2065_v29 = vmul.f32 0.2, %v2033_v58 }
 0x4e7   : > { %v2142_v44 = vmax.f32 %v5108_v36, %v5102_v34  ;;  %v2048_v3 = vmul.f32 0.2, %v2016_v46  ;;  %v2066_v21 = vmul.f32 0.2, %v2034_v27  ;;  %v2017_v42 = vadd.f32 %v5020_v43, %v5052_v59 }
 0x4e8   : > { %v5120_v63 = vadd.f32 %v2095_v16, %v5901_v1  ;;  %v2079_v32 = vmax.f32 %v2015_v5, %v2047_v9  ;;  %v2097_v10 = vmax.f32 %v2033_v58, %v2065_v29  ;;  %v5903_v18 = vunpack.c.l.bf16 %v4020_v2 }
 0x4e9   : > { %v2080_v40 = vmax.f32 %v2016_v46, %v2048_v3  ;;  %v2098_v33 = vmax.f32 %v2034_v27, %v2066_v21  ;;  %v5904_v41 = vunpack.c.h.bf16 %v4020_v2  ;;  %v2049_v61 = vmul.f32 0.2, %v2017_v42 }
 0x4ea   : > { %v5134_v53 = vadd.f32 %v2079_v32, %v5903_v18  ;;  %v5906_v20 = vunpack.c.l.bf16 %v5905_v24  ;;  %v2035_v57 = vadd.f32 %v5020_v43, %v5054_v26  ;;  %v2036_v48 = vadd.f32 %v5025_v31, %v5054_v26 }
 0x4eb   : > { %v5138_v17 = vadd.f32 %v2080_v40, %v5904_v41  ;;  %v2081_v35 = vmax.f32 %v2017_v42, %v2049_v61  ;;  %v5909_v23 = vunpack.c.l.bf16 %v5908_v14  ;;  %v5910_v19 = vunpack.c.h.bf16 %v5908_v14  ;;  %v5914_v40 = vld [vmem:[#allocation8_spill] sm:$0xff] }
 0x4ec   : > { %v5142_v22 = vadd.f32 %v2097_v10, %v5906_v20  ;;  %v2038_v16 = vadd.f32 %v5025_v31, %v5059_v54  ;;  %v2039_v3 = vadd.f32 %v5020_v43, %v2002_v51 }
 0x4ed   : > { %2140 = vmax.xlane.f32.xlu1 %v2139_v12  ;;  %v2064_v12 = vmul.f32 0.2, %v2032_v4  ;;  %v2145_v15 = vmax.f32 %v5134_v53, %v5138_v17  ;;  %v5158_v7 = vadd.f32 %v2081_v35, %v5909_v23 }
 0x4ee   : > { %v2070_v9 = vmul.f32 0.2, %v2038_v16  ;;  %v2071_v32 = vmul.f32 0.2, %v2039_v3 }
 0x4ef   : > { %v2096_v0 = vmax.f32 %v2032_v4, %v2064_v12  ;;  %v2067_v4 = vmul.f32 0.2, %v2035_v57  ;;  %v2068_v12 = vmul.f32 0.2, %v2036_v48 }
 0x4f0   : > { %v2102_v42 = vmax.f32 %v2038_v16, %v2070_v9  ;;  %v5920_v16 = vld [vmem:[#allocation4_spill] sm:$0xff] }
 0x4f1   : > { %v2100_v5 = vmax.f32 %v2036_v48, %v2068_v12 }
 0x506   : > { %1966 = vperm.xlu1 %3689, %v1919_v49   ;;  %v2154_v49 = vmax.f32 %v5094_v38, %v5098_v13 }
 0x518   : > { %2006 = vperm.xlu2 %3687, %v1927_v45   ;;  %v5124_v45 = vadd.f32 %v2096_v0, %v5902_v6  ;;  %v5911_v0 = vld [vmem:[#allocation7_spill] sm:$0xff] }
 0x519   : > { %v5912_v46 = vunpack.c.l.bf16 %v5911_v0  ;;  %v5913_v27 = vunpack.c.h.bf16 %v5911_v0  ;;  %v5921_v0 = vunpack.c.l.bf16 %v5920_v16 }
 0x51a   : > { %v2169_v47 = vmax.f32 %v5120_v63, %v5124_v45 }
 0x51b   : > { %v5176_v1 = vadd.f32 %v2100_v5, %v5913_v27  ;;  %v5922_v27 = vunpack.c.h.bf16 %v5920_v16 }
 0x51d   : > { %2167 = vmax.xlane.f32.xlu0 %v2166_v25  ;;  %v2018_v25 = vadd.f32 %v5025_v31, %v5052_v59 }
 0x51f   : > { %v2050_v8 = vmul.f32 0.2, %v2018_v25 }
 0x521   : > { %v2082_v2 = vmax.f32 %v2018_v25, %v2050_v8  ;;  %v5915_v25 = vunpack.c.l.bf16 %v5914_v40  ;;  %v2103_v8 = vmax.f32 %v2039_v3, %v2071_v32 }
 0x523   : > { %v5162_v60 = vadd.f32 %v2082_v2, %v5910_v19 }
 0x525   : > { %2152 = vmax.xlane.f32.xlu0 %v2151_v52  ;;  %v5907_v52 = vunpack.c.h.bf16 %v5905_v24  ;;  %v2148_v26 = vmax.f32 %v5158_v7, %v5162_v60 }
 0x527   : > { %v5146_v59 = vadd.f32 %v2098_v33, %v5907_v52  ;;  %v5916_v33 = vunpack.c.h.bf16 %v5914_v40 }
 0x529   : > { %v2172_v62 = vmax.f32 %v5142_v22, %v5146_v59  ;;  %v5188_v18 = vadd.f32 %v2102_v42, %v5916_v33 }
 0x52d   : > { %2155 = vmax.xlane.f32.xlu0 %v2154_v49  ;;  %v2099_v49 = vmax.f32 %v2035_v57, %v2067_v4 }
 0x52f   : > { %v5172_v58 = vadd.f32 %v2099_v49, %v5912_v46 }
 0x530   : > { %2143 = vmax.xlane.f32.xlu1 %v2142_v44  ;;  %v2037_v44 = vadd.f32 %v5020_v43, %v5059_v54  ;;  %v2040_v54 = vadd.f32 %v5025_v31, %v2002_v51 }
 0x531   : > { %v2175_v29 = vmax.f32 %v5172_v58, %v5176_v1 }
 0x532   : > { %v2069_v6 = vmul.f32 0.2, %v2037_v44  ;;  %v2072_v41 = vmul.f32 0.2, %v2040_v54 }
 0x534   : > { %v2101_v21 = vmax.f32 %v2037_v44, %v2069_v6  ;;  %v2104_v52 = vmax.f32 %v2040_v54, %v2072_v41 }
 0x536   : > { %v5184_v10 = vadd.f32 %v2101_v21, %v5915_v25 }
 0x538   : > { %2170 = vmax.xlane.f32.xlu1 %v2169_v47  ;;  %v1962_v47 = vpop.permute.xlu1 %1961  ;;  %v2178_v20 = vmax.f32 %v5184_v10, %v5188_v18 }
 0x539   : > { %v2023_v61 = vadd.f32 %v5020_v43, %v1962_v47  ;;  %v2024_v24 = vadd.f32 %v5025_v31, %v1962_v47 }
 0x53b   : > { %v2055_v2 = vmul.f32 0.2, %v2023_v61  ;;  %v2056_v48 = vmul.f32 0.2, %v2024_v24 }
 0x53d   : > { %v2087_v51 = vmax.f32 %v2023_v61, %v2055_v2 }
 0x53f   : > { %v5210_v46 = vadd.f32 %v2087_v51, %v5921_v0  ;;  %v5926_v51 = vld [vmem:[#allocation5_spill] sm:$0xff] }
 0x540   : > { %2146 = vmax.xlane.f32.xlu1 %v2145_v15 }
 0x541   : > { %2173 = vmax.xlane.f32.xlu2 %v2172_v62  ;;  %v5917_v62 = vld [vmem:[#allocation9_spill] sm:$0xff] }
 0x542   : > { %v5918_v4 = vunpack.c.l.bf16 %v5917_v62  ;;  %v5919_v23 = vunpack.c.h.bf16 %v5917_v62 }
 0x544   : > { %v5198_v14 = vadd.f32 %v2103_v8, %v5918_v4  ;;  %v5202_v19 = vadd.f32 %v2104_v52, %v5919_v23 }
 0x548   : > { %2149 = vmax.xlane.f32.xlu1 %v2148_v26  ;;  %v2088_v26 = vmax.f32 %v2024_v24, %v2056_v48 }
 0x54a   : > { %v5214_v6 = vadd.f32 %v2088_v26, %v5922_v27 }
 0x550   : > { %2176 = vmax.xlane.f32.xlu1 %v2175_v29 }
 0x558   : > { %v2165_v57 = vpop.xlane.xlu1 %2164  ;;  %2179 = vmax.xlane.f32.xlu1 %v2178_v20 }
 0x559   : > { %v2203_v15 = vsub.f32 %v5034_v55, %v2165_v57  ;;  %v2204_v35 = vsub.f32 %v5038_v56, %v2165_v57  ;;  %v2181_v55 = vmax.f32 %v5198_v14, %v5202_v19  ;;  %v5923_v57 = vld [vmem:[#allocation10_spill] sm:$0xff] }
 0x55a   : > { %v5925_v2 = vunpack.c.h.bf16 %v5923_v57 }
 0x55b   : > { %v2251_v12 = vmul.f32 1.442695, %v2203_v15  ;;  %v2253_v49 = vmul.f32 1.442695, %v2204_v35  ;;  %v5924_v15 = vunpack.c.l.bf16 %v5923_v57 }
 0x55d   : > { %3691 = vpow2.f32 %v2251_v12 }
 0x55e   : > { %3693 = vpow2.f32 %v2253_v49 }
 0x560   : > { %2182 = vmax.xlane.f32.xlu1 %v2181_v55  ;;  %v2141_v56 = vpop.xlane.xlu1 %2140 }
 0x561   : > { %v2187_v5 = vsub.f32 %v5048_v30, %v2141_v56  ;;  %v2188_v44 = vsub.f32 %v5044_v39, %v2141_v56  ;;  %v2157_v39 = vmax.f32 %v5210_v46, %v5214_v6 }
 0x563   : > { %v5216_v9 = vpop.eup %3691  ;;  %v2219_v3 = vmul.f32 1.442695, %v2187_v5  ;;  %v2221_v29 = vmul.f32 1.442695, %v2188_v44 }
 0x564   : > { %v5218_v21 = vpop.eup %3693 }
 0x565   : > { %3695 = vpow2.f32 %v2219_v3  ;;  %v2307_v30 = vadd.f32 %v5218_v21, %v5216_v9 }
 0x566   : > { %3697 = vpow2.f32 %v2221_v29 }
 0x567   : > { %2308 = vadd.xlane.f32.xlu0 %v2307_v30 }
 0x568   : > { %2158 = vmax.xlane.f32.xlu1 %v2157_v39 }
 0x56b   : > { %v5224_v42 = vpop.eup %3695 }
 0x56c   : > { %v5226_v54 = vpop.eup %3697 }
 0x56d   : > { %v2283_v47 = vadd.f32 %v5226_v54, %v5224_v42 }
 0x570   : > { %2284 = vadd.xlane.f32.xlu1 %v2283_v47 }
 0x572   : > { %v2007_v32 = vpop.permute.xlu2 %2006 }
 0x573   : > { %v2041_v40 = vadd.f32 %v5020_v43, %v2007_v32  ;;  %v2042_v25 = vadd.f32 %v5025_v31, %v2007_v32 }
 0x575   : > { %v2073_v33 = vmul.f32 0.2, %v2041_v40  ;;  %v2074_v41 = vmul.f32 0.2, %v2042_v25 }
 0x577   : > { %v2105_v61 = vmax.f32 %v2041_v40, %v2073_v33  ;;  %v2106_v8 = vmax.f32 %v2042_v25, %v2074_v41 }
 0x578   : > { %v1967_v24 = vpop.permute.xlu1 %1966 }
 0x579   : > { %v2025_v20 = vadd.f32 %v5020_v43, %v1967_v24  ;;  %v2026_v52 = vadd.f32 %v5025_v31, %v1967_v24  ;;  %v5236_v35 = vadd.f32 %v2105_v61, %v5924_v15  ;;  %v5240_v48 = vadd.f32 %v2106_v8, %v5925_v2 }
 0x57a   : > { %v5927_v43 = vunpack.c.l.bf16 %v5926_v51  ;;  %v5928_v31 = vunpack.c.h.bf16 %v5926_v51 }
 0x57b   : > { %v2057_v62 = vmul.f32 0.2, %v2025_v20  ;;  %v2058_v4 = vmul.f32 0.2, %v2026_v52  ;;  %v2184_v23 = vmax.f32 %v5236_v35, %v5240_v48 }
 0x57d   : > { %v2089_v12 = vmax.f32 %v2025_v20, %v2057_v62  ;;  %v2090_v49 = vmax.f32 %v2026_v52, %v2058_v4  ;;  %2185 = vmax.xlane.f32.xlu0 %v2184_v23 }
 0x57f   : > { %v5246_v26 = vadd.f32 %v2089_v12, %v5927_v43  ;;  %v5250_v55 = vadd.f32 %v2090_v49, %v5928_v31 }
 0x581   : > { %v2160_v56 = vmax.f32 %v5246_v26, %v5250_v55 }
 0x585   : > { %2161 = vmax.xlane.f32.xlu0 %v2160_v56 }
 0x590   : > { %v2168_v5 = vpop.xlane.xlu0 %2167 }
 0x591   : > { %v2205_v44 = vsub.f32 %v5066_v11, %v2168_v5  ;;  %v2206_v16 = vsub.f32 %v5070_v28, %v2168_v5 }
 0x593   : > { %v2255_v0 = vmul.f32 1.442695, %v2205_v44  ;;  %v2257_v27 = vmul.f32 1.442695, %v2206_v16 }
 0x595   : > { %3699 = vpow2.f32 %v2255_v0 }
 0x596   : > { %3701 = vpow2.f32 %v2257_v27 }
 0x59b   : > { %v5256_v3 = vpop.eup %3699 }
 0x59c   : > { %v5258_v29 = vpop.eup %3701 }
 0x59d   : > { %v2310_v30 = vadd.f32 %v5258_v29, %v5256_v3 }
 0x59f   : > { %2311 = vadd.xlane.f32.xlu2 %v2310_v30 }
 0x5a3   : > { %v2144_v39 = vpop.xlane.xlu1 %2143 }
 0x5a4   : > { %v2189_v47 = vsub.f32 %v5108_v36, %v2144_v39  ;;  %v2190_v32 = vsub.f32 %v5102_v34, %v2144_v39  ;;  %v2153_v34 = vpop.xlane.xlu0 %2152 }
 0x5a5   : > { %v2195_v62 = vsub.f32 %v5079_v50, %v2153_v34  ;;  %v2196_v49 = vsub.f32 %v5083_v37, %v2153_v34 }
 0x5a6   : > { %v2223_v11 = vmul.f32 1.442695, %v2189_v47  ;;  %v2225_v40 = vmul.f32 1.442695, %v2190_v32 }
 0x5a8   : > { %3703 = vpow2.f32 %v2223_v11 }
 0x5a9   : > { %3705 = vpow2.f32 %v2225_v40 }
 0x5ab   : > { %v2171_v28 = vpop.xlane.xlu1 %2170 }
 0x5ac   : > { %v2207_v25 = vsub.f32 %v5120_v63, %v2171_v28  ;;  %v2208_v33 = vsub.f32 %v5124_v45, %v2171_v28 }
 0x5ae   : > { %v5266_v41 = vpop.eup %3703  ;;  %v2259_v61 = vmul.f32 1.442695, %v2207_v25  ;;  %v2261_v8 = vmul.f32 1.442695, %v2208_v33 }
 0x5af   : > { %v5268_v24 = vpop.eup %3705 }
 0x5b0   : > { %3707 = vpow2.f32 %v2259_v61  ;;  %v2286_v36 = vadd.f32 %v5268_v24, %v5266_v41 }
 0x5b1   : > { %3709 = vpow2.f32 %v2261_v8 }
 0x5b2   : > { %2287 = vadd.xlane.f32.xlu1 %v2286_v36 }
 0x5b3   : > { %v2147_v20 = vpop.xlane.xlu1 %2146 }
 0x5b4   : > { %v2191_v52 = vsub.f32 %v5134_v53, %v2147_v20  ;;  %v2192_v63 = vsub.f32 %v5138_v17, %v2147_v20  ;;  %v2174_v57 = vpop.xlane.xlu2 %2173  ;;  %v2235_v17 = vmul.f32 1.442695, %v2195_v62 }
 0x5b5   : > { %v2209_v45 = vsub.f32 %v5142_v22, %v2174_v57  ;;  %v2210_v15 = vsub.f32 %v5146_v59, %v2174_v57  ;;  %v2237_v22 = vmul.f32 1.442695, %v2196_v49 }
 0x5b6   : > { %v5276_v2 = vpop.eup %3707  ;;  %v2227_v4 = vmul.f32 1.442695, %v2191_v52  ;;  %v2229_v23 = vmul.f32 1.442695, %v2192_v63 }
 0x5b7   : > { %v5279_v12 = vpop.eup %3709  ;;  %v2263_v51 = vmul.f32 1.442695, %v2209_v45  ;;  %v2265_v43 = vmul.f32 1.442695, %v2210_v15 }
 0x5b8   : > { %3711 = vpow2.f32 %v2227_v4  ;;  %v2313_v53 = vadd.f32 %v5279_v12, %v5276_v2 }
 0x5b9   : > { %3713 = vpow2.f32 %v2229_v23 }
 0x5ba   : > { %3715 = vpow2.f32 %v2263_v51  ;;  %2314 = vadd.xlane.f32.xlu2 %v2313_v53 }
 0x5bb   : > { %3717 = vpow2.f32 %v2265_v43  ;;  %v2150_v59 = vpop.xlane.xlu1 %2149 }
 0x5bc   : > { %v2193_v50 = vsub.f32 %v5158_v7, %v2150_v59  ;;  %v2194_v31 = vsub.f32 %v5162_v60, %v2150_v59  ;;  %3719 = vpow2.f32 %v2235_v17  ;;  %v2156_v60 = vpop.xlane.xlu0 %2155 }
 0x5bd   : > { %3721 = vpow2.f32 %v2237_v22  ;;  %v2197_v28 = vsub.f32 %v5094_v38, %v2156_v60  ;;  %v2198_v8 = vsub.f32 %v5098_v13, %v2156_v60 }
 0x5be   : > { %v5286_v56 = vpop.eup %3711  ;;  %v2231_v37 = vmul.f32 1.442695, %v2193_v50  ;;  %v2233_v5 = vmul.f32 1.442695, %v2194_v31 }
 0x5bf   : > { %v5288_v44 = vpop.eup %3713  ;;  %v2241_v34 = vmul.f32 1.442695, %v2198_v8 }
 0x5c0   : > { %v5290_v16 = vpop.eup %3715  ;;  %3723 = vpow2.f32 %v2231_v37  ;;  %v2289_v0 = vadd.f32 %v5288_v44, %v5286_v56 }
 0x5c1   : > { %v5294_v27 = vpop.eup %3717  ;;  %3725 = vpow2.f32 %v2233_v5 }
 0x5c2   : > { %2290 = vadd.xlane.f32.xlu0 %v2289_v0  ;;  %v2316_v7 = vadd.f32 %v5294_v27, %v5290_v16  ;;  %v5298_v39 = vpop.eup %3719 }
 0x5c3   : > { %v2177_v30 = vpop.xlane.xlu1 %2176  ;;  %v5302_v11 = vpop.eup %3721 }
 0x5c4   : > { %2317 = vadd.xlane.f32.xlu1 %v2316_v7  ;;  %v2211_v47 = vsub.f32 %v5172_v58, %v2177_v30  ;;  %v2212_v32 = vsub.f32 %v5176_v1, %v2177_v30  ;;  %v2239_v58 = vmul.f32 1.442695, %v2197_v28  ;;  %v2295_v1 = vadd.f32 %v5302_v11, %v5298_v39 }
 0x5c6   : > { %v5304_v40 = vpop.eup %3723  ;;  %v2267_v25 = vmul.f32 1.442695, %v2211_v47  ;;  %v2269_v33 = vmul.f32 1.442695, %v2212_v32 }
 0x5c7   : > { %v5307_v61 = vpop.eup %3725 }
 0x5c8   : > { %3727 = vpow2.f32 %v2267_v25  ;;  %v2292_v36 = vadd.f32 %v5307_v61, %v5304_v40 }
 0x5c9   : > { %3729 = vpow2.f32 %v2269_v33 }
 0x5ca   : > { %2293 = vadd.xlane.f32.xlu2 %v2292_v36  ;;  %3731 = vpow2.f32 %v2239_v58 }
 0x5cb   : > { %v2180_v20 = vpop.xlane.xlu1 %2179  ;;  %3733 = vpow2.f32 %v2241_v34 }
 0x5cc   : > { %2296 = vadd.xlane.f32.xlu1 %v2295_v1  ;;  %v2213_v38 = vsub.f32 %v5184_v10, %v2180_v20  ;;  %v2214_v52 = vsub.f32 %v5188_v18, %v2180_v20 }
 0x5ce   : > { %v5316_v63 = vpop.eup %3727  ;;  %v2271_v13 = vmul.f32 1.442695, %v2213_v38  ;;  %v2273_v57 = vmul.f32 1.442695, %v2214_v52 }
 0x5cf   : > { %v5318_v45 = vpop.eup %3729 }
 0x5d0   : > { %3735 = vpow2.f32 %v2271_v13  ;;  %v2319_v15 = vadd.f32 %v5318_v45, %v5316_v63  ;;  %v5322_v4 = vpop.eup %3731 }
 0x5d1   : > { %3737 = vpow2.f32 %v2273_v57  ;;  %v5326_v23 = vpop.eup %3733 }
 0x5d2   : > { %2320 = vadd.xlane.f32.xlu0 %v2319_v15  ;;  %v2298_v17 = vadd.f32 %v5326_v23, %v5322_v4 }
 0x5d3   : > { %v2183_v62 = vpop.xlane.xlu1 %2182 }
 0x5d4   : > { %v2215_v10 = vsub.f32 %v5198_v14, %v2183_v62  ;;  %v2216_v18 = vsub.f32 %v5202_v19, %v2183_v62 }
 0x5d6   : > { %v5328_v49 = vpop.eup %3735  ;;  %v2275_v51 = vmul.f32 1.442695, %v2215_v10  ;;  %v2277_v43 = vmul.f32 1.442695, %v2216_v18 }
 0x5d7   : > { %v5330_v53 = vpop.eup %3737 }
 0x5d8   : > { %3739 = vpow2.f32 %v2275_v51  ;;  %v2322_v22 = vadd.f32 %v5330_v53, %v5328_v49 }
 0x5d9   : > { %3741 = vpow2.f32 %v2277_v43 }
 0x5da   : > { %v2309_v59 = vpop.xlane.xlu0 %2308  ;;  %2299 = vadd.xlane.f32.xlu0 %v2298_v17  ;;  %2323 = vadd.xlane.f32.xlu2 %v2322_v22 }
 0x5db   : > { %3743 = vrcp.f32 %v2309_v59  ;;  %v2159_v14 = vpop.xlane.xlu1 %2158  ;;  %v2460_v25 = vand.u32 2147483647, %v2309_v59  ;;  %vm2456_vm3 = vweird.f32 %v2309_v59 }
 0x5dc   : > { %v2199_v19 = vsub.f32 %v5210_v46, %v2159_v14  ;;  %v2200_v50 = vsub.f32 %v5214_v6, %v2159_v14  ;;  %v2462_v46 = vand.u32 2147483648, %v2309_v59 }
 0x5dd   : > { %vm2461_vm9 = vcmp.eq.f32.partialorder %v2460_v25, 8.507059e+37 }
 0x5de   : > { %v5338_v31 = vpop.eup %3739  ;;  %v2243_v37 = vmul.f32 1.442695, %v2199_v19  ;;  %v2245_v5 = vmul.f32 1.442695, %v2200_v50  ;;  %v2463_v58 = vor.u32 1.1754944e-38, %v2462_v46 }
 0x5df   : > { %v5340_v0 = vpop.eup %3741 }
 0x5e0   : > { %3745 = vpow2.f32 %v2243_v37  ;;  %v2325_v7 = vadd.f32 %v5340_v0, %v5338_v31 }
 0x5e1   : > { %v3744_v60 = vpop.eup %3743  ;;  %3747 = vpow2.f32 %v2245_v5 }
 0x5e2   : > { %v2452_v30 = vmul.f32 %v3744_v60, %v2309_v59  ;;  %2326 = vadd.xlane.f32.xlu1 %v2325_v7  ;;  %vm2457_vm11 = vweird.f32 %v3744_v60 }
 0x5e3   : > { %v2285_v47 = vpop.xlane.xlu1 %2284  ;;  %vm2458_vm8 = vmor %vm2456_vm3, %vm2457_vm11 }
 0x5e4   : > { %v2453_v32 = vsub.f32 1.0, %v2452_v30  ;;  %3749 = vrcp.f32 %v2285_v47  ;;  %v2342_v15 = vand.u32 2147483648, %v2285_v47  ;;  %v2340_v10 = vand.u32 2147483647, %v2285_v47 }
 0x5e5   : > { %vm2336_vm12 = vweird.f32 %v2285_v47 }
 0x5e6   : > { %v5344_v28 = vpop.eup %3745  ;;  %v2454_v6 = vmul.f32 %v3744_v60, %v2453_v32  ;;  %v2343_v22 = vor.u32 1.1754944e-38, %v2342_v15  ;;  %vm2341_vm14 = vcmp.eq.f32.partialorder %v2340_v10, 8.507059e+37 }
 0x5e7   : > { %v5346_v33 = vpop.eup %3747 }
 0x5e8   : > { %v2301_v8 = vadd.f32 %v5346_v33, %v5344_v28  ;;  %v2455_v36 = vadd.f32 %v3744_v60, %v2454_v6 }
 0x5ea   : > { %v3750_v1 = vpop.eup %3749  ;;  %2302 = vadd.xlane.f32.xlu2 %v2301_v8  ;;  %v2459_v34 = vsel %vm2458_vm8, %v3744_v60, %v2455_v36 }
 0x5eb   : > { %v2332_v20 = vmul.f32 %v3750_v1, %v2285_v47  ;;  %v2464_v38 = vsel %vm2461_vm9, %v2463_v58, %v2459_v34  ;;  %vm2337_vm10 = vweird.f32 %v3750_v1 }
 0x5ec   : > { %v2587_v52 = vmul.f32 %v5216_v9, %v2464_v38  ;;  %v2588_v13 = vmul.f32 %v5218_v21, %v2464_v38  ;;  %vm2338_vm13 = vmor %vm2336_vm12, %vm2337_vm10 }
 0x5ed   : > { %v2333_v57 = vsub.f32 1.0, %v2332_v20 }
 0x5ee   : > { %2646 = vmatmul.f32.vlgmr.msra.gmra.mxu2 %v2587_v52  ;;  %2711 = vmatmul.f32.vlgmr.msra.gmra.mxu3 %v2588_v13 }
 0x5ef   : > { %v2334_v62 = vmul.f32 %v3750_v1, %v2333_v57 }
 0x5f0   : > { %v2186_v18 = vpop.xlane.xlu0 %2185 }
 0x5f1   : > { %v2217_v51 = vsub.f32 %v5236_v35, %v2186_v18  ;;  %v2218_v43 = vsub.f32 %v5240_v48, %v2186_v18  ;;  %v2335_v17 = vadd.f32 %v3750_v1, %v2334_v62 }
 0x5f3   : > { %v2279_v59 = vmul.f32 1.442695, %v2217_v51  ;;  %v2281_v9 = vmul.f32 1.442695, %v2218_v43  ;;  %v2339_v14 = vsel %vm2338_vm13, %v3750_v1, %v2335_v17 }
 0x5f4   : > { %v2344_v21 = vsel %vm2341_vm14, %v2343_v22, %v2339_v14 }
 0x5f5   : > { %3751 = vpow2.f32 %v2279_v59  ;;  %v2571_v19 = vmul.f32 %v5224_v42, %v2344_v21  ;;  %v2572_v50 = vmul.f32 %v5226_v54, %v2344_v21 }
 0x5f6   : > { %3753 = vpow2.f32 %v2281_v9 }
 0x5f7   : > { %2622 = vmatmul.f32.vlgmr.msra.gmra.mxu0 %v2571_v19  ;;  %2687 = vmatmul.f32.vlgmr.msra.gmra.mxu1 %v2572_v50 }
 0x5f8   : > { %v2162_v35 = vpop.xlane.xlu0 %2161 }
 0x5f9   : > { %v2201_v48 = vsub.f32 %v5246_v26, %v2162_v35  ;;  %v2202_v37 = vsub.f32 %v5250_v55, %v2162_v35 }
 0x5fb   : > { %v5358_v5 = vpop.eup %3751  ;;  %v2247_v7 = vmul.f32 1.442695, %v2201_v48  ;;  %v2249_v60 = vmul.f32 1.442695, %v2202_v37 }
 0x5fc   : > { %v5360_v30 = vpop.eup %3753 }
 0x5fd   : > { %3755 = vpow2.f32 %v2247_v7  ;;  %v2328_v42 = vadd.f32 %v5360_v30, %v5358_v5 }
 0x5fe   : > { %3757 = vpow2.f32 %v2249_v60 }
 0x5ff   : > { %2329 = vadd.xlane.f32.xlu0 %v2328_v42 }
 0x603   : > { %v5364_v54 = vpop.eup %3755 }
 0x604   : > { %v5366_v47 = vpop.eup %3757 }
 0x605   : > { %v2304_v26 = vadd.f32 %v5366_v47, %v5364_v54 }
 0x607   : > { %2305 = vadd.xlane.f32.xlu1 %v2304_v26 }
 0x612   : > { %v2312_v55 = vpop.xlane.xlu2 %2311 }
 0x613   : > { %3759 = vrcp.f32 %v2312_v55  ;;  %v2477_v25 = vand.u32 2147483648, %v2312_v55  ;;  %v2475_v36 = vand.u32 2147483647, %v2312_v55  ;;  %vm2471_vm0 = vweird.f32 %v2312_v55 }
 0x615   : > { %v2478_v1 = vor.u32 1.1754944e-38, %v2477_v25  ;;  %vm2476_vm2 = vcmp.eq.f32.partialorder %v2475_v36, 8.507059e+37 }
 0x619   : > { %v3760_v32 = vpop.eup %3759 }
 0x61a   : > { %v2467_v46 = vmul.f32 %v3760_v32, %v2312_v55  ;;  %vm2472_vm15 = vweird.f32 %v3760_v32 }
 0x61b   : > { %vm2473_vm1 = vmor %vm2471_vm0, %vm2472_vm15 }
 0x61c   : > { %v2468_v6 = vsub.f32 1.0, %v2467_v46 }
 0x61e   : > { %v2469_v8 = vmul.f32 %v3760_v32, %v2468_v6 }
 0x620   : > { %v2470_v58 = vadd.f32 %v3760_v32, %v2469_v8 }
 0x622   : > { %v2474_v34 = vsel %vm2473_vm1, %v3760_v32, %v2470_v58 }
 0x623   : > { %v2479_v20 = vsel %vm2476_vm2, %v2478_v1, %v2474_v34 }
 0x624   : > { %v2589_v38 = vmul.f32 %v5256_v3, %v2479_v20  ;;  %v2590_v52 = vmul.f32 %v5258_v29, %v2479_v20 }
 0x625   : > { %v2288_v13 = vpop.xlane.xlu1 %2287 }
 0x626   : > { %3761 = vrcp.f32 %v2288_v13  ;;  %2649 = vmatmul.f32.gmra.mxu2 %v2589_v38  ;;  %2714 = vmatmul.f32.gmra.mxu3 %v2590_v52  ;;  %v2357_v18 = vand.u32 2147483648, %v2288_v13  ;;  %v2355_v43 = vand.u32 2147483647, %v2288_v13  ;;  %vm2351_vm5 = vweird.f32 %v2288_v13 }
 0x628   : > { %v2358_v3 = vor.u32 1.1754944e-38, %v2357_v18  ;;  %vm2356_vm7 = vcmp.eq.f32.partialorder %v2355_v43, 8.507059e+37 }
 0x62c   : > { %v3762_v57 = vpop.eup %3761 }
 0x62d   : > { %v2347_v15 = vmul.f32 %v3762_v57, %v2288_v13  ;;  %v2315_v62 = vpop.xlane.xlu2 %2314  ;;  %vm2352_vm4 = vweird.f32 %v3762_v57 }
 0x62e   : > { %3763 = vrcp.f32 %v2315_v62  ;;  %vm2353_vm6 = vmor %vm2351_vm5, %vm2352_vm4  ;;  %v2492_v48 = vand.u32 2147483648, %v2315_v62  ;;  %v2490_v7 = vand.u32 2147483647, %v2315_v62  ;;  %vm2486_vm3 = vweird.f32 %v2315_v62 }
 0x62f   : > { %v2348_v10 = vsub.f32 1.0, %v2347_v15 }
 0x630   : > { %v2493_v26 = vor.u32 1.1754944e-38, %v2492_v48  ;;  %vm2491_vm9 = vcmp.eq.f32.partialorder %v2490_v7, 8.507059e+37 }
 0x631   : > { %v2349_v51 = vmul.f32 %v3762_v57, %v2348_v10 }
 0x633   : > { %v2350_v17 = vadd.f32 %v3762_v57, %v2349_v51 }
 0x634   : > { %v3764_v22 = vpop.eup %3763 }
 0x635   : > { %v2482_v59 = vmul.f32 %v3764_v22, %v2315_v62  ;;  %v2291_v29 = vpop.xlane.xlu0 %2290  ;;  %v2354_v9 = vsel %vm2353_vm6, %v3762_v57, %v2350_v17  ;;  %vm2487_vm11 = vweird.f32 %v3764_v22 }
 0x636   : > { %3765 = vrcp.f32 %v2291_v29  ;;  %v2359_v14 = vsel %vm2356_vm7, %v2358_v3, %v2354_v9  ;;  %vm2488_vm8 = vmor %vm2486_vm3, %vm2487_vm11  ;;  %v2372_v1 = vand.u32 2147483648, %v2291_v29  ;;  %v2370_v38 = vand.u32 2147483647, %v2291_v29 }
 0x637   : > { %v2483_v21 = vsub.f32 1.0, %v2482_v59  ;;  %v2318_v19 = vpop.xlane.xlu1 %2317  ;;  %v2573_v50 = vmul.f32 %v5266_v41, %v2359_v14  ;;  %v2574_v35 = vmul.f32 %v5268_v24, %v2359_v14  ;;  %vm2366_vm12 = vweird.f32 %v2291_v29 }
 0x638   : > { %3767 = vrcp.f32 %v2318_v19  ;;  %v2507_v52 = vand.u32 2147483648, %v2318_v19  ;;  %v2373_v62 = vor.u32 1.1754944e-38, %v2372_v1  ;;  %vm2371_vm15 = vcmp.eq.f32.partialorder %v2370_v38, 8.507059e+37 }
 0x639   : > { %v2484_v37 = vmul.f32 %v3764_v22, %v2483_v21  ;;  %2625 = vmatmul.f32.gmra.mxu0 %v2573_v50  ;;  %2690 = vmatmul.f32.gmra.mxu1 %v2574_v35  ;;  %vm2501_vm0 = vweird.f32 %v2318_v19 }
 0x63b   : > { %v2485_v60 = vadd.f32 %v3764_v22, %v2484_v37 }
 0x63c   : > { %v3766_v42 = vpop.eup %3765 }
 0x63d   : > { %v2362_v55 = vmul.f32 %v3766_v42, %v2291_v29  ;;  %v5374_v32 = vpop.xlane.xlu2 %2293  ;;  %v2489_v46 = vsel %vm2488_vm8, %v3764_v22, %v2485_v60  ;;  %vm2367_vm10 = vweird.f32 %v3766_v42  ;;  %v2508_v22 = vor.u32 1.1754944e-38, %v2507_v52 }
 0x63e   : > { %v3768_v41 = vpop.eup %3767  ;;  %3769 = vrcp.f32 %v5374_v32  ;;  %v2494_v24 = vsel %vm2491_vm9, %v2493_v26, %v2489_v46  ;;  %vm2368_vm13 = vmor %vm2366_vm12, %vm2367_vm10  ;;  %v2385_v21 = vand.u32 2147483647, %v5374_v32  ;;  %v2387_v50 = vand.u32 2147483648, %v5374_v32 }
 0x63f   : > { %v2363_v6 = vsub.f32 1.0, %v2362_v55  ;;  %v2497_v25 = vmul.f32 %v3768_v41, %v2318_v19  ;;  %v5377_v8 = vpop.xlane.xlu1 %2296  ;;  %v2591_v36 = vmul.f32 %v5276_v2, %v2494_v24  ;;  %v2592_v58 = vmul.f32 %v5279_v12, %v2494_v24 }
 0x640   : > { %3771 = vrcp.f32 %v5377_v8  ;;  %vm2502_vm14 = vweird.f32 %v3768_v41  ;;  %v2505_v2 = vand.u32 2147483647, %v2318_v19  ;;  %vm2381_vm5 = vweird.f32 %v5374_v32 }
 0x641   : > { %v2364_v34 = vmul.f32 %v3766_v42, %v2363_v6  ;;  %v2498_v20 = vsub.f32 1.0, %v2497_v25  ;;  %2652 = vmatmul.f32.gmra.mxu2 %v2591_v36  ;;  %2717 = vmatmul.f32.gmra.mxu3 %v2592_v58  ;;  %vm2503_vm1 = vmor %vm2501_vm0, %vm2502_vm14  ;;  %vm2386_vm7 = vcmp.eq.f32.partialorder %v2385_v21, 8.507059e+37  ;;  %vm2396_vm11 = vweird.f32 %v5377_v8 }
 0x642   : > { %vm2506_vm2 = vcmp.eq.f32.partialorder %v2505_v2, 8.507059e+37  ;;  %v2402_v24 = vand.u32 2147483648, %v5377_v8 }
 0x643   : > { %v2499_v13 = vmul.f32 %v3768_v41, %v2498_v20  ;;  %v2365_v57 = vadd.f32 %v3766_v42, %v2364_v34 }
 0x644   : > { %v3770_v15 = vpop.eup %3769  ;;  %v2403_v38 = vor.u32 1.1754944e-38, %v2402_v24 }
 0x645   : > { %v2377_v12 = vmul.f32 %v3770_v15, %v5374_v32  ;;  %v5383_v10 = vpop.xlane.xlu0 %2320  ;;  %v2369_v18 = vsel %vm2368_vm13, %v3766_v42, %v2365_v57  ;;  %v2500_v51 = vadd.f32 %v3768_v41, %v2499_v13  ;;  %vm2382_vm4 = vweird.f32 %v3770_v15 }
 0x646   : > { %v3772_v43 = vpop.eup %3771  ;;  %3773 = vrcp.f32 %v5383_v10  ;;  %v2374_v17 = vsel %vm2371_vm15, %v2373_v62, %v2369_v18  ;;  %vm2383_vm6 = vmor %vm2381_vm5, %vm2382_vm4  ;;  %v2388_v42 = vor.u32 1.1754944e-38, %v2387_v50  ;;  %v2522_v58 = vand.u32 2147483648, %v5383_v10 }
 0x647   : > { %v2378_v3 = vsub.f32 1.0, %v2377_v12  ;;  %v2392_v59 = vmul.f32 %v3772_v43, %v5377_v8  ;;  %v2575_v29 = vmul.f32 %v5286_v56, %v2374_v17  ;;  %v2576_v9 = vmul.f32 %v5288_v44, %v2374_v17 }
 0x648   : > { %v2504_v14 = vsel %vm2503_vm1, %v3768_v41, %v2500_v51  ;;  %vm2397_vm3 = vweird.f32 %v3772_v43  ;;  %v2400_v41 = vand.u32 2147483647, %v5377_v8  ;;  %v2520_v20 = vand.u32 2147483647, %v5383_v10 }
 0x649   : > { %v2379_v35 = vmul.f32 %v3770_v15, %v2378_v3  ;;  %v2393_v48 = vsub.f32 1.0, %v2392_v59  ;;  %2628 = vmatmul.f32.gmra.mxu0 %v2575_v29  ;;  %2693 = vmatmul.f32.gmra.mxu1 %v2576_v9  ;;  %v2509_v19 = vsel %vm2506_vm2, %v2508_v22, %v2504_v14  ;;  %vm2398_vm8 = vmor %vm2396_vm11, %vm2397_vm3  ;;  %vm2516_vm12 = vweird.f32 %v5383_v10 }
 0x64a   : > { %v2593_v37 = vmul.f32 %v5290_v16, %v2509_v19  ;;  %v2594_v56 = vmul.f32 %v5294_v27, %v2509_v19  ;;  %vm2401_vm10 = vcmp.eq.f32.partialorder %v2400_v41, 8.507059e+37  ;;  %vm2521_vm14 = vcmp.eq.f32.partialorder %v2520_v20, 8.507059e+37 }
 0x64b   : > { %v2394_v7 = vmul.f32 %v3772_v43, %v2393_v48  ;;  %v2380_v44 = vadd.f32 %v3770_v15, %v2379_v35 }
 0x64c   : > { %v3774_v60 = vpop.eup %3773  ;;  %2655 = vmatmul.f32.gmra.mxu2 %v2593_v37  ;;  %2720 = vmatmul.f32.gmra.mxu3 %v2594_v56 }
 0x64d   : > { %v2512_v26 = vmul.f32 %v3774_v60, %v5383_v10  ;;  %v5397_v55 = vpop.xlane.xlu0 %2299  ;;  %v5399_v46 = vpop.xlane.xlu2 %2323  ;;  %v2384_v16 = vsel %vm2383_vm6, %v3770_v15, %v2380_v44  ;;  %v2395_v27 = vadd.f32 %v3772_v43, %v2394_v7  ;;  %vm2517_vm9 = vweird.f32 %v3774_v60 }
 0x64e   : > { %3775 = vrcp.f32 %v5397_v55  ;;  %v2389_v32 = vsel %vm2386_vm7, %v2388_v42, %v2384_v16  ;;  %vm2518_vm13 = vmor %vm2516_vm12, %vm2517_vm9  ;;  %v2417_v3 = vand.u32 2147483648, %v5397_v55  ;;  %v2415_v29 = vand.u32 2147483647, %v5397_v55 }
 0x64f   : > { %v2513_v6 = vsub.f32 1.0, %v2512_v26  ;;  %3777 = vrcp.f32 %v5399_v46  ;;  %v2577_v25 = vmul.f32 %v5304_v40, %v2389_v32  ;;  %v2578_v36 = vmul.f32 %v5307_v61, %v2389_v32 }
 0x650   : > { %v2399_v34 = vsel %vm2398_vm8, %v3772_v43, %v2395_v27  ;;  %v2523_v61 = vor.u32 1.1754944e-38, %v2522_v58  ;;  %v2537_v9 = vand.u32 2147483648, %v5399_v46  ;;  %vm2411_vm1 = vweird.f32 %v5397_v55 }
 0x651   : > { %v2514_v1 = vmul.f32 %v3774_v60, %v2513_v6  ;;  %2631 = vmatmul.f32.gmra.mxu0 %v2577_v25  ;;  %2696 = vmatmul.f32.gmra.mxu1 %v2578_v36  ;;  %v2404_v13 = vsel %vm2401_vm10, %v2403_v38, %v2399_v34  ;;  %vm2531_vm4 = vweird.f32 %v5399_v46  ;;  %vm2416_vm5 = vcmp.eq.f32.partialorder %v2415_v29, 8.507059e+37 }
 0x652   : > { %v2579_v51 = vmul.f32 %v5298_v39, %v2404_v13  ;;  %v2580_v22 = vmul.f32 %v5302_v11, %v2404_v13  ;;  %v2535_v39 = vand.u32 2147483647, %v5399_v46  ;;  %v2538_v19 = vor.u32 1.1754944e-38, %v2537_v9 }
 0x653   : > { %v2515_v52 = vadd.f32 %v3774_v60, %v2514_v1 }
 0x654   : > { %v3776_v40 = vpop.eup %3775  ;;  %vm2536_vm7 = vcmp.eq.f32.partialorder %v2535_v39, 8.507059e+37 }
 0x655   : > { %v3778_v8 = vpop.eup %3777  ;;  %v2407_v57 = vmul.f32 %v3776_v40, %v5397_v55  ;;  %v5413_v15 = vpop.xlane.xlu1 %2326  ;;  %v2519_v62 = vsel %vm2518_vm13, %v3774_v60, %v2515_v52  ;;  %vm2412_vm15 = vweird.f32 %v3776_v40 }
 0x656   : > { %v2527_v2 = vmul.f32 %v3778_v8, %v5399_v46  ;;  %3779 = vrcp.f32 %v5413_v15  ;;  %v2524_v12 = vsel %vm2521_vm14, %v2523_v61, %v2519_v62  ;;  %vm2532_vm0 = vweird.f32 %v3778_v8  ;;  %vm2413_vm2 = vmor %vm2411_vm1, %vm2412_vm15 }
 0x657   : > { %v2408_v18 = vsub.f32 1.0, %v2407_v57  ;;  %v2595_v10 = vmul.f32 %v5316_v63, %v2524_v12  ;;  %v2596_v43 = vmul.f32 %v5318_v45, %v2524_v12  ;;  %v2418_v45 = vor.u32 1.1754944e-38, %v2417_v3  ;;  %vm2533_vm6 = vmor %vm2531_vm4, %vm2532_vm0 }
 0x658   : > { %v2528_v17 = vsub.f32 1.0, %v2527_v2  ;;  %v2552_v46 = vand.u32 2147483648, %v5413_v15  ;;  %v2550_v27 = vand.u32 2147483647, %v5413_v15  ;;  %vm2546_vm3 = vweird.f32 %v5413_v15 }
 0x659   : > { %v2409_v59 = vmul.f32 %v3776_v40, %v2408_v18  ;;  %2634 = vmatmul.f32.gmra.mxu0 %v2579_v51  ;;  %2658 = vmatmul.f32.gmra.mxu2 %v2595_v10 }
 0x65a   : > { %v2529_v14 = vmul.f32 %v3778_v8, %v2528_v17  ;;  %2699 = vmatmul.f32.gmra.mxu1 %v2580_v22  ;;  %2723 = vmatmul.f32.gmra.mxu3 %v2596_v43  ;;  %vm2551_vm9 = vcmp.eq.f32.partialorder %v2550_v27, 8.507059e+37 }
 0x65b   : > { %v2410_v63 = vadd.f32 %v3776_v40, %v2409_v59 }
 0x65c   : > { %v3780_v11 = vpop.eup %3779  ;;  %v2530_v21 = vadd.f32 %v3778_v8, %v2529_v14 }
 0x65d   : > { %v2542_v50 = vmul.f32 %v3780_v11, %v5413_v15  ;;  %v2303_v35 = vpop.xlane.xlu2 %2302  ;;  %v2414_v48 = vsel %vm2413_vm2, %v3776_v40, %v2410_v63  ;;  %vm2547_vm11 = vweird.f32 %v3780_v11  ;;  %v5440_v40 = vld [vmem:[%s5821_s5] ss:$0 sm:$0xff] }
 0x65e   : > { %3781 = vrcp.f32 %v2303_v35  ;;  %v2419_v37 = vsel %vm2416_vm5, %v2418_v45, %v2414_v48  ;;  %v2534_v56 = vsel %vm2533_vm6, %v3778_v8, %v2530_v21  ;;  %vm2548_vm8 = vmor %vm2546_vm3, %vm2547_vm11  ;;  %v2432_v36 = vand.u32 2147483648, %v2303_v35 }
 0x65f   : > { %v2543_v7 = vsub.f32 1.0, %v2542_v50  ;;  %v2581_v44 = vmul.f32 %v5322_v4, %v2419_v37  ;;  %v2539_v60 = vsel %vm2536_vm7, %v2538_v19, %v2534_v56  ;;  %v2582_v42 = vmul.f32 %v5326_v23, %v2419_v37 }
 0x660   : > { %v2597_v26 = vmul.f32 %v5328_v49, %v2539_v60  ;;  %v2598_v55 = vmul.f32 %v5330_v53, %v2539_v60  ;;  %v2553_v23 = vor.u32 1.1754944e-38, %v2552_v46  ;;  %v2430_v1 = vand.u32 2147483647, %v2303_v35 }
 0x661   : > { %v2544_v16 = vmul.f32 %v3780_v11, %v2543_v7  ;;  %2637 = vmatmul.f32.gmra.mxu0 %v2581_v44  ;;  %vm2426_vm12 = vweird.f32 %v2303_v35  ;;  %v2433_v20 = vor.u32 1.1754944e-38, %v2432_v36 }
 0x662   : > { %2661 = vmatmul.f32.gmra.mxu2 %v2597_v26  ;;  %2702 = vmatmul.f32.gmra.mxu1 %v2582_v42  ;;  %vm2431_vm14 = vcmp.eq.f32.partialorder %v2430_v1, 8.507059e+37 }
 0x663   : > { %2726 = vmatmul.f32.gmra.mxu3 %v2598_v55  ;;  %v2545_v32 = vadd.f32 %v3780_v11, %v2544_v16 }
 0x664   : > { %v3782_v4 = vpop.eup %3781 }
 0x665   : > { %v2422_v41 = vmul.f32 %v3782_v4, %v2303_v35  ;;  %v2549_v49 = vsel %vm2548_vm8, %v3780_v11, %v2545_v32  ;;  %vm2427_vm10 = vweird.f32 %v3782_v4 }
 0x666   : > { %v2554_v53 = vsel %vm2551_vm9, %v2553_v23, %v2549_v49  ;;  %vm2428_vm13 = vmor %vm2426_vm12, %vm2427_vm10  ;;  %vm3201_vm10 = vcmask 261120  }
 0x667   : > { %v2423_v24 = vsub.f32 1.0, %v2422_v41  ;;  %v2599_v6 = vmul.f32 %v5338_v31, %v2554_v53  ;;  %v2600_v25 = vmul.f32 %v5340_v0, %v2554_v53 }
 0x669   : > { %v2424_v58 = vmul.f32 %v3782_v4, %v2423_v24 }
 0x66a   : > { %2664 = vmatmul.f32.gmra.mxu2 %v2599_v6 }
 0x66b   : > { %2729 = vmatmul.f32.gmra.mxu3 %v2600_v25  ;;  %v2425_v34 = vadd.f32 %v3782_v4, %v2424_v58 }
 0x66d   : > { %v2429_v38 = vsel %vm2428_vm13, %v3782_v4, %v2425_v34 }
 0x66e   : > { %v2434_v52 = vsel %vm2431_vm14, %v2433_v20, %v2429_v38 }
 0x66f   : > { %v2583_v31 = vmul.f32 %v5344_v28, %v2434_v52  ;;  %v2584_v0 = vmul.f32 %v5346_v33, %v2434_v52 }
 0x671   : > { %2640 = vmatmul.f32.gmra.mxu0 %v2583_v31  ;;  %v2647_v13 = vpop.f32.mrf.mxu2  ;;  %2705 = vmatmul.f32.gmra.mxu1 %v2584_v0  ;;  %v2712_v57 = vpop.f32.mrf.mxu3 }
 0x672   : > { %v2648_v61 = vadd.f32 %v5440_v40, %v2647_v13  ;;  %v2330_v8 = vpop.xlane.xlu0 %2329 }
 0x673   : > { %3783 = vrcp.f32 %v2330_v8  ;;  %v2567_v29 = vand.u32 2147483648, %v2330_v8  ;;  %v2565_v9 = vand.u32 2147483647, %v2330_v8  ;;  %vm2561_vm0 = vweird.f32 %v2330_v8 }
 0x674   : > { %v2713_v15 = vadd.f32 %v2712_v57, %v2648_v61  ;;  %v2623_v62 = vpop.f32.mrf.mxu0  ;;  %v2688_v18 = vpop.f32.mrf.mxu1 }
 0x675   : > { %v2624_v2 = vadd.f32 %v5440_v40, %v2623_v62  ;;  %v2568_v50 = vor.u32 1.1754944e-38, %v2567_v29  ;;  %vm2566_vm2 = vcmp.eq.f32.partialorder %v2565_v9, 8.507059e+37 }
 0x676   : > { %v2744_v12 = vsub.f32 0.0, %v2713_v15 }
 0x677   : > { %v2689_v51 = vadd.f32 %v2688_v18, %v2624_v2 }
 0x678   : > { %v2768_v10 = vmul.f32 1.442695, %v2744_v12 }
 0x679   : > { %v3784_v43 = vpop.eup %3783  ;;  %v2736_v28 = vsub.f32 0.0, %v2689_v51 }
 0x67a   : > { %3785 = vpow2.f32 %v2768_v10  ;;  %v2557_v33 = vmul.f32 %v3784_v43, %v2330_v8  ;;  %v2306_v17 = vpop.xlane.xlu1 %2305  ;;  %vm2562_vm15 = vweird.f32 %v3784_v43 }
 0x67b   : > { %v2752_v22 = vmul.f32 1.442695, %v2736_v28  ;;  %3787 = vrcp.f32 %v2306_v17  ;;  %vm2563_vm1 = vmor %vm2561_vm0, %vm2562_vm15  ;;  %v2447_v44 = vand.u32 2147483648, %v2306_v17  ;;  %v2445_v42 = vand.u32 2147483647, %v2306_v17 }
 0x67c   : > { %v2558_v3 = vsub.f32 1.0, %v2557_v33  ;;  %vm2441_vm5 = vweird.f32 %v2306_v17 }
 0x67d   : > { %3789 = vpow2.f32 %v2752_v22  ;;  %v2448_v16 = vor.u32 1.1754944e-38, %v2447_v44  ;;  %vm2446_vm7 = vcmp.eq.f32.partialorder %v2445_v42, 8.507059e+37 }
 0x67e   : > { %v2559_v59 = vmul.f32 %v3784_v43, %v2558_v3 }
 0x680   : > { %v3786_v14 = vpop.eup %3785  ;;  %v2560_v39 = vadd.f32 %v3784_v43, %v2559_v59 }
 0x681   : > { %v3788_v63 = vpop.eup %3787  ;;  %v2792_v11 = vadd.f32 1.0, %v3786_v14 }
 0x682   : > { %v2437_v45 = vmul.f32 %v3788_v63, %v2306_v17  ;;  %v2564_v21 = vsel %vm2563_vm1, %v3784_v43, %v2560_v39  ;;  %vm2442_vm4 = vweird.f32 %v3788_v63 }
 0x683   : > { %v3790_v35 = vpop.eup %3789  ;;  %3791 = vrcp.f32 %v2792_v11  ;;  %v2569_v37 = vsel %vm2566_vm2, %v2568_v50, %v2564_v21  ;;  %vm2443_vm6 = vmor %vm2441_vm5, %vm2442_vm4  ;;  %v2929_v24 = vand.u32 2147483647, %v2792_v11  ;;  %vm2925_vm3 = vweird.f32 %v2792_v11 }
 0x684   : > { %v2784_v48 = vadd.f32 1.0, %v3790_v35  ;;  %v2438_v19 = vsub.f32 1.0, %v2437_v45  ;;  %v2601_v56 = vmul.f32 %v5358_v5, %v2569_v37  ;;  %v2602_v7 = vmul.f32 %v5360_v30, %v2569_v37 }
 0x685   : > { %v2931_v5 = vand.u32 2147483648, %v2792_v11  ;;  %vm2930_vm12 = vcmp.eq.f32.partialorder %v2929_v24, 8.507059e+37 }
 0x686   : > { %3793 = vrcp.f32 %v2784_v48  ;;  %v2439_v60 = vmul.f32 %v3788_v63, %v2438_v19  ;;  %2667 = vmatmul.f32.gmra.mxu2 %v2601_v56  ;;  %2732 = vmatmul.f32.gmra.mxu3 %v2602_v7  ;;  %v2811_v58 = vand.u32 2147483648, %v2784_v48  ;;  %v2809_v34 = vand.u32 2147483647, %v2784_v48 }
 0x687   : > { %v2932_v36 = vor.u32 1.1754944e-38, %v2931_v5  ;;  %vm2805_vm13 = vweird.f32 %v2784_v48 }
 0x688   : > { %v2440_v55 = vadd.f32 %v3788_v63, %v2439_v60  ;;  %v2812_v38 = vor.u32 1.1754944e-38, %v2811_v58  ;;  %vm2810_vm15 = vcmp.eq.f32.partialorder %v2809_v34, 8.507059e+37 }
 0x689   : > { %v3792_v26 = vpop.eup %3791 }
 0x68a   : > { %v2921_v46 = vmul.f32 %v3792_v26, %v2792_v11  ;;  %v2444_v27 = vsel %vm2443_vm6, %v3788_v63, %v2440_v55  ;;  %vm2926_vm11 = vweird.f32 %v3792_v26 }
 0x68b   : > { %v2449_v23 = vsel %vm2446_vm7, %v2448_v16, %v2444_v27  ;;  %vm2927_vm8 = vmor %vm2925_vm3, %vm2926_vm11 }
 0x68c   : > { %v3794_v32 = vpop.eup %3793  ;;  %v2922_v4 = vsub.f32 1.0, %v2921_v46  ;;  %v2585_v41 = vmul.f32 %v5364_v54, %v2449_v23  ;;  %v2586_v49 = vmul.f32 %v5366_v47, %v2449_v23 }
 0x68d   : > { %v2801_v30 = vmul.f32 %v3794_v32, %v2784_v48  ;;  %vm2806_vm9 = vweird.f32 %v3794_v32 }
 0x68e   : > { %v2923_v53 = vmul.f32 %v3792_v26, %v2922_v4  ;;  %2643 = vmatmul.f32.gmra.mxu0 %v2585_v41  ;;  %2708 = vmatmul.f32.gmra.mxu1 %v2586_v49  ;;  %vm2807_vm14 = vmor %vm2805_vm13, %vm2806_vm9 }
 0x68f   : > { %v2802_v6 = vsub.f32 1.0, %v2801_v30 }
 0x690   : > { %v2924_v25 = vadd.f32 %v3792_v26, %v2923_v53 }
 0x691   : > { %v2803_v1 = vmul.f32 %v3794_v32, %v2802_v6 }
 0x692   : > { %v2928_v54 = vsel %vm2927_vm8, %v3792_v26, %v2924_v25 }
 0x693   : > { %v2804_v47 = vadd.f32 %v3794_v32, %v2803_v1  ;;  %v5450_v20 = vsel %vm2930_vm12, %v2932_v36, %v2928_v54 }
 0x694   : > { %v3048_v52 = vmul.f32 0.5, %v5450_v20  ;;  %3210 = vst.msk [vmem:[%s4051_s23 + $0x40] sm:$0xff] %vm3201_vm10, %v5450_v20 }
 0x695   : > { %v2808_v31 = vsel %vm2807_vm14, %v3794_v32, %v2804_v47 }
 0x696   : > { %v3072_v0 = vmul.f32 1.442695, %v3048_v52  ;;  %v5456_v13 = vsel %vm2810_vm15, %v2812_v38, %v2808_v31 }
 0x697   : > { %v3040_v61 = vmul.f32 0.5, %v5456_v13  ;;  %3202 = vst.msk [vmem:[%s4051_s23] sm:$0xff] %vm3201_vm10, %v5456_v13 }
 0x698   : > { %3795 = vpow2.f32 %v3072_v0 }
 0x699   : > { %v3056_v8 = vmul.f32 1.442695, %v3040_v61 }
 0x69b   : > { %3797 = vpow2.f32 %v3056_v8 }
 0x69e   : > { %v3796_v57 = vpop.eup %3795 }
 0x69f   : > { %3137 = vrot.lane.b32.xlu0 %v3796_v57, %s3926_s22 }
 0x6a1   : > { %v3798_v15 = vpop.eup %3797 }
 0x6a2   : > { %3121 = vrot.lane.b32.xlu2 %v3798_v15, %s3926_s22 }
 0x6a9   : > { %v2650_v62 = vpop.f32.mrf.mxu2  ;;  %v2715_v12 = vpop.f32.mrf.mxu3 }
 0x6aa   : > { %v2651_v2 = vadd.f32 %v5440_v40, %v2650_v62 }
 0x6ac   : > { %v2716_v18 = vadd.f32 %v2715_v12, %v2651_v2 }
 0x6ae   : > { %v2745_v51 = vsub.f32 0.0, %v2716_v18 }
 0x6b0   : > { %v2770_v10 = vmul.f32 1.442695, %v2745_v51 }
 0x6b2   : > { %3799 = vpow2.f32 %v2770_v10 }
 0x6b6   : > { %v2626_v43 = vpop.f32.mrf.mxu0  ;;  %v2691_v17 = vpop.f32.mrf.mxu1 }
 0x6b7   : > { %v2627_v28 = vadd.f32 %v5440_v40, %v2626_v43 }
 0x6b8   : > { %v3800_v33 = vpop.eup %3799 }
 0x6b9   : > { %v2793_v22 = vadd.f32 1.0, %v3800_v33  ;;  %v2692_v3 = vadd.f32 %v2691_v17, %v2627_v28 }
 0x6bb   : > { %3801 = vrcp.f32 %v2793_v22  ;;  %v2737_v59 = vsub.f32 0.0, %v2692_v3  ;;  %v2946_v11 = vand.u32 2147483648, %v2793_v22  ;;  %v2944_v48 = vand.u32 2147483647, %v2793_v22 }
 0x6bc   : > { %vm2940_vm1 = vweird.f32 %v2793_v22 }
 0x6bd   : > { %v2754_v29 = vmul.f32 1.442695, %v2737_v59  ;;  %v2947_v42 = vor.u32 1.1754944e-38, %v2946_v11  ;;  %vm2945_vm4 = vcmp.eq.f32.partialorder %v2944_v48, 8.507059e+37 }
 0x6bf   : > { %3803 = vpow2.f32 %v2754_v29 }
 0x6c1   : > { %v3802_v9 = vpop.eup %3801 }
 0x6c2   : > { %v2936_v14 = vmul.f32 %v3802_v9, %v2793_v22  ;;  %vm2941_vm0 = vweird.f32 %v3802_v9 }
 0x6c3   : > { %vm2942_vm2 = vmor %vm2940_vm1, %vm2941_vm0 }
 0x6c4   : > { %v2937_v39 = vsub.f32 1.0, %v2936_v14  ;;  %v2653_v63 = vpop.f32.mrf.mxu2  ;;  %v2718_v21 = vpop.f32.mrf.mxu3 }
 0x6c5   : > { %v2654_v45 = vadd.f32 %v5440_v40, %v2653_v63  ;;  %v3804_v50 = vpop.eup %3803 }
 0x6c6   : > { %v2938_v35 = vmul.f32 %v3802_v9, %v2937_v39  ;;  %v2629_v19 = vpop.f32.mrf.mxu0  ;;  %v2694_v37 = vpop.f32.mrf.mxu1  ;;  %v2785_v56 = vadd.f32 1.0, %v3804_v50 }
 0x6c7   : > { %v2719_v7 = vadd.f32 %v2718_v21, %v2654_v45  ;;  %v2630_v44 = vadd.f32 %v5440_v40, %v2629_v19 }
 0x6c8   : > { %v2939_v60 = vadd.f32 %v3802_v9, %v2938_v35  ;;  %3805 = vrcp.f32 %v2785_v56  ;;  %v2824_v54 = vand.u32 2147483647, %v2785_v56  ;;  %v2826_v47 = vand.u32 2147483648, %v2785_v56 }
 0x6c9   : > { %v2746_v55 = vsub.f32 0.0, %v2719_v7  ;;  %v2695_v46 = vadd.f32 %v2694_v37, %v2630_v44  ;;  %vm2820_vm6 = vweird.f32 %v2785_v56 }
 0x6ca   : > { %v2943_v26 = vsel %vm2942_vm2, %v3802_v9, %v2939_v60  ;;  %vm2825_vm11 = vcmp.eq.f32.partialorder %v2824_v54, 8.507059e+37  ;;  %v2827_v18 = vor.u32 1.1754944e-38, %v2826_v47 }
 0x6cb   : > { %v5468_v16 = vsel %vm2945_vm4, %v2947_v42, %v2943_v26  ;;  %v2772_v27 = vmul.f32 1.442695, %v2746_v55  ;;  %v2738_v32 = vsub.f32 0.0, %v2695_v46 }
 0x6cc   : > { %v3049_v4 = vmul.f32 0.5, %v5468_v16  ;;  %3211 = vst.msk [vmem:[%s4051_s23 + $0x48] sm:$0xff] %vm3201_vm10, %v5468_v16 }
 0x6cd   : > { %3807 = vpow2.f32 %v2772_v27  ;;  %v2756_v5 = vmul.f32 1.442695, %v2738_v32 }
 0x6ce   : > { %v2632_v23 = vpop.f32.mrf.mxu0  ;;  %v3074_v30 = vmul.f32 1.442695, %v3049_v4  ;;  %v3806_v41 = vpop.eup %3805 }
 0x6cf   : > { %v2656_v49 = vpop.f32.mrf.mxu2  ;;  %v2633_v53 = vadd.f32 %v5440_v40, %v2632_v23  ;;  %v2816_v24 = vmul.f32 %v3806_v41, %v2785_v56  ;;  %3809 = vpow2.f32 %v2756_v5  ;;  %v2697_v25 = vpop.f32.mrf.mxu1  ;;  %vm2821_vm5 = vweird.f32 %v3806_v41 }
 0x6d0   : > { %v2657_v6 = vadd.f32 %v5440_v40, %v2656_v49  ;;  %v2721_v36 = vpop.f32.mrf.mxu3  ;;  %3811 = vpow2.f32 %v3074_v30  ;;  %vm2822_vm7 = vmor %vm2820_vm6, %vm2821_vm5 }
 0x6d1   : > { %v2698_v58 = vadd.f32 %v2697_v25, %v2633_v53  ;;  %v2817_v1 = vsub.f32 1.0, %v2816_v24 }
 0x6d2   : > { %v2722_v34 = vadd.f32 %v2721_v36, %v2657_v6 }
 0x6d3   : > { %v2739_v38 = vsub.f32 0.0, %v2698_v58  ;;  %v3808_v52 = vpop.eup %3807  ;;  %v2818_v31 = vmul.f32 %v3806_v41, %v2817_v1 }
 0x6d4   : > { %v2747_v0 = vsub.f32 0.0, %v2722_v34  ;;  %v5476_v61 = vadd.f32 1.0, %v3808_v52 }
 0x6d5   : > { %v2758_v8 = vmul.f32 1.442695, %v2739_v38  ;;  %v3810_v57 = vpop.eup %3809  ;;  %v2819_v15 = vadd.f32 %v3806_v41, %v2818_v31 }
 0x6d6   : > { %v2774_v62 = vmul.f32 1.442695, %v2747_v0  ;;  %v2635_v2 = vpop.f32.mrf.mxu0  ;;  %v3812_v12 = vpop.eup %3811  ;;  %3813 = vrcp.f32 %v5476_v61  ;;  %v5479_v10 = vadd.f32 1.0, %v3810_v57  ;;  %v2961_v21 = vand.u32 2147483648, %v5476_v61 }
 0x6d7   : > { %v2823_v51 = vsel %vm2822_vm7, %v3806_v41, %v2819_v15  ;;  %v2636_v43 = vadd.f32 %v5440_v40, %v2635_v2  ;;  %3139 = vrot.lane.b32.xlu2 %v3812_v12, %s3926_s22  ;;  %v2700_v33 = vpop.f32.mrf.mxu1  ;;  %v2959_v7 = vand.u32 2147483647, %v5476_v61  ;;  %vm2955_vm8 = vweird.f32 %v5476_v61 }
 0x6d8   : > { %3815 = vpow2.f32 %v2774_v62  ;;  %v5483_v28 = vsel %vm2825_vm11, %v2827_v18, %v2823_v51  ;;  %v2962_v27 = vor.u32 1.1754944e-38, %v2961_v21  ;;  %v2841_v32 = vand.u32 2147483648, %v5479_v10 }
 0x6d9   : > { %3817 = vpow2.f32 %v2758_v8  ;;  %3203 = vst.msk [vmem:[%s4051_s23 + $0x8] sm:$0xff] %vm3201_vm10, %v5483_v28  ;;  %v2701_v17 = vadd.f32 %v2700_v33, %v2636_v43  ;;  %v3041_v22 = vmul.f32 0.5, %v5483_v28  ;;  %v2839_v23 = vand.u32 2147483647, %v5479_v10 }
 0x6da   : > { %3819 = vrcp.f32 %v5479_v10  ;;  %vm2960_vm13 = vcmp.eq.f32.partialorder %v2959_v7, 8.507059e+37  ;;  %vm2835_vm14 = vweird.f32 %v5479_v10  ;;  %v2842_v38 = vor.u32 1.1754944e-38, %v2841_v32 }
 0x6db   : > { %v2740_v29 = vsub.f32 0.0, %v2701_v17  ;;  %v3058_v39 = vmul.f32 1.442695, %v3041_v22  ;;  %vm2840_vm0 = vcmp.eq.f32.partialorder %v2839_v23, 8.507059e+37 }
 0x6dc   : > { %v2659_v3 = vpop.f32.mrf.mxu2  ;;  %v3814_v59 = vpop.eup %3813 }
 0x6dd   : > { %v2660_v9 = vadd.f32 %v5440_v40, %v2659_v3  ;;  %v2724_v14 = vpop.f32.mrf.mxu3  ;;  %v2951_v11 = vmul.f32 %v3814_v59, %v5476_v61  ;;  %v2760_v56 = vmul.f32 1.442695, %v2740_v29  ;;  %3821 = vpow2.f32 %v3058_v39 }
 0x6de   : > { %v3816_v63 = vpop.eup %3815  ;;  %v2638_v35 = vpop.f32.mrf.mxu0  ;;  %vm2956_vm3 = vweird.f32 %v3814_v59 }
 0x6df   : > { %v3818_v45 = vpop.eup %3817  ;;  %v5493_v50 = vadd.f32 1.0, %v3816_v63  ;;  %v2952_v19 = vsub.f32 1.0, %v2951_v11  ;;  %v2725_v60 = vadd.f32 %v2724_v14, %v2660_v9  ;;  %v2639_v26 = vadd.f32 %v5440_v40, %v2638_v35  ;;  %vm5504_vm9 = vmor %vm2955_vm8, %vm2956_vm3  ;;  %v2703_v41 = vpop.f32.mrf.mxu1 }
 0x6e0   : > { %v3820_v48 = vpop.eup %3819  ;;  %v5495_v37 = vadd.f32 1.0, %v3818_v45 }
 0x6e1   : > { %v2831_v44 = vmul.f32 %v3820_v48, %v5479_v10  ;;  %3823 = vrcp.f32 %v5493_v50  ;;  %v2953_v42 = vmul.f32 %v3814_v59, %v2952_v19  ;;  %vm2836_vm12 = vweird.f32 %v3820_v48 }
 0x6e2   : > { %3825 = vrcp.f32 %v5495_v37  ;;  %v2748_v30 = vsub.f32 0.0, %v2725_v60  ;;  %v2704_v6 = vadd.f32 %v2703_v41, %v2639_v26  ;;  %vm2837_vm15 = vmor %vm2835_vm14, %vm2836_vm12  ;;  %vm2970_vm1 = vweird.f32 %v5493_v50 }
 0x6e3   : > { %v2832_v55 = vsub.f32 1.0, %v2831_v44  ;;  %v2954_v46 = vadd.f32 %v3814_v59, %v2953_v42  ;;  %3827 = vpow2.f32 %v2760_v56  ;;  %v3822_v53 = vpop.eup %3821  ;;  %v2974_v17 = vand.u32 2147483647, %v5493_v50 }
 0x6e4   : > { %v2776_v34 = vmul.f32 1.442695, %v2748_v30  ;;  %3123 = vrot.lane.b32.xlu0 %v3822_v53, %s3926_s22  ;;  %v2741_v31 = vsub.f32 0.0, %v2704_v6  ;;  %v2854_v7 = vand.u32 2147483647, %v5495_v37  ;;  %v2856_v44 = vand.u32 2147483648, %v5495_v37 }
 0x6e5   : > { %v2833_v5 = vmul.f32 %v3820_v48, %v2832_v55  ;;  %v2662_v49 = vpop.f32.mrf.mxu2  ;;  %v2958_v24 = vsel %vm5504_vm9, %v3814_v59, %v2954_v46  ;;  %v2976_v59 = vand.u32 2147483648, %v5493_v50  ;;  %vm5561_vm6 = vcmp.eq.f32.partialorder %v2974_v17, 8.507059e+37 }
 0x6e6   : > { %v2663_v25 = vadd.f32 %v5440_v40, %v2662_v49  ;;  %v2727_v36 = vpop.f32.mrf.mxu3  ;;  %v5516_v54 = vsel %vm2960_vm13, %v2962_v27, %v2958_v24  ;;  %3829 = vpow2.f32 %v2776_v34  ;;  %v2762_v62 = vmul.f32 1.442695, %v2741_v31 }
 0x6e7   : > { %v5512_v58 = vpop.eup %3823  ;;  %v2834_v1 = vadd.f32 %v3820_v48, %v2833_v5  ;;  %3212 = vst.msk [vmem:[%s4051_s23 + $0x50] sm:$0xff] %vm3201_vm10, %v5516_v54  ;;  %v3050_v45 = vmul.f32 0.5, %v5516_v54  ;;  %vm2850_vm7 = vweird.f32 %v5495_v37  ;;  %vm2855_vm3 = vcmp.eq.f32.partialorder %v2854_v7, 8.507059e+37 }
 0x6e8   : > { %v5518_v47 = vpop.eup %3825  ;;  %v2966_v52 = vmul.f32 %v5512_v58, %v5493_v50  ;;  %v2728_v0 = vadd.f32 %v2727_v36, %v2663_v25  ;;  %3831 = vpow2.f32 %v2762_v62  ;;  %vm2971_vm2 = vweird.f32 %v5512_v58 }
 0x6e9   : > { %v2838_v61 = vsel %vm2837_vm15, %v3820_v48, %v2834_v1  ;;  %v2846_v8 = vmul.f32 %v5518_v47, %v5495_v37  ;;  %v3828_v57 = vpop.eup %3827  ;;  %vm2851_vm4 = vweird.f32 %v5518_v47  ;;  %vm5557_vm5 = vmor %vm2970_vm1, %vm2971_vm2  ;;  %v3076_v5 = vmul.f32 1.442695, %v3050_v45 }
 0x6ea   : > { %v2967_v15 = vsub.f32 1.0, %v2966_v52  ;;  %v2749_v2 = vsub.f32 0.0, %v2728_v0  ;;  %v5528_v12 = vsel %vm2840_vm0, %v2842_v38, %v2838_v61  ;;  %v5530_v51 = vadd.f32 1.0, %v3828_v57  ;;  %vm5569_vm11 = vmor %vm2850_vm7, %vm2851_vm4 }
 0x6eb   : > { %v2847_v18 = vsub.f32 1.0, %v2846_v8  ;;  %v3042_v10 = vmul.f32 0.5, %v5528_v12  ;;  %3204 = vst.msk [vmem:[%s4051_s23 + $0x10] sm:$0xff] %vm3201_vm10, %v5528_v12  ;;  %v2977_v37 = vor.u32 1.1754944e-38, %v2976_v59  ;;  %v2857_v53 = vor.u32 1.1754944e-38, %v2856_v44 }
 0x6ec   : > { %v2968_v43 = vmul.f32 %v5512_v58, %v2967_v15  ;;  %v2778_v33 = vmul.f32 1.442695, %v2749_v2  ;;  %3833 = vrcp.f32 %v5530_v51  ;;  %v3830_v14 = vpop.eup %3829  ;;  %v2869_v24 = vand.u32 2147483647, %v5530_v51 }
 0x6ed   : > { %v2848_v22 = vmul.f32 %v5518_v47, %v2847_v18  ;;  %v2665_v3 = vpop.f32.mrf.mxu2  ;;  %v3060_v11 = vmul.f32 1.442695, %v3042_v10  ;;  %v5549_v48 = vadd.f32 1.0, %v3830_v14  ;;  %v2871_v34 = vand.u32 2147483648, %v5530_v51 }
 0x6ee   : > { %3835 = vpow2.f32 %v2778_v33  ;;  %v2666_v29 = vadd.f32 %v5440_v40, %v2665_v3  ;;  %v2641_v9 = vpop.f32.mrf.mxu0  ;;  %v2730_v39 = vpop.f32.mrf.mxu3  ;;  %v2969_v21 = vadd.f32 %v5512_v58, %v2968_v43  ;;  %vm2865_vm9 = vweird.f32 %v5530_v51 }
 0x6ef   : > { %v2642_v63 = vadd.f32 %v5440_v40, %v2641_v9  ;;  %v2849_v35 = vadd.f32 %v5518_v47, %v2848_v22  ;;  %v2706_v56 = vpop.f32.mrf.mxu1  ;;  %3837 = vpow2.f32 %v3060_v11  ;;  %v3832_v42 = vpop.eup %3831  ;;  %vm5606_vm12 = vcmp.eq.f32.partialorder %v2869_v24, 8.507059e+37 }
 0x6f0   : > { %v2731_v19 = vadd.f32 %v2730_v39, %v2666_v29  ;;  %3839 = vrcp.f32 %v5549_v48  ;;  %v5573_v50 = vadd.f32 1.0, %v3832_v42  ;;  %v2973_v30 = vsel %vm5557_vm5, %v5512_v58, %v2969_v21 }
 0x6f1   : > { %v2707_v60 = vadd.f32 %v2706_v56, %v2642_v63  ;;  %v2853_v41 = vsel %vm5569_vm11, %v5518_v47, %v2849_v35  ;;  %v5591_v38 = vsel %vm5561_vm6, %v2977_v37, %v2973_v30  ;;  %v2872_v62 = vor.u32 1.1754944e-38, %v2871_v34 }
 0x6f2   : > { %v3834_v46 = vpop.eup %3833  ;;  %v2750_v32 = vsub.f32 0.0, %v2731_v19  ;;  %3841 = vrcp.f32 %v5573_v50  ;;  %v5587_v47 = vsel %vm2855_vm3, %v2857_v53, %v2853_v41  ;;  %3213 = vst.msk [vmem:[%s4051_s23 + $0x58] sm:$0xff] %vm3201_vm10, %v5591_v38  ;;  %vm2985_vm14 = vweird.f32 %v5549_v48 }
 0x6f3   : > { %v2742_v4 = vsub.f32 0.0, %v2707_v60  ;;  %v2861_v49 = vmul.f32 %v3834_v46, %v5530_v51  ;;  %3843 = vpow2.f32 %v3076_v5  ;;  %vm2866_vm8 = vweird.f32 %v3834_v46  ;;  %3205 = vst.msk [vmem:[%s4051_s23 + $0x18] sm:$0xff] %vm3201_vm10, %v5587_v47 }
 0x6f4   : > { %v3836_v23 = vpop.eup %3835  ;;  %v2780_v36 = vmul.f32 1.442695, %v2750_v32  ;;  %v3043_v57 = vmul.f32 0.5, %v5587_v47  ;;  %vm2867_vm13 = vmor %vm2865_vm9, %vm2866_vm8  ;;  %v2989_v18 = vand.u32 2147483647, %v5549_v48  ;;  %v2886_v43 = vand.u32 2147483648, %v5573_v50 }
 0x6f5   : > { %v2862_v6 = vsub.f32 1.0, %v2861_v49  ;;  %v5584_v25 = vadd.f32 1.0, %v3836_v23  ;;  %v2764_v58 = vmul.f32 1.442695, %v2742_v4  ;;  %v3838_v1 = vpop.eup %3837  ;;  %v2991_v3 = vand.u32 2147483648, %v5549_v48 }
 0x6f6   : > { %v5593_v52 = vpop.eup %3839  ;;  %3125 = vrot.lane.b32.xlu1 %v3838_v1, %s3926_s22  ;;  %v3062_v33 = vmul.f32 1.442695, %v3043_v57  ;;  %vm2880_vm15 = vweird.f32 %v5573_v50  ;;  %v3051_v14 = vmul.f32 0.5, %v5591_v38  ;;  %v2884_v45 = vand.u32 2147483647, %v5573_v50 }
 0x6f7   : > { %v2863_v31 = vmul.f32 %v3834_v46, %v2862_v6  ;;  %3845 = vrcp.f32 %v5584_v25  ;;  %v2981_v0 = vmul.f32 %v5593_v52, %v5549_v48  ;;  %vm2986_vm0 = vweird.f32 %v5593_v52 }
 0x6f8   : > { %3847 = vpow2.f32 %v2780_v36  ;;  %v3842_v15 = vpop.eup %3841  ;;  %v2887_v56 = vor.u32 1.1754944e-38, %v2886_v43  ;;  %v3004_v60 = vand.u32 2147483647, %v5584_v25  ;;  %vm5639_vm2 = vmor %vm2985_vm14, %vm2986_vm0  ;;  %v3006_v27 = vand.u32 2147483648, %v5584_v25 }
 0x6f9   : > { %v2864_v61 = vadd.f32 %v3834_v46, %v2863_v31  ;;  %3849 = vpow2.f32 %v2764_v58  ;;  %v2982_v2 = vsub.f32 1.0, %v2981_v0  ;;  %v2876_v10 = vmul.f32 %v3842_v15, %v5573_v50  ;;  %v3844_v17 = vpop.eup %3843 }
 0x6fa   : > { %3851 = vpow2.f32 %v3062_v33  ;;  %vm2881_vm1 = vweird.f32 %v3842_v15  ;;  %v3078_v32 = vmul.f32 1.442695, %v3051_v14  ;;  %vm2990_vm6 = vcmp.eq.f32.partialorder %v2989_v18, 8.507059e+37 }
 0x6fb   : > { %v2868_v51 = vsel %vm2867_vm13, %v3834_v46, %v2864_v61  ;;  %v2983_v22 = vmul.f32 %v5593_v52, %v2982_v2  ;;  %v2877_v9 = vsub.f32 1.0, %v2876_v10  ;;  %vm2882_vm4 = vmor %vm2880_vm15, %vm2881_vm1  ;;  %v2992_v23 = vor.u32 1.1754944e-38, %v2991_v3 }
 0x6fc   : > { %v5620_v59 = vsel %vm5606_vm12, %v2872_v62, %v2868_v51  ;;  %vm2885_vm7 = vcmp.eq.f32.partialorder %v2884_v45, 8.507059e+37  ;;  %vm3000_vm11 = vweird.f32 %v5584_v25  ;;  %v3007_v50 = vor.u32 1.1754944e-38, %v3006_v27 }
 0x6fd   : > { %v3846_v29 = vpop.eup %3845  ;;  %v3044_v39 = vmul.f32 0.5, %v5620_v59  ;;  %3206 = vst.msk [vmem:[%s4051_s23 + $0x20] sm:$0xff] %vm3201_vm10, %v5620_v59  ;;  %v2984_v11 = vadd.f32 %v5593_v52, %v2983_v22  ;;  %v2878_v19 = vmul.f32 %v3842_v15, %v2877_v9  ;;  %vm3005_vm8 = vcmp.eq.f32.partialorder %v3004_v60, 8.507059e+37 }
 0x6fe   : > { %v3848_v63 = vpop.eup %3847  ;;  %v2996_v21 = vmul.f32 %v3846_v29, %v5584_v25  ;;  %3141 = vrot.lane.b32.xlu1 %v3844_v17, %s3926_s22  ;;  %vm3001_vm5 = vweird.f32 %v3846_v29 }
 0x6ff   : > { %v3850_v35 = vpop.eup %3849  ;;  %v5631_v7 = vadd.f32 1.0, %v3848_v63  ;;  %v3064_v26 = vmul.f32 1.442695, %v3044_v39  ;;  %v2879_v46 = vadd.f32 %v3842_v15, %v2878_v19  ;;  %v2988_v4 = vsel %vm5639_vm2, %v5593_v52, %v2984_v11  ;;  %vm3002_vm3 = vmor %vm3000_vm11, %vm3001_vm5 }
 0x700   : > { %v2997_v44 = vsub.f32 1.0, %v2996_v21  ;;  %v5635_v42 = vadd.f32 1.0, %v3850_v35  ;;  %v3852_v48 = vpop.eup %3851  ;;  %v5656_v53 = vsel %vm2990_vm6, %v2992_v23, %v2988_v4 }
 0x701   : > { %3853 = vrcp.f32 %v5631_v7  ;;  %v2883_v30 = vsel %vm2882_vm4, %v3842_v15, %v2879_v46  ;;  %3127 = vrot.lane.b32.xlu0 %v3852_v48, %s3926_s22  ;;  %v3052_v6 = vmul.f32 0.5, %v5656_v53  ;;  %3214 = vst.msk [vmem:[%s4051_s23 + $0x60] sm:$0xff] %vm3201_vm10, %v5656_v53  ;;  %v3019_v0 = vand.u32 2147483647, %v5631_v7 }
 0x702   : > { %v2998_v5 = vmul.f32 %v3846_v29, %v2997_v44  ;;  %3855 = vrcp.f32 %v5635_v42  ;;  %v5653_v41 = vsel %vm2885_vm7, %v2887_v56, %v2883_v30  ;;  %v3021_v61 = vand.u32 2147483648, %v5631_v7 }
 0x703   : > { %3857 = vpow2.f32 %v3064_v26  ;;  %v3045_v49 = vmul.f32 0.5, %v5653_v41  ;;  %3207 = vst.msk [vmem:[%s4051_s23 + $0x28] sm:$0xff] %vm3201_vm10, %v5653_v41  ;;  %v3080_v52 = vmul.f32 1.442695, %v3052_v6  ;;  %v2901_v43 = vand.u32 2147483648, %v5635_v42 }
 0x704   : > { %v2999_v37 = vadd.f32 %v3846_v29, %v2998_v5  ;;  %3859 = vpow2.f32 %v3078_v32  ;;  %v2899_v14 = vand.u32 2147483647, %v5635_v42  ;;  %vm3015_vm13 = vweird.f32 %v5631_v7 }
 0x705   : > { %v3066_v36 = vmul.f32 1.442695, %v3045_v49  ;;  %vm3020_vm15 = vcmp.eq.f32.partialorder %v3019_v0, 8.507059e+37  ;;  %v3022_v21 = vor.u32 1.1754944e-38, %v3021_v61  ;;  %vm2895_vm0 = vweird.f32 %v5635_v42 }
 0x706   : > { %v3003_v24 = vsel %vm3002_vm3, %v3846_v29, %v2999_v37  ;;  %v2902_v56 = vor.u32 1.1754944e-38, %v2901_v43  ;;  %vm2900_vm2 = vcmp.eq.f32.partialorder %v2899_v14, 8.507059e+37 }
 0x707   : > { %v3854_v25 = vpop.eup %3853  ;;  %v5665_v58 = vsel %vm3005_vm8, %v3007_v50, %v3003_v24  ;;  %3861 = vpow2.f32 %v3066_v36 }
 0x708   : > { %v3856_v1 = vpop.eup %3855  ;;  %v3011_v34 = vmul.f32 %v3854_v25, %v5631_v7  ;;  %v3053_v31 = vmul.f32 0.5, %v5665_v58  ;;  %3215 = vst.msk [vmem:[%s4051_s23 + $0x68] sm:$0xff] %vm3201_vm10, %v5665_v58  ;;  %vm3016_vm9 = vweird.f32 %v3854_v25  ;;  %3863 = vpow2.f32 %v3080_v52 }
 0x709   : > { %v2891_v8 = vmul.f32 %v3856_v1, %v5635_v42  ;;  %v2668_v57 = vpop.f32.mrf.mxu2  ;;  %v3858_v15 = vpop.eup %3857  ;;  %vm2896_vm12 = vweird.f32 %v3856_v1  ;;  %vm3017_vm14 = vmor %vm3015_vm13, %vm3016_vm9 }
 0x70a   : > { %v3012_v62 = vsub.f32 1.0, %v3011_v34  ;;  %v2669_v2 = vadd.f32 %v5440_v40, %v2668_v57  ;;  %v3082_v18 = vmul.f32 1.442695, %v3053_v31  ;;  %v3860_v51 = vpop.eup %3859  ;;  %3129 = vrot.lane.b32.xlu2 %v3858_v15, %s3926_s22  ;;  %v2733_v33 = vpop.f32.mrf.mxu3  ;;  %vm2897_vm1 = vmor %vm2895_vm0, %vm2896_vm12 }
 0x70b   : > { %v2892_v10 = vsub.f32 1.0, %v2891_v8  ;;  %v2644_v17 = vpop.f32.mrf.mxu0  ;;  %3143 = vrot.lane.b32.xlu0 %v3860_v51, %s3926_s22  ;;  %v2709_v39 = vpop.f32.mrf.mxu1 }
 0x70c   : > { %v3013_v22 = vmul.f32 %v3854_v25, %v3012_v62  ;;  %v2734_v3 = vadd.f32 %v2733_v33, %v2669_v2  ;;  %v2645_v29 = vadd.f32 %v5440_v40, %v2644_v17  ;;  %3865 = vpow2.f32 %v3082_v18 }
 0x70d   : > { %v2893_v9 = vmul.f32 %v3856_v1, %v2892_v10  ;;  %v3862_v40 = vpop.eup %3861 }
 0x70e   : > { %v3014_v63 = vadd.f32 %v3854_v25, %v3013_v22  ;;  %v2751_v11 = vsub.f32 0.0, %v2734_v3  ;;  %v2710_v45 = vadd.f32 %v2709_v39, %v2645_v29  ;;  %v3864_v26 = vpop.eup %3863  ;;  %v3097_v39 = vld [vmem:[%s5717_s26 + $0x40] sm:$0xff] }
 0x70f   : > { %v2894_v35 = vadd.f32 %v3856_v1, %v2893_v9 }
 0x710   : > { %v3018_v19 = vsel %vm3017_vm14, %v3854_v25, %v3014_v63  ;;  %v2782_v44 = vmul.f32 1.442695, %v2751_v11  ;;  %v2743_v60 = vsub.f32 0.0, %v2710_v45  ;;  %v3089_v45 = vld [vmem:[%s5717_s26] sm:$0xff] }
 0x711   : > { %v2898_v55 = vsel %vm2897_vm1, %v3856_v1, %v2894_v35  ;;  %v5684_v7 = vsel %vm3020_vm15, %v3022_v21, %v3018_v19  ;;  %v3138_v63 = vpop.permute.xlu0 %3137  ;;  %v3122_v21 = vpop.permute.xlu2 %3121 }
 0x712   : > { %v3866_v46 = vpop.eup %3865  ;;  %3867 = vpow2.f32 %v2782_v44  ;;  %v2766_v27 = vmul.f32 1.442695, %v2743_v60  ;;  %v3054_v32 = vmul.f32 0.5, %v5684_v7  ;;  %v5687_v4 = vsel %vm2900_vm2, %v2902_v56, %v2898_v55  ;;  %3216 = vst.msk [vmem:[%s4051_s23 + $0x70] sm:$0xff] %vm3201_vm10, %v5684_v7  ;;  %3145 = vrot.lane.b32.xlu2 %v3864_v26, %s3926_s22  ;;  %v3098_v44 = vld [vmem:[%s5717_s26 + $0x48] sm:$0xff] }
 0x713   : > { %3147 = vrot.lane.b32.xlu1 %v3866_v46, %s3926_s22  ;;  %v3046_v42 = vmul.f32 0.5, %v5687_v4  ;;  %3208 = vst.msk [vmem:[%s4051_s23 + $0x30] sm:$0xff] %vm3201_vm10, %v5687_v4  ;;  %3131 = vrot.lane.b32.xlu0 %v3862_v40, %s3926_s22  ;;  %v3177_v35 = vmul.f32 %v3138_v63, %v3097_v39  ;;  %v3169_v40 = vmul.f32 %v3122_v21, %v3089_v45  ;;  %v3090_v46 = vld [vmem:[%s5717_s26 + $0x8] sm:$0xff] }
 0x714   : > { %3869 = vpow2.f32 %v2766_v27  ;;  %v3084_v5 = vmul.f32 1.442695, %v3054_v32 }
 0x715   : > { %v3068_v48 = vmul.f32 1.442695, %v3046_v42  ;;  %v3193_v19 = vadd.f32 %v3177_v35, %v5450_v20  ;;  %v3185_v56 = vadd.f32 %v3169_v40, %v5456_v13  ;;  %v3091_v13 = vld [vmem:[%s5717_s26 + $0x10] sm:$0xff] }
 0x716   : > { %3871 = vpow2.f32 %v3084_v5 }
 0x717   : > { %3873 = vpow2.f32 %v3068_v48 }
 0x718   : > { %v3868_v23 = vpop.eup %3867 }
 0x719   : > { %v2799_v30 = vadd.f32 1.0, %v3868_v23 }
 0x71a   : > { %v3870_v37 = vpop.eup %3869 }
 0x71b   : > { %3875 = vrcp.f32 %v2799_v30  ;;  %v2791_v49 = vadd.f32 1.0, %v3870_v37  ;;  %v3036_v34 = vand.u32 2147483648, %v2799_v30  ;;  %v3034_v0 = vand.u32 2147483647, %v2799_v30 }
 0x71c   : > { %v3872_v50 = vpop.eup %3871  ;;  %vm3030_vm5 = vweird.f32 %v2799_v30 }
 0x71d   : > { %v3874_v24 = vpop.eup %3873  ;;  %3149 = vrot.lane.b32.xlu0 %v3872_v50, %s3926_s22  ;;  %3877 = vrcp.f32 %v2791_v49  ;;  %v2916_v57 = vand.u32 2147483648, %v2791_v49  ;;  %v3037_v15 = vor.u32 1.1754944e-38, %v3036_v34  ;;  %v2914_v2 = vand.u32 2147483647, %v2791_v49 }
 0x71e   : > { %3133 = vrot.lane.b32.xlu2 %v3874_v24, %s3926_s22  ;;  %vm3035_vm11 = vcmp.eq.f32.partialorder %v3034_v0, 8.507059e+37  ;;  %vm2910_vm3 = vweird.f32 %v2791_v49  ;;  %v3093_v24 = vld [vmem:[%s5717_s26 + $0x20] sm:$0xff] }
 0x71f   : > { %v2917_v43 = vor.u32 1.1754944e-38, %v2916_v57  ;;  %vm2915_vm9 = vcmp.eq.f32.partialorder %v2914_v2, 8.507059e+37 }
 0x721   : > { %v3876_v6 = vpop.eup %3875 }
 0x722   : > { %v3026_v25 = vmul.f32 %v3876_v6, %v2799_v30  ;;  %vm3031_vm4 = vweird.f32 %v3876_v6 }
 0x723   : > { %v3878_v36 = vpop.eup %3877  ;;  %vm3032_vm6 = vmor %vm3030_vm5, %vm3031_vm4 }
 0x724   : > { %v3027_v1 = vsub.f32 1.0, %v3026_v25  ;;  %v2906_v52 = vmul.f32 %v3878_v36, %v2791_v49  ;;  %vm2911_vm7 = vweird.f32 %v3878_v36  ;;  %v3092_v49 = vld [vmem:[%s5717_s26 + $0x18] sm:$0xff] }
 0x725   : > { %vm2912_vm8 = vmor %vm2910_vm3, %vm2911_vm7 }
 0x726   : > { %v3028_v31 = vmul.f32 %v3876_v6, %v3027_v1  ;;  %v2907_v61 = vsub.f32 1.0, %v2906_v52  ;;  %v3100_v52 = vld [vmem:[%s5717_s26 + $0x58] sm:$0xff] }
 0x728   : > { %v3029_v8 = vadd.f32 %v3876_v6, %v3028_v31  ;;  %v2908_v62 = vmul.f32 %v3878_v36, %v2907_v61 }
 0x72a   : > { %v3033_v18 = vsel %vm3032_vm6, %v3876_v6, %v3029_v8  ;;  %v2909_v51 = vadd.f32 %v3878_v36, %v2908_v62 }
 0x72b   : > { %v5701_v10 = vsel %vm3035_vm11, %v3037_v15, %v3033_v18  ;;  %v3094_v15 = vld [vmem:[%s5717_s26 + $0x28] sm:$0xff] }
 0x72c   : > { %v3055_v33 = vmul.f32 0.5, %v5701_v10  ;;  %3217 = vst.msk [vmem:[%s4051_s23 + $0x78] sm:$0xff] %vm3201_vm10, %v5701_v10  ;;  %v2913_v17 = vsel %vm2912_vm8, %v3878_v36, %v2909_v51 }
 0x72d   : > { %v5707_v3 = vsel %vm2915_vm9, %v2917_v43, %v2913_v17  ;;  %v3104_v43 = vld [vmem:[%s5717_s26 + $0x78] sm:$0xff] }
 0x72e   : > { %v3086_v22 = vmul.f32 1.442695, %v3055_v33  ;;  %v3047_v29 = vmul.f32 0.5, %v5707_v3  ;;  %3209 = vst.msk [vmem:[%s4051_s23 + $0x38] sm:$0xff] %vm3201_vm10, %v5707_v3  ;;  %vm3282_vm10 = vcmask 392448  }
 0x730   : > { %3879 = vpow2.f32 %v3086_v22  ;;  %v3070_v9 = vmul.f32 1.442695, %v3047_v29 }
 0x731   : > { %v3140_v60 = vpop.permute.xlu2 %3139 }
 0x732   : > { %3881 = vpow2.f32 %v3070_v9  ;;  %v3178_v26 = vmul.f32 %v3140_v60, %v3098_v44 }
 0x734   : > { %v3194_v55 = vadd.f32 %v3178_v26, %v5468_v16  ;;  %v3099_v16 = vld [vmem:[%s5717_s26 + $0x50] sm:$0xff] }
 0x736   : > { %v3880_v14 = vpop.eup %3879 }
 0x737   : > { %3151 = vrot.lane.b32.xlu2 %v3880_v14, %s3926_s22  ;;  %v3096_v14 = vld [vmem:[%s5717_s26 + $0x38] sm:$0xff] }
 0x738   : > { %v3882_v11 = vpop.eup %3881 }
 0x739   : > { %3135 = vrot.lane.b32.xlu1 %v3882_v11, %s3926_s22  ;;  %v3102_v11 = vld [vmem:[%s5717_s26 + $0x68] sm:$0xff] }
 0x73f   : > { %3250 = vrot.lane.b32.xlu2 %v3193_v19, %s3927_s14 }
 0x741   : > { %3234 = vrot.lane.b32.xlu1 %v3185_v56, %s3927_s14 }
 0x749   : > { %3252 = vrot.lane.b32.xlu1 %v3194_v55, %s3927_s14 }
 0x756   : > { %v3124_v27 = vpop.permute.xlu0 %3123 }
 0x757   : > { %v3170_v20 = vmul.f32 %v3124_v27, %v3090_v46 }
 0x759   : > { %v3186_v32 = vadd.f32 %v3170_v20, %v5483_v28 }
 0x75b   : > { %3236 = vrot.lane.b32.xlu0 %v3186_v32, %s3927_s14 }
 0x764   : > { %v3130_v23 = vpop.permute.xlu2 %3129 }
 0x765   : > { %v3173_v25 = vmul.f32 %v3130_v23, %v3093_v24 }
 0x767   : > { %v3189_v34 = vadd.f32 %v3173_v25, %v5620_v59 }
 0x768   : > { %v3126_v42 = vpop.permute.xlu1 %3125 }
 0x769   : > { %v3171_v5 = vmul.f32 %v3126_v42, %v3091_v13 }
 0x76b   : > { %v3187_v48 = vadd.f32 %v3171_v5, %v5528_v12  ;;  %v3101_v12 = vld [vmem:[%s5717_s26 + $0x60] sm:$0xff] }
 0x76c   : > { %v3146_v1 = vpop.permute.xlu2 %3145 }
 0x76d   : > { %3238 = vrot.lane.b32.xlu2 %v3187_v48, %s3927_s14  ;;  %v3181_v31 = vmul.f32 %v3146_v1, %v3101_v12 }
 0x76f   : > { %v3197_v61 = vadd.f32 %v3181_v31, %v5656_v53 }
 0x770   : > { %v3142_v30 = vpop.permute.xlu1 %3141 }
 0x771   : > { %v3179_v37 = vmul.f32 %v3142_v30, %v3099_v16 }
 0x773   : > { %v3195_v50 = vadd.f32 %v3179_v37, %v5516_v54  ;;  %v3128_v28 = vpop.permute.xlu0 %3127 }
 0x774   : > { %v3172_v6 = vmul.f32 %v3128_v28, %v3092_v49 }
 0x775   : > { %3254 = vrot.lane.b32.xlu0 %v3195_v50, %s3927_s14 }
 0x776   : > { %v3188_v36 = vadd.f32 %v3172_v6, %v5587_v47  ;;  %v3095_v47 = vld [vmem:[%s5717_s26 + $0x30] sm:$0xff] }
 0x778   : > { %3240 = vrot.lane.b32.xlu1 %v3188_v36, %s3927_s14  ;;  %v3134_v57 = vpop.permute.xlu2 %3133 }
 0x779   : > { %v3175_v59 = vmul.f32 %v3134_v57, %v3095_v47 }
 0x77b   : > { %v3191_v18 = vadd.f32 %v3175_v59, %v5687_v4 }
 0x77d   : > { %v3144_v54 = vpop.permute.xlu0 %3143  ;;  %3242 = vrot.lane.b32.xlu0 %v3189_v34, %s3927_s14 }
 0x77e   : > { %v3180_v0 = vmul.f32 %v3144_v54, %v3100_v52 }
 0x780   : > { %v3196_v8 = vadd.f32 %v3180_v0, %v5591_v38  ;;  %3258 = vrot.lane.b32.xlu1 %v3197_v61, %s3927_s14  ;;  %v3103_v38 = vld [vmem:[%s5717_s26 + $0x70] sm:$0xff] }
 0x782   : > { %3256 = vrot.lane.b32.xlu2 %v3196_v8, %s3927_s14 }
 0x785   : > { %v3132_v62 = vpop.permute.xlu0 %3131  ;;  %v3148_v9 = vpop.permute.xlu1 %3147 }
 0x786   : > { %v3174_v2 = vmul.f32 %v3132_v62, %v3094_v15 }
 0x788   : > { %v3190_v51 = vadd.f32 %v3174_v2, %v5653_v41  ;;  %3246 = vrot.lane.b32.xlu1 %v3191_v18, %s3927_s14 }
 0x78a   : > { %3244 = vrot.lane.b32.xlu2 %v3190_v51, %s3927_s14 }
 0x78f   : > { %v3150_v53 = vpop.permute.xlu0 %3149 }
 0x790   : > { %v3183_v33 = vmul.f32 %v3150_v53, %v3103_v38 }
 0x791   : > { %v3152_v17 = vpop.permute.xlu2 %3151 }
 0x792   : > { %v3199_v22 = vadd.f32 %v3183_v33, %v5684_v7  ;;  %v3184_v29 = vmul.f32 %v3152_v17, %v3104_v43 }
 0x794   : > { %3262 = vrot.lane.b32.xlu2 %v3199_v22, %s3927_s14  ;;  %v3200_v4 = vadd.f32 %v3184_v29, %v5701_v10  ;;  %v3182_v10 = vmul.f32 %v3148_v9, %v3102_v11 }
 0x796   : > { %3264 = vrot.lane.b32.xlu1 %v3200_v4, %s3927_s14  ;;  %v3198_v21 = vadd.f32 %v3182_v10, %v5665_v58 }
 0x799   : > { %v3251_v41 = vpop.permute.xlu2 %3250 }
 0x79a   : > { %3291 = vst.msk [vmem:[%s4051_s23 + $0x40] sm:$0xff] %vm3282_vm10, %v3251_v41 }
 0x7ab   : > { %v3136_v39 = vpop.permute.xlu1 %3135 }
 0x7ac   : > { %v3176_v63 = vmul.f32 %v3136_v39, %v3096_v14 }
 0x7ae   : > { %v3192_v7 = vadd.f32 %v3176_v63, %v5707_v3 }
 0x7b0   : > { %3248 = vrot.lane.b32.xlu0 %v3192_v7, %s3927_s14 }
 0x7b3   : > { %v3235_v45 = vpop.permute.xlu1 %3234 }
 0x7b4   : > { %3283 = vst.msk [vmem:[%s4051_s23] sm:$0xff] %vm3282_vm10, %v3235_v45 }
 0x7b8   : > { %3260 = vrot.lane.b32.xlu0 %v3198_v21, %s3927_s14 }
 0x7bb   : > { %v3253_v35 = vpop.permute.xlu1 %3252 }
 0x7bc   : > { %3292 = vst.msk [vmem:[%s4051_s23 + $0x48] sm:$0xff] %vm3282_vm10, %v3253_v35 }
 0x7c7   : > { %v3239_v3 = vpop.permute.xlu2 %3238 }
 0x7c8   : > { %3285 = vst.msk [vmem:[%s4051_s23 + $0x10] sm:$0xff] %vm3282_vm10, %v3239_v3 }
 0x7cd   : > { %v3237_v40 = vpop.permute.xlu0 %3236 }
 0x7ce   : > { %3284 = vst.msk [vmem:[%s4051_s23 + $0x8] sm:$0xff] %vm3282_vm10, %v3237_v40 }
 0x7dc   : > { %v3257_v19 = vpop.permute.xlu2 %3256 }
 0x7dd   : > { %3294 = vst.msk [vmem:[%s4051_s23 + $0x58] sm:$0xff] %vm3282_vm10, %v3257_v19 }
 0x7e4   : > { %v3245_v58 = vpop.permute.xlu2 %3244 }
 0x7e5   : > { %3288 = vst.msk [vmem:[%s4051_s23 + $0x28] sm:$0xff] %vm3282_vm10, %v3245_v58 }
 0x7e7   : > { %v3255_v56 = vpop.permute.xlu0 %3254 }
 0x7e8   : > { %3293 = vst.msk [vmem:[%s4051_s23 + $0x50] sm:$0xff] %vm3282_vm10, %v3255_v56 }
 0x7ea   : > { %v3241_v44 = vpop.permute.xlu1 %3240 }
 0x7eb   : > { %3286 = vst.msk [vmem:[%s4051_s23 + $0x18] sm:$0xff] %vm3282_vm10, %v3241_v44 }
 0x7ee   : > { %v3263_v60 = vpop.permute.xlu2 %3262 }
 0x7ef   : > { %3297 = vst.msk [vmem:[%s4051_s23 + $0x70] sm:$0xff] %vm3282_vm10, %v3263_v60  ;;  %v3243_v26 = vpop.permute.xlu0 %3242 }
 0x7f0   : > { %3287 = vst.msk [vmem:[%s4051_s23 + $0x20] sm:$0xff] %vm3282_vm10, %v3243_v26 }
 0x7f2   : > { %v3259_v55 = vpop.permute.xlu1 %3258 }
 0x7f3   : > { %3295 = vst.msk [vmem:[%s4051_s23 + $0x60] sm:$0xff] %vm3282_vm10, %v3259_v55 }
 0x7fa   : > { %v3247_v46 = vpop.permute.xlu1 %3246 }
 0x7fb   : > { %3289 = vst.msk [vmem:[%s4051_s23 + $0x30] sm:$0xff] %vm3282_vm10, %v3247_v46 }
 0x808   : > { %v3265_v27 = vpop.permute.xlu1 %3264 }
 0x809   : > { %3298 = vst.msk [vmem:[%s4051_s23 + $0x78] sm:$0xff] %vm3282_vm10, %v3265_v27 }
 0x822   : > { %v3249_v20 = vpop.permute.xlu0 %3248 }
 0x823   : > { %3290 = vst.msk [vmem:[%s4051_s23 + $0x38] sm:$0xff] %vm3282_vm10, %v3249_v20 }
 0x82a   : > { %v3261_v32 = vpop.permute.xlu0 %3260 }
 0x82b   : > { %3296 = vst.msk [vmem:[%s4051_s23 + $0x68] sm:$0xff] %vm3282_vm10, %v3261_v32 }
 0x82c PF: > { %s18_s9 = sadd.s32 1, %s3921_s9   ;;  %s5941_s27 = smov %s3913_s29 }
 0x82d   : > { %p15_p9 = scmp.ge.s32.totalorder %s18_s9, 6   ;;  %s5942_s28 = smov %s3917_s30 }
 0x82e   : > { %s5943_s29 = smov %s5946_s10  ;;  %s5944_s30 = smov %s5950_s11 }
 0x82f   :  { %17 = sbr.rel (!%p15_p9) target bundleno = 3 (0x3), region = 94 }

</bundles_post_ra>
